<compile_context>
chip_gen: v6e
topology: v6e:2x2x1
jax: 0.10.0
libtpu: 0.0.40
codegen_flags: <defaults>
</compile_context>

<pallas_src>
import functools

import jax
import jax.numpy as jnp
from jax.experimental import pallas as pl
from jax.experimental.pallas import tpu as pltpu


# -----------------------------------------------------------------------------
# Kernel A: fused 3x3 conv (pad=1, stride=1) + BN(eval) + ReLU + 2x2 max pool,
# row-band tiled with a 2-row halo operand.  Used for layers 2 and 3.
# -----------------------------------------------------------------------------
def _conv3_bn_relu_pool_kernel(x_main_ref, x_halo_ref, w_ref, scale_ref,
                               shift_ref, o_ref, *, TH, W, Cin, Cout,
                               group_bounds):
    # x_main_ref: (1, TH, W+2, Cin)  padded rows [b*TH, b*TH+TH)
    # x_halo_ref: (1, 2,  W+2, Cin)  padded rows [b*TH+TH, b*TH+TH+2)
    # w_ref:      (9*Cin, Cout)      tap-major (dy*3+dx), channel-minor, bf16
    # scale_ref / shift_ref: (1, Cout) folded BatchNorm affine (f32)
    # o_ref:      (1, TH//2, W//2, Cout)
    xb = jnp.concatenate([x_main_ref[0], x_halo_ref[0]], axis=0)  # (TH+2, W+2, Cin)

    acc = jnp.zeros((TH * W, Cout), dtype=jnp.float32)
    for t0, tn in group_bounds:            # static unroll over tap groups
        pieces = []
        for t in range(t0, t0 + tn):
            dy, dx = t // 3, t % 3
            pieces.append(xb[dy:dy + TH, dx:dx + W, :])
        patch = pieces[0] if tn == 1 else jnp.concatenate(pieces, axis=-1)
        patch = patch.reshape(TH * W, tn * Cin)
        acc = acc + jnp.dot(patch, w_ref[t0 * Cin:(t0 + tn) * Cin, :],
                            preferred_element_type=jnp.float32)

    y = jnp.maximum(acc * scale_ref[0] + shift_ref[0], 0.0)        # BN + ReLU
    y = y.reshape(TH // 2, 2, W // 2, 2, Cout)                     # 2x2 max pool
    y = jnp.max(y, axis=(1, 3))
    o_ref[...] = y[None].astype(o_ref.dtype)


def conv3_bn_relu_pool(x, w, scale, shift):
    """x: (N, H, W, Cin) bf16 NHWC.  Returns (N, H/2, W/2, Cout) bf16."""
    N, H, W, Cin = x.shape
    Cout = w.shape[-1]
    assert w.shape[0] == 9 * Cin and H % 2 == 0 and W % 2 == 0
    TH = H if H <= 32 else 32              # row-band height (halo-inclusive tile TH+2)
    assert H % TH == 0 and TH % 2 == 0
    nb = H // TH

    # Group taps in pairs (K = 2*Cin) only when the lane concat is tile-aligned
    # (Cin % 128 == 0, i.e. layer 3 -> K=256 matmuls).
    # TODO(synk): group layer-2 taps to K=256 for v6e/v7x once unaligned lane
    # concatenation (64-wide bf16 pieces) is relied upon.
    G = 2 if Cin % 128 == 0 else 1
    group_bounds = tuple((t0, min(G, 9 - t0)) for t0 in range(0, 9, G))

    # TODO(synk): halo/zero padding could be generated in-kernel to avoid this
    # HBM pad pass over the activation.
    xp = jnp.pad(x, ((0, 0), (1, 1), (1, 1), (0, 0)))   # (N, H+2, W+2, Cin)

    kernel = functools.partial(_conv3_bn_relu_pool_kernel, TH=TH, W=W, Cin=Cin,
                               Cout=Cout, group_bounds=group_bounds)
    return pl.pallas_call(
        kernel,
        out_shape=jax.ShapeDtypeStruct((N, H // 2, W // 2, Cout), x.dtype),
        grid_spec=pltpu.PrefetchScalarGridSpec(
            num_scalar_prefetch=0,
            grid=(N, nb),
            in_specs=[
                # main TH rows of the halo band
                pl.BlockSpec((1, TH, W + 2, Cin), lambda n, b: (n, b, 0, 0)),
                # bottom 2-row halo: block of 2 rows starting at (b+1)*TH
                pl.BlockSpec((1, 2, W + 2, Cin),
                             lambda n, b: (n, (b + 1) * (TH // 2), 0, 0)),
                pl.BlockSpec((9 * Cin, Cout), lambda n, b: (0, 0)),
                pl.BlockSpec((1, Cout), lambda n, b: (0, 0)),
                pl.BlockSpec((1, Cout), lambda n, b: (0, 0)),
            ],
            out_specs=pl.BlockSpec((1, TH // 2, W // 2, Cout),
                                   lambda n, b: (n, b, 0, 0)),
        ),
        compiler_params=pltpu.CompilerParams(
            dimension_semantics=("parallel", "parallel"),
            vmem_limit_bytes=48 * 1024 * 1024),
    )(xp, xp, w, scale, shift)


# -----------------------------------------------------------------------------
# Kernel B: layer 1 as a single fused matmul on XLA-side im2col patches
# (K = 9*3 = 27) + BN(eval) + ReLU + 2x2 max pool, row-band tiled.
# -----------------------------------------------------------------------------
def _mm_bn_relu_pool_kernel(x_ref, w_ref, scale_ref, shift_ref, o_ref,
                            *, TH, W, K, Cout):
    # x_ref: (1, TH, W, K) im2col patches, w_ref: (K, Cout)
    x = x_ref[0].reshape(TH * W, K)
    y = jnp.dot(x, w_ref[...], preferred_element_type=jnp.float32)
    y = jnp.maximum(y * scale_ref[0] + shift_ref[0], 0.0)
    y = y.reshape(TH // 2, 2, W // 2, 2, Cout)
    y = jnp.max(y, axis=(1, 3))
    # TODO(synk): a lane-dense (W/2*Cout)-wide store layout would avoid masked
    # vst for Cout=64; left as a follow-up (needs a sublane->lane reshape).
    o_ref[...] = y[None].astype(o_ref.dtype)


def conv1_bn_relu_pool(x, w, scale, shift):
    """x: (N, H, W, 3) bf16.  Returns (N, H/2, W/2, 64) bf16."""
    N, H, W, C = x.shape
    Cout = w.shape[-1]
    K = w.shape[0]
    assert K == 9 * C and H % 2 == 0 and W % 2 == 0

    # XLA-side im2col (tap-major, channel-minor) -> (N, H, W, 27)
    xp = jnp.pad(x, ((0, 0), (1, 1), (1, 1), (0, 0)))
    cols = [xp[:, dy:dy + H, dx:dx + W, :] for dy in range(3) for dx in range(3)]
    patches = jnp.concatenate(cols, axis=-1)

    TH = H if H <= 32 else 32
    assert H % TH == 0 and TH % 2 == 0
    nb = H // TH

    kernel = functools.partial(_mm_bn_relu_pool_kernel, TH=TH, W=W, K=K, Cout=Cout)
    return pl.pallas_call(
        kernel,
        out_shape=jax.ShapeDtypeStruct((N, H // 2, W // 2, Cout), x.dtype),
        grid_spec=pltpu.PrefetchScalarGridSpec(
            num_scalar_prefetch=0,
            grid=(N, nb),
            in_specs=[
                pl.BlockSpec((1, TH, W, K), lambda n, b: (n, b, 0, 0)),
                pl.BlockSpec((K, Cout), lambda n, b: (0, 0)),
                pl.BlockSpec((1, Cout), lambda n, b: (0, 0)),
                pl.BlockSpec((1, Cout), lambda n, b: (0, 0)),
            ],
            out_specs=pl.BlockSpec((1, TH // 2, W // 2, Cout),
                                   lambda n, b: (n, b, 0, 0)),
        ),
        compiler_params=pltpu.CompilerParams(
            dimension_semantics=("parallel", "parallel"),
            vmem_limit_bytes=48 * 1024 * 1024),
    )(patches, w, scale, shift)


# -----------------------------------------------------------------------------
# Kernel C: MLP head with the fc1 contraction tiled over the grid:
#   acc += x[:, kTK:(k+1)TK] @ w1[kTK:(k+1)TK, :]   (f32 accumulator)
#   at the last k: +b1, ReLU, @ w2 + b2, store.
# Dropout layers are identity in eval mode; the pre-fc1 ReLU is dropped because
# the flattened input is post ReLU+maxpool (>= 0).
# -----------------------------------------------------------------------------
def _mlp_head_kernel(x_ref, w1_ref, b1_ref, w2_ref, b2_ref, o_ref, acc_ref):
    k = pl.program_id(0)

    @pl.when(k == 0)
    def _():
        acc_ref[...] = jnp.zeros_like(acc_ref)

    acc_ref[...] += jnp.dot(x_ref[...], w1_ref[...],
                            preferred_element_type=jnp.float32)

    @pl.when(k == pl.num_programs(0) - 1)
    def _():
        h = jnp.maximum(acc_ref[...] + b1_ref[...], 0.0)     # fc1 bias + ReLU
        o_ref[...] = (jnp.dot(h, w2_ref[...],
                              preferred_element_type=jnp.float32)
                      + b2_ref[...]).astype(o_ref.dtype)


def mlp_head(x, w1, b1, w2, b2, tk=8192):
    B, F = x.shape
    H1 = w1.shape[1]
    H2 = w2.shape[1]
    TK = min(tk, F)
    assert F % TK == 0 and TK % 128 == 0
    nk = F // TK
    return pl.pallas_call(
        _mlp_head_kernel,
        out_shape=jax.ShapeDtypeStruct((B, H2), jnp.float32),
        grid_spec=pltpu.PrefetchScalarGridSpec(
            num_scalar_prefetch=0,
            grid=(nk,),
            in_specs=[
                pl.BlockSpec((B, TK), lambda k: (0, k)),
                pl.BlockSpec((TK, H1), lambda k: (k, 0)),
                pl.BlockSpec((1, H1), lambda k: (0, 0)),
                pl.BlockSpec((H1, H2), lambda k: (0, 0)),
                pl.BlockSpec((1, H2), lambda k: (0, 0)),
            ],
            out_specs=pl.BlockSpec((B, H2), lambda k: (0, 0)),
            scratch_shapes=[pltpu.VMEM((B, H1), jnp.float32)],
        ),
        compiler_params=pltpu.CompilerParams(
            dimension_semantics=("arbitrary",),
            vmem_limit_bytes=32 * 1024 * 1024),
    )(x, w1, b1, w2, b2)


# -----------------------------------------------------------------------------
# Parameter construction (deterministic, synthetic)
# -----------------------------------------------------------------------------
def _make_conv_params(key, cin, cout):
    """conv weight as (9*cin, cout) bf16 (tap-major, channel-minor) plus folded
    BatchNorm(eval) scale/shift with the conv bias absorbed into shift."""
    kw, kb, kg, kbt, km, kv = jax.random.split(key, 6)
    w = jax.random.normal(kw, (3, 3, cin, cout), jnp.float32) * 0.05
    b = jax.random.normal(kb, (cout,), jnp.float32) * 0.05
    gamma = 1.0 + 0.1 * jax.random.normal(kg, (cout,), jnp.float32)
    beta = 0.1 * jax.random.normal(kbt, (cout,), jnp.float32)
    mean = 0.1 * jax.random.normal(km, (cout,), jnp.float32)
    var = jnp.abs(jax.random.normal(kv, (cout,), jnp.float32)) + 0.5
    eps = 1e-5
    scale = gamma / jnp.sqrt(var + eps)
    shift = beta - mean * scale + b * scale      # conv bias through BN affine
    w_flat = w.reshape(9 * cin, cout).astype(jnp.bfloat16)
    return w_flat, scale.reshape(1, cout), shift.reshape(1, cout)


def make_params(img_size):
    key = jax.random.PRNGKey(0)
    k1, k2, k3, k4, k5 = jax.random.split(key, 5)
    p = {}
    p["l1"] = _make_conv_params(k1, 3, 64)
    p["l2"] = _make_conv_params(k2, 64, 128)
    p["l3"] = _make_conv_params(k3, 128, 256)

    Hf = Wf = img_size // 8
    C3 = 256
    feat = C3 * Hf * Wf
    # fc1 weight is generated with rows in torch's NCHW-flatten order, then the
    # rows are permuted (offline / one-time) into NHWC-flatten order so the
    # forward pass can flatten the NHWC feature map directly (no transpose).
    w1_nchw = jax.random.normal(k4, (feat, 128), jnp.float32) * 0.02
    hh = jnp.arange(Hf).reshape(Hf, 1, 1)
    ww = jnp.arange(Wf).reshape(1, Wf, 1)
    cc = jnp.arange(C3).reshape(1, 1, C3)
    perm = ((cc * Hf + hh) * Wf + ww).reshape(-1)   # NHWC position -> NCHW row
    p["w1"] = w1_nchw[perm].astype(jnp.bfloat16)
    p["b1"] = jnp.zeros((1, 128), jnp.float32)
    p["w2"] = jax.random.normal(k5, (128, 2), jnp.float32) * 0.02
    p["b2"] = jnp.zeros((1, 2), jnp.float32)
    return p


# -----------------------------------------------------------------------------
# Full forward pass (glue in plain JAX, hot paths in Pallas)
# -----------------------------------------------------------------------------
@functools.partial(jax.jit, static_argnames=("img_size",))
def plate_model_forward(x_nchw, params, img_size):
    x = jnp.transpose(x_nchw, (0, 2, 3, 1)).astype(jnp.bfloat16)  # NCHW -> NHWC

    x = conv1_bn_relu_pool(x, *params["l1"])    # (N, H/2, W/2, 64)
    x = conv3_bn_relu_pool(x, *params["l2"])    # (N, H/4, W/4, 128)
    x = conv3_bn_relu_pool(x, *params["l3"])    # (N, H/8, W/8, 256)

    # NHWC flatten; fc1 rows were pre-permuted to this order (torch parity).
    x = x.reshape(x.shape[0], 256 * (img_size // 8) * (img_size // 8))

    # TODO(synk): train-mode Dropout (stochastic masking) not implemented;
    # eval-mode dropout is the identity, which is what is computed here.
    return mlp_head(x, params["w1"], params["b1"], params["w2"], params["b2"])


if __name__ == "__main__":
    IMG = 16   # small spatial size for the demo (module default is 256)
    B = 2
    key = jax.random.PRNGKey(0)
    x = jax.random.normal(key, (B, 3, IMG, IMG), jnp.float32)   # NCHW like torch

    params = make_params(IMG)
    out = plate_model_forward(x, params, IMG)
    out = jax.block_until_ready(out)
    assert out.shape == (B, 2)
    print("KERNEL_OK")
</pallas_src>

<mosaic_0001>
module attributes {stable_mosaic.version = 11 : i64} {
  func.func @_mm_bn_relu_pool_kernel(%arg0: i32, %arg1: i32, %arg2: memref<1x16x16x27xbf16, #tpu.memory_space<vmem>>, %arg3: memref<27x64xbf16, #tpu.memory_space<vmem>>, %arg4: memref<1x64xf32, #tpu.memory_space<vmem>>, %arg5: memref<1x64xf32, #tpu.memory_space<vmem>>, %arg6: memref<1x8x8x64xbf16, #tpu.memory_space<vmem>>) attributes {dimension_semantics = [#tpu.dimension_semantics<parallel>, #tpu.dimension_semantics<parallel>], iteration_bounds = array<i64: 2, 1>, scalar_prefetch = 0 : i64, scratch_operands = 0 : i64, tpu.core_type = #tpu.core_type<tc>, window_params = [{transform_indices = @transform_0, window_bounds = array<i64: 1, 16, 16, 27>}, {pipeline_mode = #tpu.pipeline_mode<synchronous>, transform_indices = @transform_1, window_bounds = array<i64: 27, 64>}, {pipeline_mode = #tpu.pipeline_mode<synchronous>, transform_indices = @transform_2, window_bounds = array<i64: 1, 64>}, {pipeline_mode = #tpu.pipeline_mode<synchronous>, transform_indices = @transform_3, window_bounds = array<i64: 1, 64>}, {transform_indices = @transform_4, window_bounds = array<i64: 1, 8, 8, 64>}]} {
    %c0 = arith.constant 0 : index
    %c0_0 = arith.constant 0 : index
    %c0_1 = arith.constant 0 : index
    %c0_2 = arith.constant 0 : index
    %0 = vector.load %arg2[%c0, %c0_0, %c0_1, %c0_2] : memref<1x16x16x27xbf16, #tpu.memory_space<vmem>>, vector<1x16x16x27xbf16>
    %1 = vector.shape_cast %0 : vector<1x16x16x27xbf16> to vector<16x16x27xbf16>
    %2 = vector.shape_cast %1 : vector<16x16x27xbf16> to vector<256x27xbf16>
    %c0_3 = arith.constant 0 : index
    %c0_4 = arith.constant 0 : index
    %3 = vector.load %arg3[%c0_3, %c0_4] : memref<27x64xbf16, #tpu.memory_space<vmem>>, vector<27x64xbf16>
    %cst = arith.constant dense<0.000000e+00> : vector<256x64xf32>
    %4 = tpu.matmul %2, %3, %cst {dimension_numbers = #tpu.dot_dimension_numbers<[1], [0], [0], [1], [0, 0, 1, 1], [], []>} : vector<256x27xbf16>, vector<27x64xbf16>, vector<256x64xf32> -> vector<256x64xf32>
    %c0_5 = arith.constant 0 : index
    %c0_6 = arith.constant 0 : index
    %5 = vector.load %arg4[%c0_5, %c0_6] : memref<1x64xf32, #tpu.memory_space<vmem>>, vector<1x64xf32>
    %6 = vector.shape_cast %5 : vector<1x64xf32> to vector<64xf32>
    %7 = vector.shape_cast %6 : vector<64xf32> to vector<1x64xf32>
    %8 = vector.broadcast %7 : vector<1x64xf32> to vector<256x64xf32>
    %9 = arith.mulf %4, %8 : vector<256x64xf32>
    %c0_7 = arith.constant 0 : index
    %c0_8 = arith.constant 0 : index
    %10 = vector.load %arg5[%c0_7, %c0_8] : memref<1x64xf32, #tpu.memory_space<vmem>>, vector<1x64xf32>
    %11 = vector.shape_cast %10 : vector<1x64xf32> to vector<64xf32>
    %12 = vector.shape_cast %11 : vector<64xf32> to vector<1x64xf32>
    %13 = vector.broadcast %12 : vector<1x64xf32> to vector<256x64xf32>
    %14 = arith.addf %9, %13 : vector<256x64xf32>
    %cst_9 = arith.constant 0.000000e+00 : f32
    %15 = vector.broadcast %cst_9 : f32 to vector<256x64xf32>
    %16 = arith.maximumf %14, %15 : vector<256x64xf32>
    %17 = vector.shape_cast %16 : vector<256x64xf32> to vector<8x2x8x2x64xf32>
    %cst_10 = arith.constant dense<0xFF800000> : vector<8x8x64xf32>
    %18 = vector.multi_reduction <maximumf>, %17, %cst_10 [1, 3] : vector<8x2x8x2x64xf32> to vector<8x8x64xf32>
    %19 = vector.shape_cast %18 : vector<8x8x64xf32> to vector<1x8x8x64xf32>
    %20 = arith.truncf %19 : vector<1x8x8x64xf32> to vector<1x8x8x64xbf16>
    %c0_11 = arith.constant 0 : index
    %c0_12 = arith.constant 0 : index
    %c0_13 = arith.constant 0 : index
    %c0_14 = arith.constant 0 : index
    %21 = vector.load %arg6[%c0_11, %c0_12, %c0_13, %c0_14] : memref<1x8x8x64xbf16, #tpu.memory_space<vmem>>, vector<1x8x8x64xbf16>
    tpu.vector_store %arg6[%c0_11, %c0_12, %c0_13, %c0_14], %20 {strides = array<i32>} : memref<1x8x8x64xbf16, #tpu.memory_space<vmem>>, vector<1x8x8x64xbf16>,
    return
  }
  func.func @transform_0(%arg0: i32, %arg1: i32) -> (i32, i32, i32, i32) {
    %c0_i32 = arith.constant 0 : i32
    %c0_i32_0 = arith.constant 0 : i32
    %c0_i32_1 = arith.constant 0 : i32
    return %arg0, %arg1, %c0_i32, %c0_i32_0 : i32, i32, i32, i32
  }
  func.func @transform_1(%arg0: i32, %arg1: i32) -> (i32, i32) {
    %c0_i32 = arith.constant 0 : i32
    %c0_i32_0 = arith.constant 0 : i32
    %c0_i32_1 = arith.constant 0 : i32
    return %c0_i32, %c0_i32_0 : i32, i32
  }
  func.func @transform_2(%arg0: i32, %arg1: i32) -> (i32, i32) {
    %c0_i32 = arith.constant 0 : i32
    %c0_i32_0 = arith.constant 0 : i32
    %c0_i32_1 = arith.constant 0 : i32
    return %c0_i32, %c0_i32_0 : i32, i32
  }
  func.func @transform_3(%arg0: i32, %arg1: i32) -> (i32, i32) {
    %c0_i32 = arith.constant 0 : i32
    %c0_i32_0 = arith.constant 0 : i32
    %c0_i32_1 = arith.constant 0 : i32
    return %c0_i32, %c0_i32_0 : i32, i32
  }
  func.func @transform_4(%arg0: i32, %arg1: i32) -> (i32, i32, i32, i32) {
    %c0_i32 = arith.constant 0 : i32
    %c0_i32_0 = arith.constant 0 : i32
    %c0_i32_1 = arith.constant 0 : i32
    return %arg0, %arg1, %c0_i32, %c0_i32_0 : i32, i32, i32, i32
  }
}

module attributes {stable_mosaic.version = 11 : i64} {
  func.func @_conv3_bn_relu_pool_kernel(%arg0: i32, %arg1: i32, %arg2: memref<1x8x10x64xbf16, #tpu.memory_space<vmem>>, %arg3: memref<1x2x10x64xbf16, #tpu.memory_space<vmem>>, %arg4: memref<576x128xbf16, #tpu.memory_space<vmem>>, %arg5: memref<1x128xf32, #tpu.memory_space<vmem>>, %arg6: memref<1x128xf32, #tpu.memory_space<vmem>>, %arg7: memref<1x4x4x128xbf16, #tpu.memory_space<vmem>>) attributes {dimension_semantics = [#tpu.dimension_semantics<parallel>, #tpu.dimension_semantics<parallel>], iteration_bounds = array<i64: 2, 1>, scalar_prefetch = 0 : i64, scratch_operands = 0 : i64, tpu.core_type = #tpu.core_type<tc>, window_params = [{transform_indices = @transform_0, window_bounds = array<i64: 1, 8, 10, 64>}, {transform_indices = @transform_1, window_bounds = array<i64: 1, 2, 10, 64>}, {pipeline_mode = #tpu.pipeline_mode<synchronous>, transform_indices = @transform_2, window_bounds = array<i64: 576, 128>}, {pipeline_mode = #tpu.pipeline_mode<synchronous>, transform_indices = @transform_3, window_bounds = array<i64: 1, 128>}, {pipeline_mode = #tpu.pipeline_mode<synchronous>, transform_indices = @transform_4, window_bounds = array<i64: 1, 128>}, {transform_indices = @transform_5, window_bounds = array<i64: 1, 4, 4, 128>}]} {
    %c0 = arith.constant 0 : index
    %c0_0 = arith.constant 0 : index
    %c0_1 = arith.constant 0 : index
    %c0_2 = arith.constant 0 : index
    %0 = vector.load %arg2[%c0, %c0_0, %c0_1, %c0_2] : memref<1x8x10x64xbf16, #tpu.memory_space<vmem>>, vector<1x8x10x64xbf16>
    %1 = vector.shape_cast %0 : vector<1x8x10x64xbf16> to vector<8x10x64xbf16>
    %c0_3 = arith.constant 0 : index
    %c0_4 = arith.constant 0 : index
    %c0_5 = arith.constant 0 : index
    %c0_6 = arith.constant 0 : index
    %2 = vector.load %arg3[%c0_3, %c0_4, %c0_5, %c0_6] : memref<1x2x10x64xbf16, #tpu.memory_space<vmem>>, vector<1x2x10x64xbf16>
    %3 = vector.shape_cast %2 : vector<1x2x10x64xbf16> to vector<2x10x64xbf16>
    %4 = tpu.concatenate %1, %3 in 0 : vector<8x10x64xbf16>, vector<2x10x64xbf16> -> vector<10x10x64xbf16>
    %cst = arith.constant 0.000000e+00 : f32
    %5 = vector.broadcast %cst : f32 to vector<64x128xf32>
    %6 = vector.extract_strided_slice %4 {offsets = [0, 0, 0], sizes = [8, 8, 64], strides = [1, 1, 1]} : vector<10x10x64xbf16> to vector<8x8x64xbf16>
    %7 = vector.shape_cast %6 : vector<8x8x64xbf16> to vector<64x64xbf16>
    %c0_7 = arith.constant 0 : index
    %c0_8 = arith.constant 0 : index
    %8 = vector.load %arg4[%c0_7, %c0_8] : memref<576x128xbf16, #tpu.memory_space<vmem>>, vector<64x128xbf16>
    %cst_9 = arith.constant dense<0.000000e+00> : vector<64x128xf32>
    %9 = tpu.matmul %7, %8, %cst_9 {dimension_numbers = #tpu.dot_dimension_numbers<[1], [0], [0], [1], [0, 0, 1, 1], [], []>} : vector<64x64xbf16>, vector<64x128xbf16>, vector<64x128xf32> -> vector<64x128xf32>
    %10 = arith.addf %5, %9 : vector<64x128xf32>
    %11 = vector.extract_strided_slice %4 {offsets = [0, 1, 0], sizes = [8, 8, 64], strides = [1, 1, 1]} : vector<10x10x64xbf16> to vector<8x8x64xbf16>
    %12 = vector.shape_cast %11 : vector<8x8x64xbf16> to vector<64x64xbf16>
    %c64 = arith.constant 64 : index
    %c0_10 = arith.constant 0 : index
    %13 = vector.load %arg4[%c64, %c0_10] : memref<576x128xbf16, #tpu.memory_space<vmem>>, vector<64x128xbf16>
    %cst_11 = arith.constant dense<0.000000e+00> : vector<64x128xf32>
    %14 = tpu.matmul %12, %13, %cst_11 {dimension_numbers = #tpu.dot_dimension_numbers<[1], [0], [0], [1], [0, 0, 1, 1], [], []>} : vector<64x64xbf16>, vector<64x128xbf16>, vector<64x128xf32> -> vector<64x128xf32>
    %15 = arith.addf %10, %14 : vector<64x128xf32>
    %16 = vector.extract_strided_slice %4 {offsets = [0, 2, 0], sizes = [8, 8, 64], strides = [1, 1, 1]} : vector<10x10x64xbf16> to vector<8x8x64xbf16>
    %17 = vector.shape_cast %16 : vector<8x8x64xbf16> to vector<64x64xbf16>
    %c128 = arith.constant 128 : index
    %c0_12 = arith.constant 0 : index
    %18 = vector.load %arg4[%c128, %c0_12] : memref<576x128xbf16, #tpu.memory_space<vmem>>, vector<64x128xbf16>
    %cst_13 = arith.constant dense<0.000000e+00> : vector<64x128xf32>
    %19 = tpu.matmul %17, %18, %cst_13 {dimension_numbers = #tpu.dot_dimension_numbers<[1], [0], [0], [1], [0, 0, 1, 1], [], []>} : vector<64x64xbf16>, vector<64x128xbf16>, vector<64x128xf32> -> vector<64x128xf32>
    %20 = arith.addf %15, %19 : vector<64x128xf32>
    %21 = vector.extract_strided_slice %4 {offsets = [1, 0, 0], sizes = [8, 8, 64], strides = [1, 1, 1]} : vector<10x10x64xbf16> to vector<8x8x64xbf16>
    %22 = vector.shape_cast %21 : vector<8x8x64xbf16> to vector<64x64xbf16>
    %c192 = arith.constant 192 : index
    %c0_14 = arith.constant 0 : index
    %23 = vector.load %arg4[%c192, %c0_14] : memref<576x128xbf16, #tpu.memory_space<vmem>>, vector<64x128xbf16>
    %cst_15 = arith.constant dense<0.000000e+00> : vector<64x128xf32>
    %24 = tpu.matmul %22, %23, %cst_15 {dimension_numbers = #tpu.dot_dimension_numbers<[1], [0], [0], [1], [0, 0, 1, 1], [], []>} : vector<64x64xbf16>, vector<64x128xbf16>, vector<64x128xf32> -> vector<64x128xf32>
    %25 = arith.addf %20, %24 : vector<64x128xf32>
    %26 = vector.extract_strided_slice %4 {offsets = [1, 1, 0], sizes = [8, 8, 64], strides = [1, 1, 1]} : vector<10x10x64xbf16> to vector<8x8x64xbf16>
    %27 = vector.shape_cast %26 : vector<8x8x64xbf16> to vector<64x64xbf16>
    %c256 = arith.constant 256 : index
    %c0_16 = arith.constant 0 : index
    %28 = vector.load %arg4[%c256, %c0_16] : memref<576x128xbf16, #tpu.memory_space<vmem>>, vector<64x128xbf16>
    %cst_17 = arith.constant dense<0.000000e+00> : vector<64x128xf32>
    %29 = tpu.matmul %27, %28, %cst_17 {dimension_numbers = #tpu.dot_dimension_numbers<[1], [0], [0], [1], [0, 0, 1, 1], [], []>} : vector<64x64xbf16>, vector<64x128xbf16>, vector<64x128xf32> -> vector<64x128xf32>
    %30 = arith.addf %25, %29 : vector<64x128xf32>
    %31 = vector.extract_strided_slice %4 {offsets = [1, 2, 0], sizes = [8, 8, 64], strides = [1, 1, 1]} : vector<10x10x64xbf16> to vector<8x8x64xbf16>
    %32 = vector.shape_cast %31 : vector<8x8x64xbf16> to vector<64x64xbf16>
    %c320 = arith.constant 320 : index
    %c0_18 = arith.constant 0 : index
    %33 = vector.load %arg4[%c320, %c0_18] : memref<576x128xbf16, #tpu.memory_space<vmem>>, vector<64x128xbf16>
    %cst_19 = arith.constant dense<0.000000e+00> : vector<64x128xf32>
    %34 = tpu.matmul %32, %33, %cst_19 {dimension_numbers = #tpu.dot_dimension_numbers<[1], [0], [0], [1], [0, 0, 1, 1], [], []>} : vector<64x64xbf16>, vector<64x128xbf16>, vector<64x128xf32> -> vector<64x128xf32>
    %35 = arith.addf %30, %34 : vector<64x128xf32>
    %36 = vector.extract_strided_slice %4 {offsets = [2, 0, 0], sizes = [8, 8, 64], strides = [1, 1, 1]} : vector<10x10x64xbf16> to vector<8x8x64xbf16>
    %37 = vector.shape_cast %36 : vector<8x8x64xbf16> to vector<64x64xbf16>
    %c384 = arith.constant 384 : index
    %c0_20 = arith.constant 0 : index
    %38 = vector.load %arg4[%c384, %c0_20] : memref<576x128xbf16, #tpu.memory_space<vmem>>, vector<64x128xbf16>
    %cst_21 = arith.constant dense<0.000000e+00> : vector<64x128xf32>
    %39 = tpu.matmul %37, %38, %cst_21 {dimension_numbers = #tpu.dot_dimension_numbers<[1], [0], [0], [1], [0, 0, 1, 1], [], []>} : vector<64x64xbf16>, vector<64x128xbf16>, vector<64x128xf32> -> vector<64x128xf32>
    %40 = arith.addf %35, %39 : vector<64x128xf32>
    %41 = vector.extract_strided_slice %4 {offsets = [2, 1, 0], sizes = [8, 8, 64], strides = [1, 1, 1]} : vector<10x10x64xbf16> to vector<8x8x64xbf16>
    %42 = vector.shape_cast %41 : vector<8x8x64xbf16> to vector<64x64xbf16>
    %c448 = arith.constant 448 : index
    %c0_22 = arith.constant 0 : index
    %43 = vector.load %arg4[%c448, %c0_22] : memref<576x128xbf16, #tpu.memory_space<vmem>>, vector<64x128xbf16>
    %cst_23 = arith.constant dense<0.000000e+00> : vector<64x128xf32>
    %44 = tpu.matmul %42, %43, %cst_23 {dimension_numbers = #tpu.dot_dimension_numbers<[1], [0], [0], [1], [0, 0, 1, 1], [], []>} : vector<64x64xbf16>, vector<64x128xbf16>, vector<64x128xf32> -> vector<64x128xf32>
    %45 = arith.addf %40, %44 : vector<64x128xf32>
    %46 = vector.extract_strided_slice %4 {offsets = [2, 2, 0], sizes = [8, 8, 64], strides = [1, 1, 1]} : vector<10x10x64xbf16> to vector<8x8x64xbf16>
    %47 = vector.shape_cast %46 : vector<8x8x64xbf16> to vector<64x64xbf16>
    %c512 = arith.constant 512 : index
    %c0_24 = arith.constant 0 : index
    %48 = vector.load %arg4[%c512, %c0_24] : memref<576x128xbf16, #tpu.memory_space<vmem>>, vector<64x128xbf16>
    %cst_25 = arith.constant dense<0.000000e+00> : vector<64x128xf32>
    %49 = tpu.matmul %47, %48, %cst_25 {dimension_numbers = #tpu.dot_dimension_numbers<[1], [0], [0], [1], [0, 0, 1, 1], [], []>} : vector<64x64xbf16>, vector<64x128xbf16>, vector<64x128xf32> -> vector<64x128xf32>
    %50 = arith.addf %45, %49 : vector<64x128xf32>
    %c0_26 = arith.constant 0 : index
    %c0_27 = arith.constant 0 : index
    %51 = vector.load %arg5[%c0_26, %c0_27] : memref<1x128xf32, #tpu.memory_space<vmem>>, vector<1x128xf32>
    %52 = vector.shape_cast %51 : vector<1x128xf32> to vector<128xf32>
    %53 = vector.shape_cast %52 : vector<128xf32> to vector<1x128xf32>
    %54 = vector.broadcast %53 : vector<1x128xf32> to vector<64x128xf32>
    %55 = arith.mulf %50, %54 : vector<64x128xf32>
    %c0_28 = arith.constant 0 : index
    %c0_29 = arith.constant 0 : index
    %56 = vector.load %arg6[%c0_28, %c0_29] : memref<1x128xf32, #tpu.memory_space<vmem>>, vector<1x128xf32>
    %57 = vector.shape_cast %56 : vector<1x128xf32> to vector<128xf32>
    %58 = vector.shape_cast %57 : vector<128xf32> to vector<1x128xf32>
    %59 = vector.broadcast %58 : vector<1x128xf32> to vector<64x128xf32>
    %60 = arith.addf %55, %59 : vector<64x128xf32>
    %cst_30 = arith.constant 0.000000e+00 : f32
    %61 = vector.broadcast %cst_30 : f32 to vector<64x128xf32>
    %62 = arith.maximumf %60, %61 : vector<64x128xf32>
    %63 = vector.shape_cast %62 : vector<64x128xf32> to vector<4x2x4x2x128xf32>
    %cst_31 = arith.constant dense<0xFF800000> : vector<4x4x128xf32>
    %64 = vector.multi_reduction <maximumf>, %63, %cst_31 [1, 3] : vector<4x2x4x2x128xf32> to vector<4x4x128xf32>
    %65 = vector.shape_cast %64 : vector<4x4x128xf32> to vector<1x4x4x128xf32>
    %66 = arith.truncf %65 : vector<1x4x4x128xf32> to vector<1x4x4x128xbf16>
    %c0_32 = arith.constant 0 : index
    %c0_33 = arith.constant 0 : index
    %c0_34 = arith.constant 0 : index
    %c0_35 = arith.constant 0 : index
    %67 = vector.load %arg7[%c0_32, %c0_33, %c0_34, %c0_35] : memref<1x4x4x128xbf16, #tpu.memory_space<vmem>>, vector<1x4x4x128xbf16>
    tpu.vector_store %arg7[%c0_32, %c0_33, %c0_34, %c0_35], %66 {strides = array<i32>} : memref<1x4x4x128xbf16, #tpu.memory_space<vmem>>, vector<1x4x4x128xbf16>,
    return
  }
  func.func @transform_0(%arg0: i32, %arg1: i32) -> (i32, i32, i32, i32) {
    %c0_i32 = arith.constant 0 : i32
    %c0_i32_0 = arith.constant 0 : i32
    %c0_i32_1 = arith.constant 0 : i32
    return %arg0, %arg1, %c0_i32, %c0_i32_0 : i32, i32, i32, i32
  }
  func.func @transform_1(%arg0: i32, %arg1: i32) -> (i32, i32, i32, i32) {
    %c1_i32 = arith.constant 1 : i32
    %0 = arith.addi %arg1, %c1_i32 : i32
    %c4_i32 = arith.constant 4 : i32
    %1 = arith.muli %0, %c4_i32 : i32
    %c0_i32 = arith.constant 0 : i32
    %c0_i32_0 = arith.constant 0 : i32
    %c0_i32_1 = arith.constant 0 : i32
    return %arg0, %1, %c0_i32, %c0_i32_0 : i32, i32, i32, i32
  }
  func.func @transform_2(%arg0: i32, %arg1: i32) -> (i32, i32) {
    %c0_i32 = arith.constant 0 : i32
    %c0_i32_0 = arith.constant 0 : i32
    %c0_i32_1 = arith.constant 0 : i32
    return %c0_i32, %c0_i32_0 : i32, i32
  }
  func.func @transform_3(%arg0: i32, %arg1: i32) -> (i32, i32) {
    %c0_i32 = arith.constant 0 : i32
    %c0_i32_0 = arith.constant 0 : i32
    %c0_i32_1 = arith.constant 0 : i32
    return %c0_i32, %c0_i32_0 : i32, i32
  }
  func.func @transform_4(%arg0: i32, %arg1: i32) -> (i32, i32) {
    %c0_i32 = arith.constant 0 : i32
    %c0_i32_0 = arith.constant 0 : i32
    %c0_i32_1 = arith.constant 0 : i32
    return %c0_i32, %c0_i32_0 : i32, i32
  }
  func.func @transform_5(%arg0: i32, %arg1: i32) -> (i32, i32, i32, i32) {
    %c0_i32 = arith.constant 0 : i32
    %c0_i32_0 = arith.constant 0 : i32
    %c0_i32_1 = arith.constant 0 : i32
    return %arg0, %arg1, %c0_i32, %c0_i32_0 : i32, i32, i32, i32
  }
}

module attributes {stable_mosaic.version = 11 : i64} {
  func.func @_conv3_bn_relu_pool_kernel(%arg0: i32, %arg1: i32, %arg2: memref<1x4x6x128xbf16, #tpu.memory_space<vmem>>, %arg3: memref<1x2x6x128xbf16, #tpu.memory_space<vmem>>, %arg4: memref<1152x256xbf16, #tpu.memory_space<vmem>>, %arg5: memref<1x256xf32, #tpu.memory_space<vmem>>, %arg6: memref<1x256xf32, #tpu.memory_space<vmem>>, %arg7: memref<1x2x2x256xbf16, #tpu.memory_space<vmem>>) attributes {dimension_semantics = [#tpu.dimension_semantics<parallel>, #tpu.dimension_semantics<parallel>], iteration_bounds = array<i64: 2, 1>, scalar_prefetch = 0 : i64, scratch_operands = 0 : i64, tpu.core_type = #tpu.core_type<tc>, window_params = [{transform_indices = @transform_0, window_bounds = array<i64: 1, 4, 6, 128>}, {transform_indices = @transform_1, window_bounds = array<i64: 1, 2, 6, 128>}, {pipeline_mode = #tpu.pipeline_mode<synchronous>, transform_indices = @transform_2, window_bounds = array<i64: 1152, 256>}, {pipeline_mode = #tpu.pipeline_mode<synchronous>, transform_indices = @transform_3, window_bounds = array<i64: 1, 256>}, {pipeline_mode = #tpu.pipeline_mode<synchronous>, transform_indices = @transform_4, window_bounds = array<i64: 1, 256>}, {transform_indices = @transform_5, window_bounds = array<i64: 1, 2, 2, 256>}]} {
    %c0 = arith.constant 0 : index
    %c0_0 = arith.constant 0 : index
    %c0_1 = arith.constant 0 : index
    %c0_2 = arith.constant 0 : index
    %0 = vector.load %arg2[%c0, %c0_0, %c0_1, %c0_2] : memref<1x4x6x128xbf16, #tpu.memory_space<vmem>>, vector<1x4x6x128xbf16>
    %1 = vector.shape_cast %0 : vector<1x4x6x128xbf16> to vector<4x6x128xbf16>
    %c0_3 = arith.constant 0 : index
    %c0_4 = arith.constant 0 : index
    %c0_5 = arith.constant 0 : index
    %c0_6 = arith.constant 0 : index
    %2 = vector.load %arg3[%c0_3, %c0_4, %c0_5, %c0_6] : memref<1x2x6x128xbf16, #tpu.memory_space<vmem>>, vector<1x2x6x128xbf16>
    %3 = vector.shape_cast %2 : vector<1x2x6x128xbf16> to vector<2x6x128xbf16>
    %4 = tpu.concatenate %1, %3 in 0 : vector<4x6x128xbf16>, vector<2x6x128xbf16> -> vector<6x6x128xbf16>
    %cst = arith.constant 0.000000e+00 : f32
    %5 = vector.broadcast %cst : f32 to vector<16x256xf32>
    %6 = vector.extract_strided_slice %4 {offsets = [0, 0, 0], sizes = [4, 4, 128], strides = [1, 1, 1]} : vector<6x6x128xbf16> to vector<4x4x128xbf16>
    %7 = vector.extract_strided_slice %4 {offsets = [0, 1, 0], sizes = [4, 4, 128], strides = [1, 1, 1]} : vector<6x6x128xbf16> to vector<4x4x128xbf16>
    %8 = tpu.concatenate %6, %7 in 2 : vector<4x4x128xbf16>, vector<4x4x128xbf16> -> vector<4x4x256xbf16>
    %9 = vector.shape_cast %8 : vector<4x4x256xbf16> to vector<16x256xbf16>
    %c0_7 = arith.constant 0 : index
    %c0_8 = arith.constant 0 : index
    %10 = vector.load %arg4[%c0_7, %c0_8] : memref<1152x256xbf16, #tpu.memory_space<vmem>>, vector<256x256xbf16>
    %cst_9 = arith.constant dense<0.000000e+00> : vector<16x256xf32>
    %11 = tpu.matmul %9, %10, %cst_9 {dimension_numbers = #tpu.dot_dimension_numbers<[1], [0], [0], [1], [0, 0, 1, 1], [], []>} : vector<16x256xbf16>, vector<256x256xbf16>, vector<16x256xf32> -> vector<16x256xf32>
    %12 = arith.addf %5, %11 : vector<16x256xf32>
    %13 = vector.extract_strided_slice %4 {offsets = [0, 2, 0], sizes = [4, 4, 128], strides = [1, 1, 1]} : vector<6x6x128xbf16> to vector<4x4x128xbf16>
    %14 = vector.extract_strided_slice %4 {offsets = [1, 0, 0], sizes = [4, 4, 128], strides = [1, 1, 1]} : vector<6x6x128xbf16> to vector<4x4x128xbf16>
    %15 = tpu.concatenate %13, %14 in 2 : vector<4x4x128xbf16>, vector<4x4x128xbf16> -> vector<4x4x256xbf16>
    %16 = vector.shape_cast %15 : vector<4x4x256xbf16> to vector<16x256xbf16>
    %c256 = arith.constant 256 : index
    %c0_10 = arith.constant 0 : index
    %17 = vector.load %arg4[%c256, %c0_10] : memref<1152x256xbf16, #tpu.memory_space<vmem>>, vector<256x256xbf16>
    %cst_11 = arith.constant dense<0.000000e+00> : vector<16x256xf32>
    %18 = tpu.matmul %16, %17, %cst_11 {dimension_numbers = #tpu.dot_dimension_numbers<[1], [0], [0], [1], [0, 0, 1, 1], [], []>} : vector<16x256xbf16>, vector<256x256xbf16>, vector<16x256xf32> -> vector<16x256xf32>
    %19 = arith.addf %12, %18 : vector<16x256xf32>
    %20 = vector.extract_strided_slice %4 {offsets = [1, 1, 0], sizes = [4, 4, 128], strides = [1, 1, 1]} : vector<6x6x128xbf16> to vector<4x4x128xbf16>
    %21 = vector.extract_strided_slice %4 {offsets = [1, 2, 0], sizes = [4, 4, 128], strides = [1, 1, 1]} : vector<6x6x128xbf16> to vector<4x4x128xbf16>
    %22 = tpu.concatenate %20, %21 in 2 : vector<4x4x128xbf16>, vector<4x4x128xbf16> -> vector<4x4x256xbf16>
    %23 = vector.shape_cast %22 : vector<4x4x256xbf16> to vector<16x256xbf16>
    %c512 = arith.constant 512 : index
    %c0_12 = arith.constant 0 : index
    %24 = vector.load %arg4[%c512, %c0_12] : memref<1152x256xbf16, #tpu.memory_space<vmem>>, vector<256x256xbf16>
    %cst_13 = arith.constant dense<0.000000e+00> : vector<16x256xf32>
    %25 = tpu.matmul %23, %24, %cst_13 {dimension_numbers = #tpu.dot_dimension_numbers<[1], [0], [0], [1], [0, 0, 1, 1], [], []>} : vector<16x256xbf16>, vector<256x256xbf16>, vector<16x256xf32> -> vector<16x256xf32>
    %26 = arith.addf %19, %25 : vector<16x256xf32>
    %27 = vector.extract_strided_slice %4 {offsets = [2, 0, 0], sizes = [4, 4, 128], strides = [1, 1, 1]} : vector<6x6x128xbf16> to vector<4x4x128xbf16>
    %28 = vector.extract_strided_slice %4 {offsets = [2, 1, 0], sizes = [4, 4, 128], strides = [1, 1, 1]} : vector<6x6x128xbf16> to vector<4x4x128xbf16>
    %29 = tpu.concatenate %27, %28 in 2 : vector<4x4x128xbf16>, vector<4x4x128xbf16> -> vector<4x4x256xbf16>
    %30 = vector.shape_cast %29 : vector<4x4x256xbf16> to vector<16x256xbf16>
    %c768 = arith.constant 768 : index
    %c0_14 = arith.constant 0 : index
    %31 = vector.load %arg4[%c768, %c0_14] : memref<1152x256xbf16, #tpu.memory_space<vmem>>, vector<256x256xbf16>
    %cst_15 = arith.constant dense<0.000000e+00> : vector<16x256xf32>
    %32 = tpu.matmul %30, %31, %cst_15 {dimension_numbers = #tpu.dot_dimension_numbers<[1], [0], [0], [1], [0, 0, 1, 1], [], []>} : vector<16x256xbf16>, vector<256x256xbf16>, vector<16x256xf32> -> vector<16x256xf32>
    %33 = arith.addf %26, %32 : vector<16x256xf32>
    %34 = vector.extract_strided_slice %4 {offsets = [2, 2, 0], sizes = [4, 4, 128], strides = [1, 1, 1]} : vector<6x6x128xbf16> to vector<4x4x128xbf16>
    %35 = vector.shape_cast %34 : vector<4x4x128xbf16> to vector<16x128xbf16>
    %c1024 = arith.constant 1024 : index
    %c0_16 = arith.constant 0 : index
    %36 = vector.load %arg4[%c1024, %c0_16] : memref<1152x256xbf16, #tpu.memory_space<vmem>>, vector<128x256xbf16>
    %cst_17 = arith.constant dense<0.000000e+00> : vector<16x256xf32>
    %37 = tpu.matmul %35, %36, %cst_17 {dimension_numbers = #tpu.dot_dimension_numbers<[1], [0], [0], [1], [0, 0, 1, 1], [], []>} : vector<16x128xbf16>, vector<128x256xbf16>, vector<16x256xf32> -> vector<16x256xf32>
    %38 = arith.addf %33, %37 : vector<16x256xf32>
    %c0_18 = arith.constant 0 : index
    %c0_19 = arith.constant 0 : index
    %39 = vector.load %arg5[%c0_18, %c0_19] : memref<1x256xf32, #tpu.memory_space<vmem>>, vector<1x256xf32>
    %40 = vector.shape_cast %39 : vector<1x256xf32> to vector<256xf32>
    %41 = vector.shape_cast %40 : vector<256xf32> to vector<1x256xf32>
    %42 = vector.broadcast %41 : vector<1x256xf32> to vector<16x256xf32>
    %43 = arith.mulf %38, %42 : vector<16x256xf32>
    %c0_20 = arith.constant 0 : index
    %c0_21 = arith.constant 0 : index
    %44 = vector.load %arg6[%c0_20, %c0_21] : memref<1x256xf32, #tpu.memory_space<vmem>>, vector<1x256xf32>
    %45 = vector.shape_cast %44 : vector<1x256xf32> to vector<256xf32>
    %46 = vector.shape_cast %45 : vector<256xf32> to vector<1x256xf32>
    %47 = vector.broadcast %46 : vector<1x256xf32> to vector<16x256xf32>
    %48 = arith.addf %43, %47 : vector<16x256xf32>
    %cst_22 = arith.constant 0.000000e+00 : f32
    %49 = vector.broadcast %cst_22 : f32 to vector<16x256xf32>
    %50 = arith.maximumf %48, %49 : vector<16x256xf32>
    %51 = vector.shape_cast %50 : vector<16x256xf32> to vector<2x2x2x2x256xf32>
    %cst_23 = arith.constant dense<0xFF800000> : vector<2x2x256xf32>
    %52 = vector.multi_reduction <maximumf>, %51, %cst_23 [1, 3] : vector<2x2x2x2x256xf32> to vector<2x2x256xf32>
    %53 = vector.shape_cast %52 : vector<2x2x256xf32> to vector<1x2x2x256xf32>
    %54 = arith.truncf %53 : vector<1x2x2x256xf32> to vector<1x2x2x256xbf16>
    %c0_24 = arith.constant 0 : index
    %c0_25 = arith.constant 0 : index
    %c0_26 = arith.constant 0 : index
    %c0_27 = arith.constant 0 : index
    %55 = vector.load %arg7[%c0_24, %c0_25, %c0_26, %c0_27] : memref<1x2x2x256xbf16, #tpu.memory_space<vmem>>, vector<1x2x2x256xbf16>
    tpu.vector_store %arg7[%c0_24, %c0_25, %c0_26, %c0_27], %54 {strides = array<i32>} : memref<1x2x2x256xbf16, #tpu.memory_space<vmem>>, vector<1x2x2x256xbf16>,
    return
  }
  func.func @transform_0(%arg0: i32, %arg1: i32) -> (i32, i32, i32, i32) {
    %c0_i32 = arith.constant 0 : i32
    %c0_i32_0 = arith.constant 0 : i32
    %c0_i32_1 = arith.constant 0 : i32
    return %arg0, %arg1, %c0_i32, %c0_i32_0 : i32, i32, i32, i32
  }
  func.func @transform_1(%arg0: i32, %arg1: i32) -> (i32, i32, i32, i32) {
    %c1_i32 = arith.constant 1 : i32
    %0 = arith.addi %arg1, %c1_i32 : i32
    %c2_i32 = arith.constant 2 : i32
    %1 = arith.muli %0, %c2_i32 : i32
    %c0_i32 = arith.constant 0 : i32
    %c0_i32_0 = arith.constant 0 : i32
    %c0_i32_1 = arith.constant 0 : i32
    return %arg0, %1, %c0_i32, %c0_i32_0 : i32, i32, i32, i32
  }
  func.func @transform_2(%arg0: i32, %arg1: i32) -> (i32, i32) {
    %c0_i32 = arith.constant 0 : i32
    %c0_i32_0 = arith.constant 0 : i32
    %c0_i32_1 = arith.constant 0 : i32
    return %c0_i32, %c0_i32_0 : i32, i32
  }
  func.func @transform_3(%arg0: i32, %arg1: i32) -> (i32, i32) {
    %c0_i32 = arith.constant 0 : i32
    %c0_i32_0 = arith.constant 0 : i32
    %c0_i32_1 = arith.constant 0 : i32
    return %c0_i32, %c0_i32_0 : i32, i32
  }
  func.func @transform_4(%arg0: i32, %arg1: i32) -> (i32, i32) {
    %c0_i32 = arith.constant 0 : i32
    %c0_i32_0 = arith.constant 0 : i32
    %c0_i32_1 = arith.constant 0 : i32
    return %c0_i32, %c0_i32_0 : i32, i32
  }
  func.func @transform_5(%arg0: i32, %arg1: i32) -> (i32, i32, i32, i32) {
    %c0_i32 = arith.constant 0 : i32
    %c0_i32_0 = arith.constant 0 : i32
    %c0_i32_1 = arith.constant 0 : i32
    return %arg0, %arg1, %c0_i32, %c0_i32_0 : i32, i32, i32, i32
  }
}

module attributes {stable_mosaic.version = 11 : i64} {
  func.func @_mlp_head_kernel(%arg0: i32, %arg1: memref<2x1024xbf16, #tpu.memory_space<vmem>>, %arg2: memref<1024x128xbf16, #tpu.memory_space<vmem>>, %arg3: memref<1x128xf32, #tpu.memory_space<vmem>>, %arg4: memref<128x2xf32, #tpu.memory_space<vmem>>, %arg5: memref<1x2xf32, #tpu.memory_space<vmem>>, %arg6: memref<2x2xf32, #tpu.memory_space<vmem>>, %arg7: memref<2x128xf32, #tpu.memory_space<vmem>>) attributes {dimension_semantics = [#tpu.dimension_semantics<arbitrary>], iteration_bounds = array<i64: 1>, scalar_prefetch = 0 : i64, scratch_operands = 1 : i64, tpu.core_type = #tpu.core_type<tc>, window_params = [{transform_indices = @transform_0, window_bounds = array<i64: 2, 1024>}, {transform_indices = @transform_1, window_bounds = array<i64: 1024, 128>}, {pipeline_mode = #tpu.pipeline_mode<synchronous>, transform_indices = @transform_2, window_bounds = array<i64: 1, 128>}, {pipeline_mode = #tpu.pipeline_mode<synchronous>, transform_indices = @transform_3, window_bounds = array<i64: 128, 2>}, {pipeline_mode = #tpu.pipeline_mode<synchronous>, transform_indices = @transform_4, window_bounds = array<i64: 1, 2>}, {pipeline_mode = #tpu.pipeline_mode<synchronous>, transform_indices = @transform_5, window_bounds = array<i64: 2, 2>}]} {
    %c0_i32 = arith.constant 0 : i32
    %0 = arith.cmpi eq, %arg0, %c0_i32 : i32
    %1 = arith.extui %0 : i1 to i32
    %c0_i32_0 = arith.constant 0 : i32
    %2 = arith.cmpi ne, %1, %c0_i32_0 : i32
    scf.if %2 {
      %cst_10 = arith.constant 0.000000e+00 : f32
      %12 = vector.broadcast %cst_10 : f32 to vector<2x128xf32>
      %c0_11 = arith.constant 0 : index
      %c0_12 = arith.constant 0 : index
      %13 = vector.load %arg7[%c0_11, %c0_12] : memref<2x128xf32, #tpu.memory_space<vmem>>, vector<2x128xf32>
      tpu.vector_store %arg7[%c0_11, %c0_12], %12 {strides = array<i32>} : memref<2x128xf32, #tpu.memory_space<vmem>>, vector<2x128xf32>,
    } else {
    }
    %c0 = arith.constant 0 : index
    %c0_1 = arith.constant 0 : index
    %3 = vector.load %arg7[%c0, %c0_1] : memref<2x128xf32, #tpu.memory_space<vmem>>, vector<2x128xf32>
    %c0_2 = arith.constant 0 : index
    %c0_3 = arith.constant 0 : index
    %4 = vector.load %arg1[%c0_2, %c0_3] : memref<2x1024xbf16, #tpu.memory_space<vmem>>, vector<2x1024xbf16>
    %c0_4 = arith.constant 0 : index
    %c0_5 = arith.constant 0 : index
    %5 = vector.load %arg2[%c0_4, %c0_5] : memref<1024x128xbf16, #tpu.memory_space<vmem>>, vector<1024x128xbf16>
    %cst = arith.constant dense<0.000000e+00> : vector<2x128xf32>
    %6 = tpu.matmul %4, %5, %cst {dimension_numbers = #tpu.dot_dimension_numbers<[1], [0], [0], [1], [0, 0, 1, 1], [], []>} : vector<2x1024xbf16>, vector<1024x128xbf16>, vector<2x128xf32> -> vector<2x128xf32>
    %7 = arith.addf %3, %6 : vector<2x128xf32>
    %c0_6 = arith.constant 0 : index
    %c0_7 = arith.constant 0 : index
    %8 = vector.load %arg7[%c0_6, %c0_7] : memref<2x128xf32, #tpu.memory_space<vmem>>, vector<2x128xf32>
    tpu.vector_store %arg7[%c0_6, %c0_7], %7 {strides = array<i32>} : memref<2x128xf32, #tpu.memory_space<vmem>>, vector<2x128xf32>,
    %c0_i32_8 = arith.constant 0 : i32
    %9 = arith.cmpi eq, %arg0, %c0_i32_8 : i32
    %10 = arith.extui %9 : i1 to i32
    %c0_i32_9 = arith.constant 0 : i32
    %11 = arith.cmpi ne, %10, %c0_i32_9 : i32
    scf.if %11 {
      %c0_10 = arith.constant 0 : index
      %c0_11 = arith.constant 0 : index
      %12 = vector.load %arg7[%c0_10, %c0_11] : memref<2x128xf32, #tpu.memory_space<vmem>>, vector<2x128xf32>
      %c0_12 = arith.constant 0 : index
      %c0_13 = arith.constant 0 : index
      %13 = vector.load %arg3[%c0_12, %c0_13] : memref<1x128xf32, #tpu.memory_space<vmem>>, vector<1x128xf32>
      %14 = vector.broadcast %13 : vector<1x128xf32> to vector<2x128xf32>
      %15 = arith.addf %12, %14 : vector<2x128xf32>
      %cst_14 = arith.constant 0.000000e+00 : f32
      %16 = vector.broadcast %cst_14 : f32 to vector<2x128xf32>
      %17 = arith.maximumf %15, %16 : vector<2x128xf32>
      %c0_15 = arith.constant 0 : index
      %c0_16 = arith.constant 0 : index
      %18 = vector.load %arg4[%c0_15, %c0_16] : memref<128x2xf32, #tpu.memory_space<vmem>>, vector<128x2xf32>
      %cst_17 = arith.constant dense<0.000000e+00> : vector<2x2xf32>
      %19 = tpu.matmul %17, %18, %cst_17 {dimension_numbers = #tpu.dot_dimension_numbers<[1], [0], [0], [1], [0, 0, 1, 1], [], []>} : vector<2x128xf32>, vector<128x2xf32>, vector<2x2xf32> -> vector<2x2xf32>
      %c0_18 = arith.constant 0 : index
      %c0_19 = arith.constant 0 : index
      %20 = vector.load %arg5[%c0_18, %c0_19] : memref<1x2xf32, #tpu.memory_space<vmem>>, vector<1x2xf32>
      %21 = vector.broadcast %20 : vector<1x2xf32> to vector<2x2xf32>
      %22 = arith.addf %19, %21 : vector<2x2xf32>
      %c0_20 = arith.constant 0 : index
      %c0_21 = arith.constant 0 : index
      %23 = vector.load %arg6[%c0_20, %c0_21] : memref<2x2xf32, #tpu.memory_space<vmem>>, vector<2x2xf32>
      tpu.vector_store %arg6[%c0_20, %c0_21], %22 {strides = array<i32>} : memref<2x2xf32, #tpu.memory_space<vmem>>, vector<2x2xf32>,
    } else {
    }
    return
  }
  func.func @transform_0(%arg0: i32) -> (i32, i32) {
    %c0_i32 = arith.constant 0 : i32
    %c0_i32_0 = arith.constant 0 : i32
    return %c0_i32, %arg0 : i32, i32
  }
  func.func @transform_1(%arg0: i32) -> (i32, i32) {
    %c0_i32 = arith.constant 0 : i32
    %c0_i32_0 = arith.constant 0 : i32
    return %arg0, %c0_i32 : i32, i32
  }
  func.func @transform_2(%arg0: i32) -> (i32, i32) {
    %c0_i32 = arith.constant 0 : i32
    %c0_i32_0 = arith.constant 0 : i32
    %c0_i32_1 = arith.constant 0 : i32
    return %c0_i32, %c0_i32_0 : i32, i32
  }
  func.func @transform_3(%arg0: i32) -> (i32, i32) {
    %c0_i32 = arith.constant 0 : i32
    %c0_i32_0 = arith.constant 0 : i32
    %c0_i32_1 = arith.constant 0 : i32
    return %c0_i32, %c0_i32_0 : i32, i32
  }
  func.func @transform_4(%arg0: i32) -> (i32, i32) {
    %c0_i32 = arith.constant 0 : i32
    %c0_i32_0 = arith.constant 0 : i32
    %c0_i32_1 = arith.constant 0 : i32
    return %c0_i32, %c0_i32_0 : i32, i32
  }
  func.func @transform_5(%arg0: i32) -> (i32, i32) {
    %c0_i32 = arith.constant 0 : i32
    %c0_i32_0 = arith.constant 0 : i32
    %c0_i32_1 = arith.constant 0 : i32
    return %c0_i32, %c0_i32_0 : i32, i32
  }
}

</mosaic_0001>

<bundles_post_ra>
// kernel: plate_model_forward.4
= control target key start
LH: loop header
LB: loop body
LE: loop exit
PB: predicated region body
PF: predicated region fallthrough
CT: control target
= control target key end

     0   :  { %s2806_s15 = smov 0   ;;  %s2808_s16 = smov 0   ;;  %s3338_s0 = inlined_call_operand.vmem [shape: bf16[2,16,16,27], index: 0, kind: input, shape index: {}]   ;;  %s3339_s1 = inlined_call_operand.vmem [shape: bf16[27,64], index: 1, kind: input, shape index: {}]   ;;  %s3340_s2 = inlined_call_operand.vmem [shape: f32[1,64], index: 2, kind: input, shape index: {}]   ;;  %s3341_s3 = inlined_call_operand.vmem [shape: f32[1,64], index: 3, kind: input, shape index: {}]   ;;  %s3342_s4 = inlined_call_operand.vmem [shape: bf16[2,8,8,64], index: 4, kind: output, shape index: {}]  }
   0x1   :  { %s2810_s17 = smov 0  }
   0x2 LB: > { %s26_s18 = sadd.s32 1, %s2773_s16  ;;  %p2478_p0 = scmp.ge.s32.totalorder %s2777_s17, 1  ;;  %s2777_s17 = sphi %s2810_s17, %s14_s17   ;;  %s2773_s16 = sphi %s2808_s16, %s3344_s16   ;;  %s2769_s15 = sphi %s2806_s15, %s3343_s15  }
   0x3   : > { %p28_p1 = scmp.ge.s32.totalorder %s26_s18, 2  ;;  %p184_p2 = scmp.lt.s32.totalorder %s2777_s17, 3 }
   0x5   : > { %s3346_s18 = smov (%p28_p1, %s26_s18), 0  ;;  %p185_p3 = pnand %p2478_p0, %p184_p2 }
   0x6   : > { %p220_p4 = scmp.lt.s32.totalorder (!%p185_p3), %s2769_s15, 1 }
   0x7   : > { %188 = sbr.rel (%p185_p3) target bundleno = 484 (0x1e4), region = 36 }
   0xc   : > { %v2735_v0 = vld [vmem:[%s3339_s1 + $0x8] sm:$0x3f]   ;;  %vm417_vm0 = vcmask 1044480   ;;  %vm418_vm1 = vcmask 1045504   ;;  %v2779_v1 = vmov 65535   ;;  %v2736_v5 = vld [vmem:[%s3339_s1] sm:$0xff]   ;;  %v731_v24 = vlaneseq }
   0xd   : > { %v419_v2 = vsel %vm417_vm0, 4294967295, %v2779_v1  ;;  %s3348_s15 = smov (!%p220_p4, %s2769_s15), 1  ;;  %vm368_vm2 = vcmask 220160   ;;  %v2780_v22 = vmov 1983009808   ;;  %vm1399_vm3 = vcmask 517120  }
   0xe   : > { %v420_v3 = vsel %vm418_vm1, %v419_v2, 0  ;;  %s2585_s23 = sshll.u32 %s3348_s15, 7  ;;  %v729_v23 = vunpack.c.l.s4 %v2780_v22  ;;  %v2873_v25 = vld [vmem:[%s3340_s2] ss:$0 sm:$0xff]  ;;  %v732_v27 = vshrl.u32 %v731_v24, 7  ;;  %vm2296_vm4 = vcmask 1041409  }
   0xf   : > { %v422_v4 = vand.u32 %v2735_v0, %v420_v3  ;;  %s2836_s26 = scalar_lea.vmem %s3338_s0, %s2585_s23  ;;  %v2878_v29 = vld [vmem:[%s3341_s3] ss:$0 sm:$0xff]  ;;  %vm2298_vm5 = vcmask 1042434   ;;  %vm2300_vm6 = vcmask 1043459   ;;  %vm2302_vm7 = vcmask 1044484   ;;  %s2586_s5 = sshll.u32 %s3348_s15, 5 }
  0x10   : > { %v2737_v6 = vld [vmem:[%s2836_s26] sm:$0xff]   ;;  %v2739_v8 = vld [vmem:[%s2836_s26 + $0x8] sm:$0xff]   ;;  %v2741_v10 = vld [vmem:[%s2836_s26 + $0x10] sm:$0xff]   ;;  %v730_v26 = vunpack.c.0.s8 %v729_v23  ;;  %vm2304_vm8 = vcmask 1045509   ;;  %vm2306_vm9 = vcmask 1046534   ;;  %vm2308_vm10 = vcmask 1047559   ;;  %s3001_s8 = scalar_lea.vmem %s3342_s4, %s2586_s5 }
  0x11   : > { %2669 = vmatprep.subr.bf16.mxu0 %v422_v4  ;;  %2705 = vmatprep.subr.bf16.mxu1 %v422_v4  ;;  %v2738_v7 = vld [vmem:[%s2836_s26 + $0x40] sm:$0xff]   ;;  %v2740_v9 = vld [vmem:[%s2836_s26 + $0x48] sm:$0xff]   ;;  %v2742_v11 = vld [vmem:[%s2836_s26 + $0x50] sm:$0xff]   ;;  %vm2375_vm11 = vcmask 519168  }
  0x12   : > { %2670 = vmatpush3.bf16.msra.mxu0 %v422_v4  ;;  %2707 = vmatpush3.bf16.msra.mxu1 %v422_v4  ;;  %v2743_v12 = vld [vmem:[%s2836_s26 + $0x18] sm:$0xff]   ;;  %v2745_v14 = vld [vmem:[%s2836_s26 + $0x20] sm:$0xff]   ;;  %v2747_v16 = vld [vmem:[%s2836_s26 + $0x28] sm:$0xff]   ;;  %v2882_v33 = vsub.s32 %v730_v26, %v732_v27 }
  0x13   : > { %2671 = vmatprep.subr.bf16.mxu0 %v2736_v5  ;;  %2706 = vmatprep.subr.bf16.mxu1 %v2736_v5  ;;  %v2744_v13 = vld [vmem:[%s2836_s26 + $0x58] sm:$0xff]   ;;  %v2746_v15 = vld [vmem:[%s2836_s26 + $0x60] sm:$0xff]   ;;  %v2748_v17 = vld [vmem:[%s2836_s26 + $0x68] sm:$0xff]  }
  0x14   : > { %2673 = vmatprep.mubr.msk.bf16.mxu0 %vm368_vm2, %v2737_v6  ;;  %2689 = vmatprep.mubr.msk.bf16.mxu1 %vm368_vm2, %v2738_v7  ;;  %v2749_v18 = vld [vmem:[%s2836_s26 + $0x30] sm:$0xff]   ;;  %v2751_v20 = vld [vmem:[%s2836_s26 + $0x38] sm:$0xff]  }
  0x15   : > { %v2750_v19 = vld [vmem:[%s2836_s26 + $0x70] sm:$0xff]   ;;  %v2752_v21 = vld [vmem:[%s2836_s26 + $0x78] sm:$0xff]  }
  0x16   : > { %2672 = vmatpush3.bf16.msra.mxu0 %v2736_v5  ;;  %2708 = vmatpush3.bf16.msra.mxu1 %v2736_v5 }
  0x19   : > { %2674 = vmatmul.mubr.msk.bf16.vlgmr.msra.gmra.mxu0 %vm368_vm2, %v2739_v8  ;;  %2690 = vmatmul.mubr.msk.bf16.vlgmr.msra.gmra.mxu1 %vm368_vm2, %v2740_v9 }
  0x1a   : > { %2677 = vmatprep.mubr.msk.bf16.mxu0 %vm368_vm2, %v2741_v10  ;;  %2693 = vmatprep.mubr.msk.bf16.mxu1 %vm368_vm2, %v2742_v11 }
  0x21   : > { %2678 = vmatmul.mubr.msk.bf16.gmra.mxu0 %vm368_vm2, %v2743_v12  ;;  %2694 = vmatmul.mubr.msk.bf16.gmra.mxu1 %vm368_vm2, %v2744_v13 }
  0x22   : > { %2681 = vmatprep.mubr.msk.bf16.mxu0 %vm368_vm2, %v2745_v14  ;;  %2697 = vmatprep.mubr.msk.bf16.mxu1 %vm368_vm2, %v2746_v15 }
  0x29   : > { %2682 = vmatmul.mubr.msk.bf16.gmra.mxu0 %vm368_vm2, %v2747_v16  ;;  %2698 = vmatmul.mubr.msk.bf16.gmra.mxu1 %vm368_vm2, %v2748_v17 }
  0x2a   : > { %2685 = vmatprep.mubr.msk.bf16.mxu0 %vm368_vm2, %v2749_v18  ;;  %2701 = vmatprep.mubr.msk.bf16.mxu1 %vm368_vm2, %v2750_v19 }
  0x31   : > { %2686 = vmatmul.mubr.msk.bf16.gmra.mxu0 %vm368_vm2, %v2751_v20  ;;  %2702 = vmatmul.mubr.msk.bf16.gmra.mxu1 %vm368_vm2, %v2752_v21 }
  0xd9   : > { %v2675_v28 = vpop.f32.mrf.mxu0  ;;  %v2691_v30 = vpop.f32.mrf.mxu1 }
  0xda   : > { %v594_v31 = vmul.f32 %v2675_v28, %v2873_v25  ;;  %v610_v32 = vmul.f32 %v2691_v30, %v2873_v25 }
  0xdb   : > { %v458_v34 = vpop.f32.mrf.mxu0  ;;  %v522_v35 = vpop.f32.mrf.mxu1 }
  0xdc   : > { %v633_v36 = vadd.f32 %v2878_v29, %v594_v31  ;;  %v649_v37 = vadd.f32 %v2878_v29, %v610_v32  ;;  %v592_v38 = vmul.f32 %v2873_v25, %v458_v34  ;;  %v608_v39 = vmul.f32 %v2873_v25, %v522_v35 }
  0xdd   : > { %v2676_v40 = vpop.f32.mrf.mxu0  ;;  %v2692_v41 = vpop.f32.mrf.mxu1 }
  0xde   : > { %v665_v42 = vmax.f32 %v633_v36, 0.0  ;;  %v681_v43 = vmax.f32 %v649_v37, 0.0  ;;  %v631_v44 = vadd.f32 %v2878_v29, %v592_v38  ;;  %v647_v45 = vadd.f32 %v2878_v29, %v608_v39 }
  0xdf   : > { %v595_v46 = vmul.f32 %v2676_v40, %v2873_v25  ;;  %v611_v47 = vmul.f32 %v2692_v41, %v2873_v25 }
  0xe0   : > { %v761_v48 = vcombine.high %v665_v42, %v665_v42  ;;  %v768_v49 = vrot.slane %v665_v42, %v2882_v33  ;;  %v1033_v50 = vcombine.high %v681_v43, %v681_v43  ;;  %v1040_v51 = vrot.slane %v681_v43, %v2882_v33 }
  0xe1   : > { %v663_v52 = vmax.f32 %v631_v44, 0.0  ;;  %v679_v53 = vmax.f32 %v647_v45, 0.0  ;;  %v634_v54 = vadd.f32 %v2878_v29, %v595_v46  ;;  %v650_v55 = vadd.f32 %v2878_v29, %v611_v47 }
  0xe2   : > { %v775_v56 = vrot.slane %v761_v48, %v2882_v33  ;;  %v776_v57 = vcombine.high %v768_v49, %v768_v49  ;;  %v1401_v58 = vsel %vm1399_vm3, %v768_v49, -inf  ;;  %v1047_v59 = vrot.slane %v1033_v50, %v2882_v33 }
  0xe3   : > { %v1048_v60 = vcombine.high %v1040_v51, %v1040_v51  ;;  %v1689_v61 = vsel %vm1399_vm3, %v1040_v51, -inf  ;;  %v727_v62 = vcombine.high %v663_v52, %v663_v52  ;;  %v734_v63 = vrot.slane %v663_v52, %v2882_v33 }
  0xe4   : > { %v777_v0 = vcombine.high %v775_v56, %v775_v56  ;;  %v1410_v1 = vsel %vm1399_vm3, %v776_v57, -inf  ;;  %v1419_v2 = vsel %vm1399_vm3, %v775_v56, -inf  ;;  %v1049_v3 = vcombine.high %v1047_v59, %v1047_v59 }
  0xe5   : > { %v1698_v4 = vsel %vm1399_vm3, %v1048_v60, -inf  ;;  %v1707_v5 = vsel %vm1399_vm3, %v1047_v59, -inf  ;;  %v741_v6 = vrot.slane %v727_v62, %v2882_v33  ;;  %v742_v7 = vcombine.high %v734_v63, %v734_v63 }
  0xe6   : > { %v1428_v8 = vsel %vm1399_vm3, %v777_v0, -inf  ;;  %v1716_v9 = vsel %vm1399_vm3, %v1049_v3, -inf  ;;  %v1400_v10 = vsel %vm1399_vm3, %v734_v63, -inf  ;;  %v999_v11 = vcombine.high %v679_v53, %v679_v53 }
  0xe7   : > { %v743_v12 = vcombine.high %v741_v6, %v741_v6  ;;  %v1402_v13 = vmax.f32 %v1400_v10, %v1401_v58  ;;  %v1409_v14 = vsel %vm1399_vm3, %v742_v7, -inf  ;;  %v1418_v15 = vsel %vm1399_vm3, %v741_v6, -inf }
  0xe8   : > { %v1411_v16 = vmax.f32 %v1409_v14, %v1410_v1  ;;  %v1420_v17 = vmax.f32 %v1418_v15, %v1419_v2  ;;  %v1006_v18 = vrot.slane %v679_v53, %v2882_v33  ;;  %v1013_v19 = vrot.slane %v999_v11, %v2882_v33  ;;  %v461_v15 = vpop.f32.mrf.mxu0 }
  0xe9   : > { %v1403_v20 = vrot.slane %v1402_v13, 4  ;;  %v1427_v21 = vsel %vm1399_vm3, %v743_v12, -inf  ;;  %v2914_v22 = vmax.f32 %v634_v54, 0.0  ;;  %v2916_v23 = vmax.f32 %v650_v55, 0.0 }
  0xea   : > { %v1412_v24 = vrot.slane %v1411_v16, 4  ;;  %v1421_v26 = vrot.slane %v1420_v17, 4  ;;  %v1429_v27 = vmax.f32 %v1427_v21, %v1428_v8  ;;  %v1014_v28 = vcombine.high %v1006_v18, %v1006_v18 }
  0xeb   : > { %v1404_v30 = vmax.f32 %v1402_v13, %v1403_v20  ;;  %v1015_v31 = vcombine.high %v1013_v19, %v1013_v19  ;;  %v1688_v32 = vsel %vm1399_vm3, %v1006_v18, -inf  ;;  %v1706_v34 = vsel %vm1399_vm3, %v1013_v19, -inf }
  0xec   : > { %v1413_v35 = vmax.f32 %v1411_v16, %v1412_v24  ;;  %v1422_v36 = vmax.f32 %v1420_v17, %v1421_v26  ;;  %v1430_v37 = vrot.slane %v1429_v27, 4  ;;  %v1690_v38 = vmax.f32 %v1688_v32, %v1689_v61  ;;  %v525_v32 = vpop.f32.mrf.mxu1 }
  0xed   : > { %v1405_v39 = vrot.slane %v1404_v30, 2  ;;  %v1697_v40 = vsel %vm1399_vm3, %v1014_v28, -inf  ;;  %v1708_v41 = vmax.f32 %v1706_v34, %v1707_v5  ;;  %v1715_v42 = vsel %vm1399_vm3, %v1015_v31, -inf }
  0xee   : > { %v1414_v43 = vrot.slane %v1413_v35, 2  ;;  %v1423_v44 = vrot.slane %v1422_v36, 2  ;;  %v1431_v45 = vmax.f32 %v1429_v27, %v1430_v37  ;;  %v1691_v46 = vrot.slane %v1690_v38, 4 }
  0xef   : > { %v1406_v47 = vmax.f32 %v1404_v30, %v1405_v39  ;;  %v1699_v48 = vmax.f32 %v1697_v40, %v1698_v4  ;;  %v1709_v49 = vrot.slane %v1708_v41, 4  ;;  %v1717_v50 = vmax.f32 %v1715_v42, %v1716_v9 }
  0xf0   : > { %v1415_v51 = vmax.f32 %v1413_v35, %v1414_v43  ;;  %v1424_v52 = vmax.f32 %v1422_v36, %v1423_v44  ;;  %v1432_v53 = vrot.slane %v1431_v45, 2  ;;  %v1692_v54 = vmax.f32 %v1690_v38, %v1691_v46  ;;  %v2679_v38 = vpop.f32.mrf.mxu0 }
  0xf1   : > { %v1407_v55 = vrot.slane %v1406_v47, 1  ;;  %v1700_v56 = vrot.slane %v1699_v48, 4  ;;  %v1710_v57 = vmax.f32 %v1708_v41, %v1709_v49  ;;  %v1718_v58 = vrot.slane %v1717_v50, 4 }
  0xf2   : > { %v1416_v59 = vrot.slane %v1415_v51, 1  ;;  %v1425_v60 = vrot.slane %v1424_v52, 1  ;;  %v1433_v61 = vmax.f32 %v1431_v45, %v1432_v53  ;;  %v1693_v62 = vrot.slane %v1692_v54, 2 }
  0xf3   : > { %v1408_v63 = vmax.f32 %v1406_v47, %v1407_v55  ;;  %v1701_v0 = vmax.f32 %v1699_v48, %v1700_v56  ;;  %v1711_v1 = vrot.slane %v1710_v57, 2  ;;  %v1719_v2 = vmax.f32 %v1717_v50, %v1718_v58  ;;  %v474_v55 = vpop.f32.mrf.mxu0 }
  0xf4   : > { %v1417_v3 = vmax.f32 %v1415_v51, %v1416_v59  ;;  %v1426_v4 = vmax.f32 %v1424_v52, %v1425_v60  ;;  %v1434_v5 = vrot.slane %v1433_v61, 1  ;;  %v1694_v6 = vmax.f32 %v1692_v54, %v1693_v62  ;;  %v2695_v51 = vpop.f32.mrf.mxu1 }
  0xf5   : > { %v2587_v7 = vpack.c.bf16 %v1408_v63, %v1408_v63  ;;  %v1702_v8 = vrot.slane %v1701_v0, 2  ;;  %v1712_v9 = vmax.f32 %v1710_v57, %v1711_v1  ;;  %v1720_v10 = vrot.slane %v1719_v2, 2 }
  0xf6   : > { %v1435_v11 = vmax.f32 %v1433_v61, %v1434_v5  ;;  %v2588_v12 = vpack.c.bf16 %v1417_v3, %v1417_v3  ;;  %v2589_v13 = vpack.c.bf16 %v1426_v4, %v1426_v4  ;;  %v1695_v14 = vrot.slane %v1694_v6, 1  ;;  %v538_v3 = vpop.f32.mrf.mxu1 }
  0xf7   : > { %v2232_v16 = vunpack.c.l.b16 %v2587_v7  ;;  %v1703_v17 = vmax.f32 %v1701_v0, %v1702_v8  ;;  %v1713_v18 = vrot.slane %v1712_v9, 1  ;;  %v1721_v19 = vmax.f32 %v1719_v2, %v1720_v10  ;;  %v2680_v8 = vpop.f32.mrf.mxu0 }
  0xf8   : > { %v2590_v20 = vpack.c.bf16 %v1435_v11, %v1435_v11  ;;  %v2233_v21 = vunpack.c.l.b16 %v2588_v12  ;;  %v2234_v24 = vunpack.c.l.b16 %v2589_v13  ;;  %v1696_v26 = vmax.f32 %v1694_v6, %v1695_v14 }
  0xf9   : > { %v1704_v27 = vrot.slane %v1703_v17, 1  ;;  %v1714_v28 = vmax.f32 %v1712_v9, %v1713_v18  ;;  %v1722_v30 = vrot.slane %v1721_v19, 1  ;;  %v778_v31 = vcombine.high %v2914_v22, %v2914_v22 }
  0xfa   : > { %v2235_v34 = vunpack.c.l.b16 %v2590_v20  ;;  %v2297_v35 = vsel %vm2296_vm4, %v2233_v21, %v2232_v16  ;;  %v2619_v36 = vpack.c.bf16 %v1696_v26, %v1696_v26  ;;  %v785_v37 = vrot.slane %v2914_v22, %v2882_v33 }
  0xfb   : > { %v2299_v39 = vsel %vm2298_vm5, %v2234_v24, %v2297_v35  ;;  %v1705_v40 = vmax.f32 %v1703_v17, %v1704_v27  ;;  %v1723_v41 = vmax.f32 %v1721_v19, %v1722_v30  ;;  %v2621_v42 = vpack.c.bf16 %v1714_v28, %v1714_v28 }
  0xfc   : > { %v2264_v43 = vunpack.c.l.b16 %v2619_v36  ;;  %v792_v44 = vrot.slane %v778_v31, %v2882_v33  ;;  %v793_v45 = vcombine.high %v785_v37, %v785_v37  ;;  %v1437_v46 = vsel %vm1399_vm3, %v785_v37, -inf }
  0xfd   : > { %v2620_v47 = vpack.c.bf16 %v1705_v40, %v1705_v40  ;;  %v2622_v48 = vpack.c.bf16 %v1723_v41, %v1723_v41  ;;  %v2266_v49 = vunpack.c.l.b16 %v2621_v42  ;;  %v1050_v50 = vcombine.high %v2916_v23, %v2916_v23 }
  0xfe   : > { %v794_v22 = vcombine.high %v792_v44, %v792_v44  ;;  %v1446_v52 = vsel %vm1399_vm3, %v793_v45, -inf  ;;  %v1455_v53 = vsel %vm1399_vm3, %v792_v44, -inf  ;;  %v1057_v54 = vrot.slane %v2916_v23, %v2882_v33 }
  0xff   : > { %v2265_v56 = vunpack.c.l.b16 %v2620_v47  ;;  %v2267_v57 = vunpack.c.l.b16 %v2622_v48  ;;  %v1064_v58 = vrot.slane %v1050_v50, %v2882_v33  ;;  %v593_v59 = vmul.f32 %v2873_v25, %v461_v15 }
 0x100   : > { %v1464_v60 = vsel %vm1399_vm3, %v794_v22, -inf  ;;  %v1065_v61 = vcombine.high %v1057_v54, %v1057_v54  ;;  %v1725_v62 = vsel %vm1399_vm3, %v1057_v54, -inf  ;;  %v2941_v63 = vsel %vm2300_vm6, %v2235_v34, %v2299_v39 }
 0x101   : > { %v2331_v0 = vsel %vm2296_vm4, %v2265_v56, %v2264_v43  ;;  %v1066_v1 = vcombine.high %v1064_v58, %v1064_v58  ;;  %v1743_v23 = vsel %vm1399_vm3, %v1064_v58, -inf  ;;  %v632_v2 = vadd.f32 %v2878_v29, %v593_v59 }
 0x102   : > { %v2332_v4 = vsel %vm2298_vm5, %v2266_v49, %v2331_v0  ;;  %v1734_v5 = vsel %vm1399_vm3, %v1065_v61, -inf  ;;  %v609_v6 = vmul.f32 %v2873_v25, %v525_v32  ;;  %v598_v7 = vmul.f32 %v2679_v38, %v2873_v25 }
 0x103   : > { %v1752_v9 = vsel %vm1399_vm3, %v1066_v1, -inf  ;;  %v664_v10 = vmax.f32 %v632_v2, 0.0  ;;  %v2952_v11 = vsel %vm2300_vm6, %v2267_v57, %v2332_v4  ;;  %v614_v12 = vmul.f32 %v2695_v51, %v2873_v25 }
 0x104   : > { %v648_v13 = vadd.f32 %v2878_v29, %v609_v6  ;;  %v637_v14 = vadd.f32 %v2878_v29, %v598_v7  ;;  %v596_v15 = vmul.f32 %v2873_v25, %v474_v55  ;;  %v612_v16 = vmul.f32 %v2873_v25, %v538_v3 }
 0x105   : > { %v744_v17 = vcombine.high %v664_v10, %v664_v10  ;;  %v751_v18 = vrot.slane %v664_v10, %v2882_v33  ;;  %v653_v19 = vadd.f32 %v2878_v29, %v614_v12  ;;  %v2962_v20 = vmul.f32 %v2680_v8, %v2873_v25 }
 0x106   : > { %v680_v21 = vmax.f32 %v648_v13, 0.0  ;;  %v669_v24 = vmax.f32 %v637_v14, 0.0  ;;  %v2965_v26 = vadd.f32 %v2878_v29, %v596_v15  ;;  %v2968_v27 = vadd.f32 %v2878_v29, %v612_v16 }
 0x107   : > { %v758_v28 = vrot.slane %v744_v17, %v2882_v33  ;;  %v759_v30 = vcombine.high %v751_v18, %v751_v18  ;;  %v1436_v31 = vsel %vm1399_vm3, %v751_v18, -inf  ;;  %v2972_v32 = vmax.f32 %v653_v19, 0.0 }
 0x108   : > { %v1438_v34 = vmax.f32 %v1436_v31, %v1437_v46  ;;  %v1016_v35 = vcombine.high %v680_v21, %v680_v21  ;;  %v1023_v36 = vrot.slane %v680_v21, %v2882_v33  ;;  %v829_v37 = vcombine.high %v669_v24, %v669_v24 }
 0x109   : > { %v760_v38 = vcombine.high %v758_v28, %v758_v28  ;;  %v1445_v39 = vsel %vm1399_vm3, %v759_v30, -inf  ;;  %v1454_v40 = vsel %vm1399_vm3, %v758_v28, -inf  ;;  %v2978_v41 = vrot.slane %v669_v24, %v2882_v33 }
 0x10a   : > { %v1439_v42 = vrot.slane %v1438_v34, 4  ;;  %v1447_v43 = vmax.f32 %v1445_v39, %v1446_v52  ;;  %v1456_v44 = vmax.f32 %v1454_v40, %v1455_v53  ;;  %v1030_v45 = vrot.slane %v1016_v35, %v2882_v33 }
 0x10b   : > { %v1463_v47 = vsel %vm1399_vm3, %v760_v38, -inf  ;;  %v1031_v46 = vcombine.high %v1023_v36, %v1023_v36  ;;  %v1724_v48 = vsel %vm1399_vm3, %v1023_v36, -inf  ;;  %v2984_v49 = vrot.slane %v829_v37, %v2882_v33 }
 0x10c   : > { %v1440_v50 = vmax.f32 %v1438_v34, %v1439_v42  ;;  %v1448_v51 = vrot.slane %v1447_v43, 4  ;;  %v1457_v22 = vrot.slane %v1456_v44, 4  ;;  %v1465_v54 = vmax.f32 %v1463_v47, %v1464_v60 }
 0x10d   : > { %v1032_v55 = vcombine.high %v1030_v45, %v1030_v45  ;;  %v1726_v56 = vmax.f32 %v1724_v48, %v1725_v62  ;;  %v1733_v57 = vsel %vm1399_vm3, %v1031_v46, -inf  ;;  %v1742_v52 = vsel %vm1399_vm3, %v1030_v45, -inf }
 0x10e   : > { %v1441_v53 = vrot.slane %v1440_v50, 2  ;;  %v1449_v58 = vmax.f32 %v1447_v43, %v1448_v51  ;;  %v1458_v59 = vmax.f32 %v1456_v44, %v1457_v22  ;;  %v1466_v61 = vrot.slane %v1465_v54, 4 }
 0x10f   : > { %v1727_v0 = vrot.slane %v1726_v56, 4  ;;  %v1735_v1 = vmax.f32 %v1733_v57, %v1734_v5  ;;  %v1744_v2 = vmax.f32 %v1742_v52, %v1743_v23  ;;  %v1751_v3 = vsel %vm1399_vm3, %v1032_v55, -inf }
 0x110   : > { %v1442_v4 = vmax.f32 %v1440_v50, %v1441_v53  ;;  %v1450_v6 = vrot.slane %v1449_v58, 2  ;;  %v1459_v7 = vrot.slane %v1458_v59, 2  ;;  %v1467_v60 = vmax.f32 %v1465_v54, %v1466_v61 }
 0x111   : > { %v1728_v62 = vmax.f32 %v1726_v56, %v1727_v0  ;;  %v1736_v8 = vrot.slane %v1735_v1, 4  ;;  %v1745_v10 = vrot.slane %v1744_v2, 4  ;;  %v1753_v12 = vmax.f32 %v1751_v3, %v1752_v9 }
 0x112   : > { %v1443_v13 = vrot.slane %v1442_v4, 1  ;;  %v1451_v14 = vmax.f32 %v1449_v58, %v1450_v6  ;;  %v1460_v15 = vmax.f32 %v1458_v59, %v1459_v7  ;;  %v1468_v16 = vrot.slane %v1467_v60, 2 }
 0x113   : > { %v1729_v17 = vrot.slane %v1728_v62, 2  ;;  %v1737_v5 = vmax.f32 %v1735_v1, %v1736_v8  ;;  %v1746_v23 = vmax.f32 %v1744_v2, %v1745_v10  ;;  %v1754_v18 = vrot.slane %v1753_v12, 4 }
 0x114   : > { %v1444_v19 = vmax.f32 %v1442_v4, %v1443_v13  ;;  %v1452_v21 = vrot.slane %v1451_v14, 1  ;;  %v1461_v24 = vrot.slane %v1460_v15, 1  ;;  %v1469_v28 = vmax.f32 %v1467_v60, %v1468_v16 }
 0x115   : > { %v1730_v30 = vmax.f32 %v1728_v62, %v1729_v17  ;;  %v1738_v31 = vrot.slane %v1737_v5, 2  ;;  %v1747_v34 = vrot.slane %v1746_v23, 2  ;;  %v1755_v35 = vmax.f32 %v1753_v12, %v1754_v18 }
 0x116   : > { %v1453_v36 = vmax.f32 %v1451_v14, %v1452_v21  ;;  %v1462_v9 = vmax.f32 %v1460_v15, %v1461_v24  ;;  %v1470_v37 = vrot.slane %v1469_v28, 1  ;;  %v2591_v38 = vpack.c.bf16 %v1444_v19, %v1444_v19 }
 0x117   : > { %v1731_v39 = vrot.slane %v1730_v30, 1  ;;  %v1739_v40 = vmax.f32 %v1737_v5, %v1738_v31  ;;  %v1748_v42 = vmax.f32 %v1746_v23, %v1747_v34  ;;  %v1756_v43 = vrot.slane %v1755_v35, 2 }
 0x118   : > { %v1471_v44 = vmax.f32 %v1469_v28, %v1470_v37  ;;  %v2592_v45 = vpack.c.bf16 %v1453_v36, %v1453_v36  ;;  %v2593_v47 = vpack.c.bf16 %v1462_v9, %v1462_v9  ;;  %v2236_v46 = vunpack.c.l.b16 %v2591_v38 }
 0x119   : > { %v1732_v48 = vmax.f32 %v1730_v30, %v1731_v39  ;;  %v1740_v50 = vrot.slane %v1739_v40, 1  ;;  %v1749_v51 = vrot.slane %v1748_v42, 1  ;;  %v1757_v22 = vmax.f32 %v1755_v35, %v1756_v43 }
 0x11a   : > { %v2594_v54 = vpack.c.bf16 %v1471_v44, %v1471_v44  ;;  %v2237_v55 = vunpack.c.l.b16 %v2592_v45  ;;  %v2238_v56 = vunpack.c.l.b16 %v2593_v47  ;;  %v2303_v57 = vsel %vm2302_vm7, %v2236_v46, %v2941_v63 }
 0x11b   : > { %v1741_v52 = vmax.f32 %v1739_v40, %v1740_v50  ;;  %v1750_v53 = vmax.f32 %v1748_v42, %v1749_v51  ;;  %v1758_v58 = vrot.slane %v1757_v22, 1  ;;  %v2623_v59 = vpack.c.bf16 %v1732_v48, %v1732_v48 }
 0x11c   : > { %v2239_v61 = vunpack.c.l.b16 %v2594_v54  ;;  %v2305_v0 = vsel %vm2304_vm8, %v2237_v55, %v2303_v57  ;;  %v844_v1 = vcombine.high %v2978_v41, %v2978_v41  ;;  %v845_v2 = vcombine.high %v2984_v49, %v2984_v49 }
 0x11d   : > { %v2307_v3 = vsel %vm2306_vm9, %v2238_v56, %v2305_v0  ;;  %v1759_v4 = vmax.f32 %v1757_v22, %v1758_v58  ;;  %v2624_v6 = vpack.c.bf16 %v1741_v52, %v1741_v52  ;;  %v2625_v7 = vpack.c.bf16 %v1750_v53, %v1750_v53 }
 0x11e   : > { %v2309_v63 = vsel %vm2308_vm10, %v2239_v61, %v2307_v3  ;;  %v2268_v60 = vunpack.c.l.b16 %v2623_v59  ;;  %v1473_v62 = vsel %vm1399_vm3, %v2978_v41, -inf  ;;  %v1482_v8 = vsel %vm1399_vm3, %v844_v1, -inf }
 0x11f   : > { %v2359_v10 = vpack.c.b16 %v2309_v63, %v2309_v63  ;;  %v2626_v12 = vpack.c.bf16 %v1759_v4, %v1759_v4  ;;  %v2269_v13 = vunpack.c.l.b16 %v2624_v6  ;;  %v2270_v14 = vunpack.c.l.b16 %v2625_v7 }
 0x120   : > { %v2334_v15 = vsel %vm2302_vm7, %v2268_v60, %v2952_v11  ;;  %v1491_v16 = vsel %vm1399_vm3, %v2984_v49, -inf  ;;  %v1500_v17 = vsel %vm1399_vm3, %v845_v2, -inf  ;;  %v1101_v5 = vcombine.high %v2972_v32, %v2972_v32 }
 0x121   : > { %2376 = vst.msk [vmem:[%s3001_s8] sm:$0xf] %vm2375_vm11, %v2359_v10  ;;  %v2271_v41 = vunpack.c.l.b16 %v2626_v12  ;;  %v2335_v23 = vsel %vm2304_vm8, %v2269_v13, %v2334_v15  ;;  %v1108_v18 = vrot.slane %v2972_v32, %v2882_v33  ;;  %v667_v19 = vmax.f32 %v2965_v26, 0.0 }
 0x122   : > { %v2336_v11 = vsel %vm2306_vm9, %v2270_v14, %v2335_v23  ;;  %v1115_v49 = vrot.slane %v1101_v5, %v2882_v33  ;;  %v683_v21 = vmax.f32 %v2968_v27, 0.0  ;;  %v638_v24 = vadd.f32 %v2878_v29, %v2962_v20 }
 0x123   : > { %v2337_v28 = vsel %vm2308_vm10, %v2271_v41, %v2336_v11  ;;  %v1116_v30 = vcombine.high %v1108_v18, %v1108_v18  ;;  %v1761_v31 = vsel %vm1399_vm3, %v1108_v18, -inf  ;;  %v795_v34 = vcombine.high %v667_v19, %v667_v19 }
 0x124   : > { %v2363_v35 = vpack.c.b16 %v2337_v28, %v2337_v28  ;;  %v1117_v32 = vcombine.high %v1115_v49, %v1115_v49  ;;  %v1779_v26 = vsel %vm1399_vm3, %v1115_v49, -inf  ;;  %v802_v36 = vrot.slane %v667_v19, %v2882_v33 }
 0x125   : > { %v1770_v9 = vsel %vm1399_vm3, %v1116_v30, -inf  ;;  %v809_v37 = vrot.slane %v795_v34, %v2882_v33  ;;  %v1067_v27 = vcombine.high %v683_v21, %v683_v21  ;;  %v1074_v38 = vrot.slane %v683_v21, %v2882_v33  ;;  %v2696_v34 = vpop.f32.mrf.mxu1 }
 0x126   : > { %2380 = vst.msk [vmem:[%s3001_s8 + $0x10] sm:$0xf] %vm2375_vm11, %v2363_v35  ;;  %v1788_v20 = vsel %vm1399_vm3, %v1117_v32, -inf  ;;  %v810_v39 = vcombine.high %v802_v36, %v802_v36  ;;  %v1472_v40 = vsel %vm1399_vm3, %v802_v36, -inf  ;;  %v3036_v42 = vmax.f32 %v638_v24, 0.0 }
 0x127   : > { %v811_v43 = vcombine.high %v809_v37, %v809_v37  ;;  %v1474_v44 = vmax.f32 %v1472_v40, %v1473_v62  ;;  %v1490_v45 = vsel %vm1399_vm3, %v809_v37, -inf  ;;  %v1081_v47 = vrot.slane %v1067_v27, %v2882_v33 }
 0x128   : > { %v1481_v46 = vsel %vm1399_vm3, %v810_v39, -inf  ;;  %v1492_v48 = vmax.f32 %v1490_v45, %v1491_v16  ;;  %v1082_v50 = vcombine.high %v1074_v38, %v1074_v38  ;;  %v1760_v51 = vsel %vm1399_vm3, %v1074_v38, -inf }
 0x129   : > { %v1475_v22 = vrot.slane %v1474_v44, 4  ;;  %v1483_v54 = vmax.f32 %v1481_v46, %v1482_v8  ;;  %v1499_v55 = vsel %vm1399_vm3, %v811_v43, -inf  ;;  %v1083_v56 = vcombine.high %v1081_v47, %v1081_v47 }
 0x12a   : > { %v1493_v57 = vrot.slane %v1492_v48, 4  ;;  %v1501_v52 = vmax.f32 %v1499_v55, %v1500_v17  ;;  %v1762_v53 = vmax.f32 %v1760_v51, %v1761_v31  ;;  %v1769_v58 = vsel %vm1399_vm3, %v1082_v50, -inf  ;;  %v541_v50 = vpop.f32.mrf.mxu1 }
 0x12b   : > { %v1476_v59 = vmax.f32 %v1474_v44, %v1475_v22  ;;  %v1484_v61 = vrot.slane %v1483_v54, 4  ;;  %v1771_v0 = vmax.f32 %v1769_v58, %v1770_v9  ;;  %v1778_v1 = vsel %vm1399_vm3, %v1081_v47, -inf }
 0x12c   : > { %v1494_v2 = vmax.f32 %v1492_v48, %v1493_v57  ;;  %v1502_v3 = vrot.slane %v1501_v52, 4  ;;  %v1763_v4 = vrot.slane %v1762_v53, 4  ;;  %v1780_v6 = vmax.f32 %v1778_v1, %v1779_v26 }
 0x12d   : > { %v1477_v7 = vrot.slane %v1476_v59, 2  ;;  %v1485_v63 = vmax.f32 %v1483_v54, %v1484_v61  ;;  %v1772_v60 = vrot.slane %v1771_v0, 4  ;;  %v1787_v62 = vsel %vm1399_vm3, %v1083_v56, -inf }
 0x12e   : > { %v1495_v8 = vrot.slane %v1494_v2, 2  ;;  %v1503_v10 = vmax.f32 %v1501_v52, %v1502_v3  ;;  %v1764_v12 = vmax.f32 %v1762_v53, %v1763_v4  ;;  %v1781_v13 = vrot.slane %v1780_v6, 4 }
 0x12f   : > { %v1478_v14 = vmax.f32 %v1476_v59, %v1477_v7  ;;  %v1486_v15 = vrot.slane %v1485_v63, 2  ;;  %v1773_v16 = vmax.f32 %v1771_v0, %v1772_v60  ;;  %v1789_v17 = vmax.f32 %v1787_v62, %v1788_v20  ;;  %v477_v20 = vpop.f32.mrf.mxu0  ;;  %v2699_v7 = vpop.f32.mrf.mxu1 }
 0x130   : > { %v1496_v5 = vmax.f32 %v1494_v2, %v1495_v8  ;;  %v1504_v41 = vrot.slane %v1503_v10, 2  ;;  %v1765_v23 = vrot.slane %v1764_v12, 2  ;;  %v1782_v18 = vmax.f32 %v1780_v6, %v1781_v13 }
 0x131   : > { %v1479_v19 = vrot.slane %v1478_v14, 1  ;;  %v1487_v11 = vmax.f32 %v1485_v63, %v1486_v15  ;;  %v1774_v49 = vrot.slane %v1773_v16, 2  ;;  %v1790_v21 = vrot.slane %v1789_v17, 4  ;;  %v2683_v58 = vpop.f32.mrf.mxu0 }
 0x132   : > { %v1497_v24 = vrot.slane %v1496_v5, 1  ;;  %v1505_v28 = vmax.f32 %v1503_v10, %v1504_v41  ;;  %v1766_v30 = vmax.f32 %v1764_v12, %v1765_v23  ;;  %v1783_v31 = vrot.slane %v1782_v18, 2 }
 0x133   : > { %v1480_v35 = vmax.f32 %v1478_v14, %v1479_v19  ;;  %v1488_v32 = vrot.slane %v1487_v11, 1  ;;  %v1775_v26 = vmax.f32 %v1773_v16, %v1774_v49  ;;  %v1791_v36 = vmax.f32 %v1789_v17, %v1790_v21  ;;  %v490_v15 = vpop.f32.mrf.mxu0 }
 0x134   : > { %v1498_v9 = vmax.f32 %v1496_v5, %v1497_v24  ;;  %v1506_v37 = vrot.slane %v1505_v28, 1  ;;  %v1767_v27 = vrot.slane %v1766_v30, 1  ;;  %v1784_v38 = vmax.f32 %v1782_v18, %v1783_v31 }
 0x135   : > { %v1489_v39 = vmax.f32 %v1487_v11, %v1488_v32  ;;  %v2595_v40 = vpack.c.bf16 %v1480_v35, %v1480_v35  ;;  %v1776_v43 = vrot.slane %v1775_v26, 1  ;;  %v1792_v44 = vrot.slane %v1791_v36, 2  ;;  %v554_v11 = vpop.f32.mrf.mxu1 }
 0x136   : > { %v1507_v45 = vmax.f32 %v1505_v28, %v1506_v37  ;;  %v2597_v47 = vpack.c.bf16 %v1498_v9, %v1498_v9  ;;  %v1768_v46 = vmax.f32 %v1766_v30, %v1767_v27  ;;  %v1785_v48 = vrot.slane %v1784_v38, 1 }
 0x137   : > { %v2596_v51 = vpack.c.bf16 %v1489_v39, %v1489_v39  ;;  %v2240_v22 = vunpack.c.l.b16 %v2595_v40  ;;  %v1777_v54 = vmax.f32 %v1775_v26, %v1776_v43  ;;  %v1793_v55 = vmax.f32 %v1791_v36, %v1792_v44 }
 0x138   : > { %v2598_v56 = vpack.c.bf16 %v1507_v45, %v1507_v45  ;;  %v2242_v57 = vunpack.c.l.b16 %v2597_v47  ;;  %v1786_v52 = vmax.f32 %v1784_v38, %v1785_v48  ;;  %v2627_v53 = vpack.c.bf16 %v1768_v46, %v1768_v46 }
 0x139   : > { %v2241_v59 = vunpack.c.l.b16 %v2596_v51  ;;  %v1794_v61 = vrot.slane %v1793_v55, 1  ;;  %v2628_v0 = vpack.c.bf16 %v1777_v54, %v1777_v54  ;;  %v846_v1 = vcombine.high %v3036_v42, %v3036_v42 }
 0x13a   : > { %v2243_v2 = vunpack.c.l.b16 %v2598_v56  ;;  %v2629_v3 = vpack.c.bf16 %v1786_v52, %v1786_v52  ;;  %v2272_v4 = vunpack.c.l.b16 %v2627_v53  ;;  %v853_v6 = vrot.slane %v3036_v42, %v2882_v33 }
 0x13b   : > { %v2310_v63 = vsel %vm2296_vm4, %v2241_v59, %v2240_v22  ;;  %v1795_v60 = vmax.f32 %v1793_v55, %v1794_v61  ;;  %v2273_v62 = vunpack.c.l.b16 %v2628_v0  ;;  %v860_v8 = vrot.slane %v846_v1, %v2882_v33 }
 0x13c   : > { %v2311_v10 = vsel %vm2298_vm5, %v2242_v57, %v2310_v63  ;;  %v2274_v12 = vunpack.c.l.b16 %v2629_v3  ;;  %v861_v13 = vcombine.high %v853_v6, %v853_v6  ;;  %v1509_v14 = vsel %vm1399_vm3, %v853_v6, -inf }
 0x13d   : > { %v2630_v16 = vpack.c.bf16 %v1795_v60, %v1795_v60  ;;  %v2338_v17 = vsel %vm2296_vm4, %v2273_v62, %v2272_v4  ;;  %v862_v5 = vcombine.high %v860_v8, %v860_v8  ;;  %v1527_v42 = vsel %vm1399_vm3, %v860_v8, -inf }
 0x13e   : > { %v2339_v41 = vsel %vm2298_vm5, %v2274_v12, %v2338_v17  ;;  %v1518_v23 = vsel %vm1399_vm3, %v861_v13, -inf  ;;  %v615_v18 = vmul.f32 %v2696_v34, %v2873_v25  ;;  %v597_v19 = vmul.f32 %v2873_v25, %v477_v20  ;;  %v2684_v34 = vpop.f32.mrf.mxu0 }
 0x13f   : > { %v2275_v49 = vunpack.c.l.b16 %v2630_v16  ;;  %v1536_v21 = vsel %vm1399_vm3, %v862_v5, -inf  ;;  %v3062_v24 = vsel %vm2300_vm6, %v2243_v2, %v2311_v10  ;;  %v613_v28 = vmul.f32 %v2873_v25, %v541_v50 }
 0x140   : > { %v654_v30 = vadd.f32 %v2878_v29, %v615_v18  ;;  %v636_v31 = vadd.f32 %v2878_v29, %v597_v19  ;;  %v602_v35 = vmul.f32 %v2683_v58, %v2873_v25  ;;  %v618_v32 = vmul.f32 %v2699_v7, %v2873_v25 }
 0x141   : > { %v652_v26 = vadd.f32 %v2878_v29, %v613_v28  ;;  %v3071_v36 = vsel %vm2300_vm6, %v2275_v49, %v2339_v41  ;;  %v600_v9 = vmul.f32 %v2873_v25, %v490_v15  ;;  %v616_v37 = vmul.f32 %v2873_v25, %v554_v11 }
 0x142   : > { %v686_v27 = vmax.f32 %v654_v30, 0.0  ;;  %v668_v38 = vmax.f32 %v636_v31, 0.0  ;;  %v641_v20 = vadd.f32 %v2878_v29, %v602_v35  ;;  %v657_v39 = vadd.f32 %v2878_v29, %v618_v32 }
 0x143   : > { %v684_v40 = vmax.f32 %v652_v26, 0.0  ;;  %v3078_v43 = vadd.f32 %v2878_v29, %v600_v9  ;;  %v3081_v44 = vadd.f32 %v2878_v29, %v616_v37  ;;  %v3084_v45 = vmul.f32 %v2684_v34, %v2873_v25 }
 0x144   : > { %v1118_v47 = vcombine.high %v686_v27, %v686_v27  ;;  %v1125_v46 = vrot.slane %v686_v27, %v2882_v33  ;;  %v812_v48 = vcombine.high %v668_v38, %v668_v38  ;;  %v819_v50 = vrot.slane %v668_v38, %v2882_v33 }
 0x145   : > { %v1084_v51 = vcombine.high %v684_v40, %v684_v40  ;;  %v1091_v22 = vrot.slane %v684_v40, %v2882_v33  ;;  %v3089_v54 = vmax.f32 %v641_v20, 0.0  ;;  %v3091_v55 = vmax.f32 %v657_v39, 0.0 }
 0x146   : > { %v1132_v56 = vrot.slane %v1118_v47, %v2882_v33  ;;  %v1133_v29 = vcombine.high %v1125_v46, %v1125_v46  ;;  %v1797_v57 = vsel %vm1399_vm3, %v1125_v46, -inf  ;;  %v826_v25 = vrot.slane %v812_v48, %v2882_v33 }
 0x147   : > { %v827_v52 = vcombine.high %v819_v50, %v819_v50  ;;  %v1508_v53 = vsel %vm1399_vm3, %v819_v50, -inf  ;;  %v1098_v58 = vrot.slane %v1084_v51, %v2882_v33  ;;  %v1099_v59 = vcombine.high %v1091_v22, %v1091_v22 }
 0x148   : > { %v1134_v61 = vcombine.high %v1132_v56, %v1132_v56  ;;  %v1806_v0 = vsel %vm1399_vm3, %v1133_v29, -inf  ;;  %v1815_v1 = vsel %vm1399_vm3, %v1132_v56, -inf  ;;  %v828_v2 = vcombine.high %v826_v25, %v826_v25 }
 0x149   : > { %v1510_v3 = vmax.f32 %v1508_v53, %v1509_v14  ;;  %v1517_v4 = vsel %vm1399_vm3, %v827_v52, -inf  ;;  %v1526_v6 = vsel %vm1399_vm3, %v826_v25, -inf  ;;  %v1100_v7 = vcombine.high %v1098_v58, %v1098_v58 }
 0x14a   : > { %v1824_v63 = vsel %vm1399_vm3, %v1134_v61, -inf  ;;  %v1519_v60 = vmax.f32 %v1517_v4, %v1518_v23  ;;  %v1528_v62 = vmax.f32 %v1526_v6, %v1527_v42  ;;  %v1535_v8 = vsel %vm1399_vm3, %v828_v2, -inf }
 0x14b   : > { %v1511_v10 = vrot.slane %v1510_v3, 4  ;;  %v1537_v12 = vmax.f32 %v1535_v8, %v1536_v21  ;;  %v1796_v13 = vsel %vm1399_vm3, %v1091_v22, -inf  ;;  %v1805_v15 = vsel %vm1399_vm3, %v1099_v59, -inf }
 0x14c   : > { %v1520_v16 = vrot.slane %v1519_v60, 4  ;;  %v1529_v17 = vrot.slane %v1528_v62, 4  ;;  %v1798_v14 = vmax.f32 %v1796_v13, %v1797_v57  ;;  %v1807_v5 = vmax.f32 %v1805_v15, %v1806_v0 }
 0x14d   : > { %v1512_v41 = vmax.f32 %v1510_v3, %v1511_v10  ;;  %v1538_v18 = vrot.slane %v1537_v12, 4  ;;  %v1814_v19 = vsel %vm1399_vm3, %v1098_v58, -inf  ;;  %v1823_v11 = vsel %vm1399_vm3, %v1100_v7, -inf }
 0x14e   : > { %v1521_v23 = vmax.f32 %v1519_v60, %v1520_v16  ;;  %v1530_v42 = vmax.f32 %v1528_v62, %v1529_v17  ;;  %v1799_v49 = vrot.slane %v1798_v14, 4  ;;  %v1808_v28 = vrot.slane %v1807_v5, 4 }
 0x14f   : > { %v1513_v30 = vrot.slane %v1512_v41, 2  ;;  %v1539_v21 = vmax.f32 %v1537_v12, %v1538_v18  ;;  %v1816_v31 = vmax.f32 %v1814_v19, %v1815_v1  ;;  %v1825_v35 = vmax.f32 %v1823_v11, %v1824_v63 }
 0x150   : > { %v1522_v32 = vrot.slane %v1521_v23, 2  ;;  %v1531_v34 = vrot.slane %v1530_v42, 2  ;;  %v1800_v26 = vmax.f32 %v1798_v14, %v1799_v49  ;;  %v1809_v9 = vmax.f32 %v1807_v5, %v1808_v28 }
 0x151   : > { %v1514_v37 = vmax.f32 %v1512_v41, %v1513_v30  ;;  %v1540_v27 = vrot.slane %v1539_v21, 2  ;;  %v1817_v38 = vrot.slane %v1816_v31, 4  ;;  %v1826_v20 = vrot.slane %v1825_v35, 4 }
 0x152   : > { %v1523_v39 = vmax.f32 %v1521_v23, %v1522_v32  ;;  %v1532_v40 = vmax.f32 %v1530_v42, %v1531_v34  ;;  %v1801_v47 = vrot.slane %v1800_v26, 2  ;;  %v1810_v46 = vrot.slane %v1809_v9, 2 }
 0x153   : > { %v1515_v48 = vrot.slane %v1514_v37, 1  ;;  %v1541_v50 = vmax.f32 %v1539_v21, %v1540_v27  ;;  %v1818_v51 = vmax.f32 %v1816_v31, %v1817_v38  ;;  %v1827_v22 = vmax.f32 %v1825_v35, %v1826_v20 }
 0x154   : > { %v1524_v56 = vrot.slane %v1523_v39, 1  ;;  %v1533_v29 = vrot.slane %v1532_v40, 1  ;;  %v1802_v57 = vmax.f32 %v1800_v26, %v1801_v47  ;;  %v1811_v25 = vmax.f32 %v1809_v9, %v1810_v46 }
 0x155   : > { %v1516_v52 = vmax.f32 %v1514_v37, %v1515_v48  ;;  %v1542_v53 = vrot.slane %v1541_v50, 1  ;;  %v1819_v58 = vrot.slane %v1818_v51, 2  ;;  %v1828_v59 = vrot.slane %v1827_v22, 2 }
 0x156   : > { %v1525_v61 = vmax.f32 %v1523_v39, %v1524_v56  ;;  %v1534_v0 = vmax.f32 %v1532_v40, %v1533_v29  ;;  %v1803_v1 = vrot.slane %v1802_v57, 1  ;;  %v1812_v2 = vrot.slane %v1811_v25, 1 }
 0x157   : > { %v1543_v3 = vmax.f32 %v1541_v50, %v1542_v53  ;;  %v2599_v4 = vpack.c.bf16 %v1516_v52, %v1516_v52  ;;  %v1820_v6 = vmax.f32 %v1818_v51, %v1819_v58  ;;  %v1829_v7 = vmax.f32 %v1827_v22, %v1828_v59 }
 0x158   : > { %v2600_v63 = vpack.c.bf16 %v1525_v61, %v1525_v61  ;;  %v2601_v60 = vpack.c.bf16 %v1534_v0, %v1534_v0  ;;  %v1804_v62 = vmax.f32 %v1802_v57, %v1803_v1  ;;  %v1813_v8 = vmax.f32 %v1811_v25, %v1812_v2 }
 0x159   : > { %v2602_v10 = vpack.c.bf16 %v1543_v3, %v1543_v3  ;;  %v2244_v12 = vunpack.c.l.b16 %v2599_v4  ;;  %v1821_v13 = vrot.slane %v1820_v6, 1  ;;  %v1830_v15 = vrot.slane %v1829_v7, 1 }
 0x15a   : > { %v2245_v16 = vunpack.c.l.b16 %v2600_v63  ;;  %v2246_v17 = vunpack.c.l.b16 %v2601_v60  ;;  %v2631_v14 = vpack.c.bf16 %v1804_v62, %v1804_v62  ;;  %v2632_v5 = vpack.c.bf16 %v1813_v8, %v1813_v8 }
 0x15b   : > { %v2247_v41 = vunpack.c.l.b16 %v2602_v10  ;;  %v2313_v18 = vsel %vm2302_vm7, %v2244_v12, %v3062_v24  ;;  %v1822_v19 = vmax.f32 %v1820_v6, %v1821_v13  ;;  %v1831_v11 = vmax.f32 %v1829_v7, %v1830_v15 }
 0x15c   : > { %v2314_v23 = vsel %vm2304_vm8, %v2245_v16, %v2313_v18  ;;  %v2276_v42 = vunpack.c.l.b16 %v2631_v14  ;;  %v2277_v49 = vunpack.c.l.b16 %v2632_v5  ;;  %v897_v28 = vcombine.high %v3089_v54, %v3089_v54 }
 0x15d   : > { %v2315_v30 = vsel %vm2306_vm9, %v2246_v17, %v2314_v23  ;;  %v2633_v21 = vpack.c.bf16 %v1822_v19, %v1822_v19  ;;  %v2634_v31 = vpack.c.bf16 %v1831_v11, %v1831_v11  ;;  %v904_v35 = vrot.slane %v3089_v54, %v2882_v33 }
 0x15e   : > { %v2316_v32 = vsel %vm2308_vm10, %v2247_v41, %v2315_v30  ;;  %v2341_v24 = vsel %vm2302_vm7, %v2276_v42, %v3071_v36  ;;  %v911_v34 = vrot.slane %v897_v28, %v2882_v33  ;;  %v1169_v26 = vcombine.high %v3091_v55, %v3091_v55 }
 0x15f   : > { %v2360_v9 = vpack.c.b16 %v2316_v32, %v2316_v32  ;;  %v2278_v37 = vunpack.c.l.b16 %v2633_v21  ;;  %v2279_v27 = vunpack.c.l.b16 %v2634_v31  ;;  %v2342_v38 = vsel %vm2304_vm8, %v2277_v49, %v2341_v24 }
 0x160   : > { %v912_v20 = vcombine.high %v904_v35, %v904_v35  ;;  %v913_v39 = vcombine.high %v911_v34, %v911_v34  ;;  %v1545_v40 = vsel %vm1399_vm3, %v904_v35, -inf  ;;  %v1563_v54 = vsel %vm1399_vm3, %v911_v34, -inf }
 0x161   : > { %2377 = vst.msk [vmem:[%s3001_s8 + $0x4] sm:$0xf] %vm2375_vm11, %v2360_v9  ;;  %v2343_v36 = vsel %vm2306_vm9, %v2278_v37, %v2342_v38  ;;  %v1176_v47 = vrot.slane %v3091_v55, %v2882_v33  ;;  %v1183_v46 = vrot.slane %v1169_v26, %v2882_v33  ;;  %v671_v48 = vmax.f32 %v3078_v43, 0.0 }
 0x162   : > { %v2344_v50 = vsel %vm2308_vm10, %v2279_v27, %v2343_v36  ;;  %v1554_v51 = vsel %vm1399_vm3, %v912_v20, -inf  ;;  %v1572_v22 = vsel %vm1399_vm3, %v913_v39, -inf  ;;  %v687_v56 = vmax.f32 %v3081_v44, 0.0  ;;  %v3147_v44 = vld [vmem:[%s3341_s3] ss:$0 sm:$0xff] }
 0x163   : > { %v2364_v29 = vpack.c.b16 %v2344_v50, %v2344_v50  ;;  %v1184_v57 = vcombine.high %v1176_v47, %v1176_v47  ;;  %v1185_v25 = vcombine.high %v1183_v46, %v1183_v46  ;;  %v1833_v52 = vsel %vm1399_vm3, %v1176_v47, -inf }
 0x164   : > { %v1851_v53 = vsel %vm1399_vm3, %v1183_v46, -inf  ;;  %v863_v55 = vcombine.high %v671_v48, %v671_v48  ;;  %v870_v58 = vrot.slane %v671_v48, %v2882_v33  ;;  %v1135_v59 = vcombine.high %v687_v56, %v687_v56 }
 0x165   : > { %2381 = vst.msk [vmem:[%s3001_s8 + $0x14] sm:$0xf] %vm2375_vm11, %v2364_v29  ;;  %v1842_v43 = vsel %vm1399_vm3, %v1184_v57, -inf  ;;  %v1860_v61 = vsel %vm1399_vm3, %v1185_v25, -inf  ;;  %v1142_v0 = vrot.slane %v687_v56, %v2882_v33  ;;  %v642_v1 = vadd.f32 %v3147_v44, %v3084_v45  ;;  %v2700_v25 = vpop.f32.mrf.mxu1 }
 0x166   : > { %v877_v2 = vrot.slane %v863_v55, %v2882_v33  ;;  %v878_v3 = vcombine.high %v870_v58, %v870_v58  ;;  %v1544_v4 = vsel %vm1399_vm3, %v870_v58, -inf  ;;  %v1149_v6 = vrot.slane %v1135_v59, %v2882_v33 }
 0x167   : > { %v1546_v7 = vmax.f32 %v1544_v4, %v1545_v40  ;;  %v1150_v63 = vcombine.high %v1142_v0, %v1142_v0  ;;  %v1832_v60 = vsel %vm1399_vm3, %v1142_v0, -inf  ;;  %v3155_v62 = vmax.f32 %v642_v1, 0.0 }
 0x168   : > { %v879_v8 = vcombine.high %v877_v2, %v877_v2  ;;  %v1553_v10 = vsel %vm1399_vm3, %v878_v3, -inf  ;;  %v1562_v12 = vsel %vm1399_vm3, %v877_v2, -inf  ;;  %v1151_v13 = vcombine.high %v1149_v6, %v1149_v6 }
 0x169   : > { %v1547_v45 = vrot.slane %v1546_v7, 4  ;;  %v1555_v15 = vmax.f32 %v1553_v10, %v1554_v51  ;;  %v1564_v16 = vmax.f32 %v1562_v12, %v1563_v54  ;;  %v1834_v17 = vmax.f32 %v1832_v60, %v1833_v52  ;;  %v557_v10 = vpop.f32.mrf.mxu1 }
 0x16a   : > { %v1571_v14 = vsel %vm1399_vm3, %v879_v8, -inf  ;;  %v1841_v5 = vsel %vm1399_vm3, %v1150_v63, -inf  ;;  %v1850_v41 = vsel %vm1399_vm3, %v1149_v6, -inf  ;;  %v1859_v18 = vsel %vm1399_vm3, %v1151_v13, -inf  ;;  %v493_v8 = vpop.f32.mrf.mxu0 }
 0x16b   : > { %v1548_v19 = vmax.f32 %v1546_v7, %v1547_v45  ;;  %v1556_v11 = vrot.slane %v1555_v15, 4  ;;  %v1565_v23 = vrot.slane %v1564_v16, 4  ;;  %v1573_v42 = vmax.f32 %v1571_v14, %v1572_v22 }
 0x16c   : > { %v1835_v49 = vrot.slane %v1834_v17, 4  ;;  %v1843_v28 = vmax.f32 %v1841_v5, %v1842_v43  ;;  %v1852_v30 = vmax.f32 %v1850_v41, %v1851_v53  ;;  %v1861_v21 = vmax.f32 %v1859_v18, %v1860_v61 }
 0x16d   : > { %v1549_v31 = vrot.slane %v1548_v19, 2  ;;  %v1557_v35 = vmax.f32 %v1555_v15, %v1556_v11  ;;  %v1566_v32 = vmax.f32 %v1564_v16, %v1565_v23  ;;  %v1574_v24 = vrot.slane %v1573_v42, 4 }
 0x16e   : > { %v1836_v34 = vmax.f32 %v1834_v17, %v1835_v49  ;;  %v1844_v26 = vrot.slane %v1843_v28, 4  ;;  %v1853_v9 = vrot.slane %v1852_v30, 4  ;;  %v1862_v37 = vrot.slane %v1861_v21, 4 }
 0x16f   : > { %v1550_v27 = vmax.f32 %v1548_v19, %v1549_v31  ;;  %v1558_v38 = vrot.slane %v1557_v35, 2  ;;  %v1567_v20 = vrot.slane %v1566_v32, 2  ;;  %v1575_v39 = vmax.f32 %v1573_v42, %v1574_v24 }
 0x170   : > { %v1837_v40 = vrot.slane %v1836_v34, 2  ;;  %v1845_v54 = vmax.f32 %v1843_v28, %v1844_v26  ;;  %v1854_v36 = vmax.f32 %v1852_v30, %v1853_v9  ;;  %v1863_v47 = vmax.f32 %v1861_v21, %v1862_v37  ;;  %v2687_v28 = vpop.f32.mrf.mxu0  ;;  %v2703_v30 = vpop.f32.mrf.mxu1 }
 0x171   : > { %v1551_v46 = vrot.slane %v1550_v27, 1  ;;  %v1559_v48 = vmax.f32 %v1557_v35, %v1558_v38  ;;  %v1568_v50 = vmax.f32 %v1566_v32, %v1567_v20  ;;  %v1576_v51 = vrot.slane %v1575_v39, 2 }
 0x172   : > { %v1838_v22 = vmax.f32 %v1836_v34, %v1837_v40  ;;  %v1846_v56 = vrot.slane %v1845_v54, 2  ;;  %v1855_v29 = vrot.slane %v1854_v36, 2  ;;  %v1864_v57 = vrot.slane %v1863_v47, 2 }
 0x173   : > { %v1552_v52 = vmax.f32 %v1550_v27, %v1551_v46  ;;  %v1560_v53 = vrot.slane %v1559_v48, 1  ;;  %v1569_v55 = vrot.slane %v1568_v50, 1  ;;  %v1577_v58 = vmax.f32 %v1575_v39, %v1576_v51  ;;  %v570_v46 = vpop.f32.mrf.mxu1 }
 0x174   : > { %v1839_v59 = vrot.slane %v1838_v22, 1  ;;  %v1847_v43 = vmax.f32 %v1845_v54, %v1846_v56  ;;  %v1856_v61 = vmax.f32 %v1854_v36, %v1855_v29  ;;  %v1865_v0 = vmax.f32 %v1863_v47, %v1864_v57  ;;  %v506_v47 = vpop.f32.mrf.mxu0 }
 0x175   : > { %v1561_v1 = vmax.f32 %v1559_v48, %v1560_v53  ;;  %v1570_v2 = vmax.f32 %v1568_v50, %v1569_v55  ;;  %v1578_v3 = vrot.slane %v1577_v58, 1  ;;  %v2603_v4 = vpack.c.bf16 %v1552_v52, %v1552_v52 }
 0x176   : > { %v1840_v6 = vmax.f32 %v1838_v22, %v1839_v59  ;;  %v1848_v7 = vrot.slane %v1847_v43, 1  ;;  %v1857_v63 = vrot.slane %v1856_v61, 1  ;;  %v1866_v60 = vrot.slane %v1865_v0, 1 }
 0x177   : > { %v1579_v12 = vmax.f32 %v1577_v58, %v1578_v3  ;;  %v2604_v13 = vpack.c.bf16 %v1561_v1, %v1561_v1  ;;  %v2605_v45 = vpack.c.bf16 %v1570_v2, %v1570_v2  ;;  %v2248_v15 = vunpack.c.l.b16 %v2603_v4 }
 0x178   : > { %v1849_v16 = vmax.f32 %v1847_v43, %v1848_v7  ;;  %v1858_v17 = vmax.f32 %v1856_v61, %v1857_v63  ;;  %v1867_v14 = vmax.f32 %v1865_v0, %v1866_v60  ;;  %v2635_v5 = vpack.c.bf16 %v1840_v6, %v1840_v6 }
 0x179   : > { %v2606_v41 = vpack.c.bf16 %v1579_v12, %v1579_v12  ;;  %v2249_v18 = vunpack.c.l.b16 %v2604_v13  ;;  %v2250_v19 = vunpack.c.l.b16 %v2605_v45  ;;  %v914_v11 = vcombine.high %v3155_v62, %v3155_v62 }
 0x17a   : > { %v2636_v23 = vpack.c.bf16 %v1849_v16, %v1849_v16  ;;  %v2637_v42 = vpack.c.bf16 %v1858_v17, %v1858_v17  ;;  %v2638_v49 = vpack.c.bf16 %v1867_v14, %v1867_v14  ;;  %v921_v35 = vrot.slane %v3155_v62, %v2882_v33  ;;  %v3176_v62 = vld [vmem:[%s3340_s2] ss:$0 sm:$0xff] }
 0x17b   : > { %v2251_v21 = vunpack.c.l.b16 %v2606_v41  ;;  %v2317_v31 = vsel %vm2296_vm4, %v2249_v18, %v2248_v15  ;;  %v928_v32 = vrot.slane %v914_v11, %v2882_v33  ;;  %v2280_v34 = vunpack.c.l.b16 %v2635_v5 }
 0x17c   : > { %v2318_v24 = vsel %vm2298_vm5, %v2250_v19, %v2317_v31  ;;  %v2281_v26 = vunpack.c.l.b16 %v2636_v23  ;;  %v2282_v9 = vunpack.c.l.b16 %v2637_v42  ;;  %v2283_v37 = vunpack.c.l.b16 %v2638_v49 }
 0x17d   : > { %v929_v27 = vcombine.high %v921_v35, %v921_v35  ;;  %v930_v38 = vcombine.high %v928_v32, %v928_v32  ;;  %v1581_v20 = vsel %vm1399_vm3, %v921_v35, -inf  ;;  %v1599_v40 = vsel %vm1399_vm3, %v928_v32, -inf }
 0x17e   : > { %v2345_v39 = vsel %vm2296_vm4, %v2281_v26, %v2280_v34  ;;  %v619_v54 = vmul.f32 %v3176_v62, %v2700_v25  ;;  %v601_v36 = vmul.f32 %v3176_v62, %v493_v8  ;;  %v3183_v51 = vsel %vm2300_vm6, %v2251_v21, %v2318_v24 }
 0x17f   : > { %v2346_v48 = vsel %vm2298_vm5, %v2282_v9, %v2345_v39  ;;  %v1590_v50 = vsel %vm1399_vm3, %v929_v27, -inf  ;;  %v617_v22 = vmul.f32 %v3176_v62, %v557_v10  ;;  %v1608_v56 = vsel %vm1399_vm3, %v930_v38, -inf }
 0x180   : > { %v658_v29 = vadd.f32 %v3147_v44, %v619_v54  ;;  %v640_v57 = vadd.f32 %v3147_v44, %v601_v36  ;;  %v606_v25 = vmul.f32 %v3176_v62, %v2687_v28  ;;  %v622_v53 = vmul.f32 %v3176_v62, %v2703_v30 }
 0x181   : > { %v656_v52 = vadd.f32 %v3147_v44, %v617_v22  ;;  %v604_v55 = vmul.f32 %v3176_v62, %v506_v47  ;;  %v620_v58 = vmul.f32 %v3176_v62, %v570_v46  ;;  %v3195_v61 = vsel %vm2300_vm6, %v2283_v37, %v2346_v48 }
 0x182   : > { %v690_v59 = vmax.f32 %v658_v29, 0.0  ;;  %v672_v43 = vmax.f32 %v640_v57, 0.0  ;;  %v645_v0 = vadd.f32 %v3147_v44, %v606_v25  ;;  %v661_v2 = vadd.f32 %v3147_v44, %v622_v53 }
 0x183   : > { %v688_v1 = vmax.f32 %v656_v52, 0.0  ;;  %v3200_v3 = vadd.f32 %v3147_v44, %v604_v55  ;;  %v3203_v4 = vadd.f32 %v3147_v44, %v620_v58 }
 0x184   : > { %v1186_v6 = vcombine.high %v690_v59, %v690_v59  ;;  %v1193_v7 = vrot.slane %v690_v59, %v2882_v33  ;;  %v880_v63 = vcombine.high %v672_v43, %v672_v43  ;;  %v887_v60 = vrot.slane %v672_v43, %v2882_v33 }
 0x185   : > { %v1152_v8 = vcombine.high %v688_v1, %v688_v1  ;;  %v1159_v10 = vrot.slane %v688_v1, %v2882_v33  ;;  %v3208_v12 = vmax.f32 %v645_v0, 0.0  ;;  %v3210_v13 = vmax.f32 %v661_v2, 0.0 }
 0x186   : > { %v1200_v45 = vrot.slane %v1186_v6, %v2882_v33  ;;  %v1201_v15 = vcombine.high %v1193_v7, %v1193_v7  ;;  %v1869_v16 = vsel %vm1399_vm3, %v1193_v7, -inf  ;;  %v894_v17 = vrot.slane %v880_v63, %v2882_v33 }
 0x187   : > { %v895_v14 = vcombine.high %v887_v60, %v887_v60  ;;  %v1580_v5 = vsel %vm1399_vm3, %v887_v60, -inf  ;;  %v1166_v41 = vrot.slane %v1152_v8, %v2882_v33  ;;  %v1167_v18 = vcombine.high %v1159_v10, %v1159_v10 }
 0x188   : > { %v1202_v19 = vcombine.high %v1200_v45, %v1200_v45  ;;  %v1878_v11 = vsel %vm1399_vm3, %v1201_v15, -inf  ;;  %v1887_v23 = vsel %vm1399_vm3, %v1200_v45, -inf  ;;  %v896_v42 = vcombine.high %v894_v17, %v894_v17 }
 0x189   : > { %v1582_v49 = vmax.f32 %v1580_v5, %v1581_v20  ;;  %v1589_v28 = vsel %vm1399_vm3, %v895_v14, -inf  ;;  %v1598_v30 = vsel %vm1399_vm3, %v894_v17, -inf  ;;  %v1168_v21 = vcombine.high %v1166_v41, %v1166_v41 }
 0x18a   : > { %v1896_v31 = vsel %vm1399_vm3, %v1202_v19, -inf  ;;  %v1591_v35 = vmax.f32 %v1589_v28, %v1590_v50  ;;  %v1600_v32 = vmax.f32 %v1598_v30, %v1599_v40  ;;  %v1607_v24 = vsel %vm1399_vm3, %v896_v42, -inf }
 0x18b   : > { %v1583_v34 = vrot.slane %v1582_v49, 4  ;;  %v1609_v26 = vmax.f32 %v1607_v24, %v1608_v56  ;;  %v1868_v9 = vsel %vm1399_vm3, %v1159_v10, -inf  ;;  %v1877_v37 = vsel %vm1399_vm3, %v1167_v18, -inf }
 0x18c   : > { %v1592_v27 = vrot.slane %v1591_v35, 4  ;;  %v1601_v38 = vrot.slane %v1600_v32, 4  ;;  %v1870_v20 = vmax.f32 %v1868_v9, %v1869_v16  ;;  %v1879_v39 = vmax.f32 %v1877_v37, %v1878_v11 }
 0x18d   : > { %v1584_v54 = vmax.f32 %v1582_v49, %v1583_v34  ;;  %v1610_v36 = vrot.slane %v1609_v26, 4  ;;  %v1886_v47 = vsel %vm1399_vm3, %v1166_v41, -inf  ;;  %v1895_v46 = vsel %vm1399_vm3, %v1168_v21, -inf }
 0x18e   : > { %v1593_v48 = vmax.f32 %v1591_v35, %v1592_v27  ;;  %v1602_v40 = vmax.f32 %v1600_v32, %v1601_v38  ;;  %v1871_v50 = vrot.slane %v1870_v20, 4  ;;  %v1880_v22 = vrot.slane %v1879_v39, 4 }
 0x18f   : > { %v1585_v29 = vrot.slane %v1584_v54, 2  ;;  %v1611_v56 = vmax.f32 %v1609_v26, %v1610_v36  ;;  %v1888_v57 = vmax.f32 %v1886_v47, %v1887_v23  ;;  %v1897_v25 = vmax.f32 %v1895_v46, %v1896_v31 }
 0x190   : > { %v1594_v52 = vrot.slane %v1593_v48, 2  ;;  %v1603_v53 = vrot.slane %v1602_v40, 2  ;;  %v1872_v55 = vmax.f32 %v1870_v20, %v1871_v50  ;;  %v1881_v58 = vmax.f32 %v1879_v39, %v1880_v22 }
 0x191   : > { %v1586_v59 = vmax.f32 %v1584_v54, %v1585_v29  ;;  %v1612_v43 = vrot.slane %v1611_v56, 2  ;;  %v1889_v0 = vrot.slane %v1888_v57, 4  ;;  %v1898_v1 = vrot.slane %v1897_v25, 4 }
 0x192   : > { %v1595_v2 = vmax.f32 %v1593_v48, %v1594_v52  ;;  %v1604_v6 = vmax.f32 %v1602_v40, %v1603_v53  ;;  %v1873_v7 = vrot.slane %v1872_v55, 2  ;;  %v1882_v63 = vrot.slane %v1881_v58, 2  ;;  %v2688_v53 = vpop.f32.mrf.mxu0 }
 0x193   : > { %v1587_v60 = vrot.slane %v1586_v59, 1  ;;  %v1613_v8 = vmax.f32 %v1611_v56, %v1612_v43  ;;  %v1890_v10 = vmax.f32 %v1888_v57, %v1889_v0  ;;  %v1899_v45 = vmax.f32 %v1897_v25, %v1898_v1 }
 0x194   : > { %v1596_v15 = vrot.slane %v1595_v2, 1  ;;  %v1605_v16 = vrot.slane %v1604_v6, 1  ;;  %v1874_v17 = vmax.f32 %v1872_v55, %v1873_v7  ;;  %v1883_v14 = vmax.f32 %v1881_v58, %v1882_v63 }
 0x195   : > { %v1588_v5 = vmax.f32 %v1586_v59, %v1587_v60  ;;  %v1614_v41 = vrot.slane %v1613_v8, 1  ;;  %v1891_v18 = vrot.slane %v1890_v10, 2  ;;  %v1900_v19 = vrot.slane %v1899_v45, 2 }
 0x196   : > { %v1597_v11 = vmax.f32 %v1595_v2, %v1596_v15  ;;  %v1606_v23 = vmax.f32 %v1604_v6, %v1605_v16  ;;  %v1875_v42 = vrot.slane %v1874_v17, 1  ;;  %v1884_v49 = vrot.slane %v1883_v14, 1 }
 0x197   : > { %v1615_v28 = vmax.f32 %v1613_v8, %v1614_v41  ;;  %v2607_v30 = vpack.c.bf16 %v1588_v5, %v1588_v5  ;;  %v1892_v21 = vmax.f32 %v1890_v10, %v1891_v18  ;;  %v1901_v31 = vmax.f32 %v1899_v45, %v1900_v19 }
 0x198   : > { %v2608_v35 = vpack.c.bf16 %v1597_v11, %v1597_v11  ;;  %v2609_v32 = vpack.c.bf16 %v1606_v23, %v1606_v23  ;;  %v1876_v24 = vmax.f32 %v1874_v17, %v1875_v42  ;;  %v1885_v34 = vmax.f32 %v1883_v14, %v1884_v49 }
 0x199   : > { %v2610_v26 = vpack.c.bf16 %v1615_v28, %v1615_v28  ;;  %v2252_v9 = vunpack.c.l.b16 %v2607_v30  ;;  %v1893_v37 = vrot.slane %v1892_v21, 1  ;;  %v1902_v27 = vrot.slane %v1901_v31, 1 }
 0x19a   : > { %v2253_v38 = vunpack.c.l.b16 %v2608_v35  ;;  %v2254_v20 = vunpack.c.l.b16 %v2609_v32  ;;  %v2639_v39 = vpack.c.bf16 %v1876_v24, %v1876_v24  ;;  %v2640_v54 = vpack.c.bf16 %v1885_v34, %v1885_v34 }
 0x19b   : > { %v2255_v36 = vunpack.c.l.b16 %v2610_v26  ;;  %v2320_v47 = vsel %vm2302_vm7, %v2252_v9, %v3183_v51  ;;  %v1894_v46 = vmax.f32 %v1892_v21, %v1893_v37  ;;  %v1903_v48 = vmax.f32 %v1901_v31, %v1902_v27 }
 0x19c   : > { %v2321_v40 = vsel %vm2304_vm8, %v2253_v38, %v2320_v47  ;;  %v2284_v50 = vunpack.c.l.b16 %v2639_v39  ;;  %v2285_v22 = vunpack.c.l.b16 %v2640_v54  ;;  %v965_v29 = vcombine.high %v3208_v12, %v3208_v12 }
 0x19d   : > { %v2322_v56 = vsel %vm2306_vm9, %v2254_v20, %v2321_v40  ;;  %v2641_v57 = vpack.c.bf16 %v1894_v46, %v1894_v46  ;;  %v2642_v25 = vpack.c.bf16 %v1903_v48, %v1903_v48  ;;  %v972_v52 = vrot.slane %v3208_v12, %v2882_v33 }
 0x19e   : > { %v2323_v51 = vsel %vm2308_vm10, %v2255_v36, %v2322_v56  ;;  %v2348_v55 = vsel %vm2302_vm7, %v2284_v50, %v3195_v61  ;;  %v979_v58 = vrot.slane %v965_v29, %v2882_v33  ;;  %v1237_v59 = vcombine.high %v3210_v13, %v3210_v13 }
 0x19f   : > { %v2361_v43 = vpack.c.b16 %v2323_v51, %v2323_v51  ;;  %v2286_v0 = vunpack.c.l.b16 %v2641_v57  ;;  %v2287_v1 = vunpack.c.l.b16 %v2642_v25  ;;  %v2349_v2 = vsel %vm2304_vm8, %v2285_v22, %v2348_v55 }
 0x1a0   : > { %v980_v6 = vcombine.high %v972_v52, %v972_v52  ;;  %v981_v7 = vcombine.high %v979_v58, %v979_v58  ;;  %v1617_v12 = vsel %vm1399_vm3, %v972_v52, -inf  ;;  %v607_v63 = vmul.f32 %v3176_v62, %v2688_v53 }
 0x1a1   : > { %2378 = vst.msk [vmem:[%s3001_s8 + $0x8] sm:$0xf] %vm2375_vm11, %v2361_v43  ;;  %v2350_v61 = vsel %vm2306_vm9, %v2286_v0, %v2349_v2  ;;  %v1244_v60 = vrot.slane %v3210_v13, %v2882_v33  ;;  %v1251_v8 = vrot.slane %v1237_v59, %v2882_v33  ;;  %v675_v10 = vmax.f32 %v3200_v3, 0.0 }
 0x1a2   : > { %v2351_v45 = vsel %vm2308_vm10, %v2287_v1, %v2350_v61  ;;  %v1626_v15 = vsel %vm1399_vm3, %v980_v6, -inf  ;;  %v1635_v16 = vsel %vm1399_vm3, %v979_v58, -inf  ;;  %v691_v17 = vmax.f32 %v3203_v4, 0.0 }
 0x1a3   : > { %v2365_v14 = vpack.c.b16 %v2351_v45, %v2351_v45  ;;  %v1644_v5 = vsel %vm1399_vm3, %v981_v7, -inf  ;;  %v1252_v41 = vcombine.high %v1244_v60, %v1244_v60  ;;  %v1253_v18 = vcombine.high %v1251_v8, %v1251_v8 }
 0x1a4   : > { %v1905_v19 = vsel %vm1399_vm3, %v1244_v60, -inf  ;;  %v931_v13 = vcombine.high %v675_v10, %v675_v10  ;;  %v938_v11 = vrot.slane %v675_v10, %v2882_v33  ;;  %v1203_v23 = vcombine.high %v691_v17, %v691_v17 }
 0x1a5   : > { %2382 = vst.msk [vmem:[%s3001_s8 + $0x18] sm:$0xf] %vm2375_vm11, %v2365_v14  ;;  %v1914_v3 = vsel %vm1399_vm3, %v1252_v41, -inf  ;;  %v1923_v42 = vsel %vm1399_vm3, %v1251_v8, -inf  ;;  %v1932_v49 = vsel %vm1399_vm3, %v1253_v18, -inf  ;;  %v1210_v4 = vrot.slane %v691_v17, %v2882_v33 }
 0x1a6   : > { %v945_v28 = vrot.slane %v931_v13, %v2882_v33  ;;  %v946_v30 = vcombine.high %v938_v11, %v938_v11  ;;  %v1616_v21 = vsel %vm1399_vm3, %v938_v11, -inf  ;;  %v1217_v31 = vrot.slane %v1203_v23, %v2882_v33 }
 0x1a7   : > { %v1618_v35 = vmax.f32 %v1616_v21, %v1617_v12  ;;  %v1218_v32 = vcombine.high %v1210_v4, %v1210_v4  ;;  %v1904_v24 = vsel %vm1399_vm3, %v1210_v4, -inf  ;;  %v646_v34 = vadd.f32 %v3147_v44, %v607_v63 }
 0x1a8   : > { %v947_v26 = vcombine.high %v945_v28, %v945_v28  ;;  %v1625_v9 = vsel %vm1399_vm3, %v946_v30, -inf  ;;  %v1634_v37 = vsel %vm1399_vm3, %v945_v28, -inf  ;;  %v1219_v27 = vcombine.high %v1217_v31, %v1217_v31 }
 0x1a9   : > { %v1619_v38 = vrot.slane %v1618_v35, 4  ;;  %v1627_v20 = vmax.f32 %v1625_v9, %v1626_v15  ;;  %v1636_v39 = vmax.f32 %v1634_v37, %v1635_v16  ;;  %v1906_v54 = vmax.f32 %v1904_v24, %v1905_v19 }
 0x1aa   : > { %v1643_v36 = vsel %vm1399_vm3, %v947_v26, -inf  ;;  %v1913_v47 = vsel %vm1399_vm3, %v1218_v32, -inf  ;;  %v1922_v46 = vsel %vm1399_vm3, %v1217_v31, -inf  ;;  %v1931_v48 = vsel %vm1399_vm3, %v1219_v27, -inf }
 0x1ab   : > { %v1620_v40 = vmax.f32 %v1618_v35, %v1619_v38  ;;  %v1628_v50 = vrot.slane %v1627_v20, 4  ;;  %v1637_v22 = vrot.slane %v1636_v39, 4  ;;  %v1645_v29 = vmax.f32 %v1643_v36, %v1644_v5 }
 0x1ac   : > { %v1907_v56 = vrot.slane %v1906_v54, 4  ;;  %v1915_v57 = vmax.f32 %v1913_v47, %v1914_v3  ;;  %v1924_v25 = vmax.f32 %v1922_v46, %v1923_v42  ;;  %v1933_v52 = vmax.f32 %v1931_v48, %v1932_v49 }
 0x1ad   : > { %v1621_v53 = vrot.slane %v1620_v40, 2  ;;  %v1629_v51 = vmax.f32 %v1627_v20, %v1628_v50  ;;  %v1638_v55 = vmax.f32 %v1636_v39, %v1637_v22  ;;  %v1646_v58 = vrot.slane %v1645_v29, 4  ;;  %v2704_v39 = vpop.f32.mrf.mxu1 }
 0x1ae   : > { %v1908_v59 = vmax.f32 %v1906_v54, %v1907_v56  ;;  %v1916_v43 = vrot.slane %v1915_v57, 4  ;;  %v1925_v0 = vrot.slane %v1924_v25, 4  ;;  %v1934_v1 = vrot.slane %v1933_v52, 4 }
 0x1af   : > { %v1622_v2 = vmax.f32 %v1620_v40, %v1621_v53  ;;  %v1630_v6 = vrot.slane %v1629_v51, 2  ;;  %v1639_v7 = vrot.slane %v1638_v55, 2  ;;  %v1647_v12 = vmax.f32 %v1645_v29, %v1646_v58  ;;  %v509_v29 = vpop.f32.mrf.mxu0 }
 0x1b0   : > { %v1909_v63 = vrot.slane %v1908_v59, 2  ;;  %v1917_v61 = vmax.f32 %v1915_v57, %v1916_v43  ;;  %v1926_v60 = vmax.f32 %v1924_v25, %v1925_v0  ;;  %v1935_v8 = vmax.f32 %v1933_v52, %v1934_v1  ;;  %v573_v25 = vpop.f32.mrf.mxu1 }
 0x1b1   : > { %v1623_v10 = vrot.slane %v1622_v2, 1  ;;  %v1631_v45 = vmax.f32 %v1629_v51, %v1630_v6  ;;  %v1640_v15 = vmax.f32 %v1638_v55, %v1639_v7  ;;  %v1648_v16 = vrot.slane %v1647_v12, 2 }
 0x1b2   : > { %v1910_v17 = vmax.f32 %v1908_v59, %v1909_v63  ;;  %v1918_v14 = vrot.slane %v1917_v61, 2  ;;  %v1927_v5 = vrot.slane %v1926_v60, 2  ;;  %v1936_v41 = vrot.slane %v1935_v8, 2 }
 0x1b3   : > { %v1624_v18 = vmax.f32 %v1622_v2, %v1623_v10  ;;  %v1632_v19 = vrot.slane %v1631_v45, 1  ;;  %v1641_v13 = vrot.slane %v1640_v15, 1  ;;  %v1649_v11 = vmax.f32 %v1647_v12, %v1648_v16 }
 0x1b4   : > { %v1911_v23 = vrot.slane %v1910_v17, 1  ;;  %v1919_v3 = vmax.f32 %v1917_v61, %v1918_v14  ;;  %v1928_v42 = vmax.f32 %v1926_v60, %v1927_v5  ;;  %v1937_v49 = vmax.f32 %v1935_v8, %v1936_v41 }
 0x1b5   : > { %v1633_v4 = vmax.f32 %v1631_v45, %v1632_v19  ;;  %v1642_v28 = vmax.f32 %v1640_v15, %v1641_v13  ;;  %v1650_v30 = vrot.slane %v1649_v11, 1  ;;  %v678_v21 = vmax.f32 %v646_v34, 0.0 }
 0x1b6   : > { %v1912_v31 = vmax.f32 %v1910_v17, %v1911_v23  ;;  %v1920_v35 = vrot.slane %v1919_v3, 1  ;;  %v1929_v32 = vrot.slane %v1928_v42, 1  ;;  %v1938_v24 = vrot.slane %v1937_v49, 1 }
 0x1b7   : > { %v1651_v26 = vmax.f32 %v1649_v11, %v1650_v30  ;;  %v2611_v9 = vpack.c.bf16 %v1624_v18, %v1624_v18  ;;  %v2612_v37 = vpack.c.bf16 %v1633_v4, %v1633_v4  ;;  %v2613_v27 = vpack.c.bf16 %v1642_v28, %v1642_v28 }
 0x1b8   : > { %v1921_v38 = vmax.f32 %v1919_v3, %v1920_v35  ;;  %v1930_v20 = vmax.f32 %v1928_v42, %v1929_v32  ;;  %v1939_v36 = vmax.f32 %v1937_v49, %v1938_v24  ;;  %v2643_v47 = vpack.c.bf16 %v1912_v31, %v1912_v31 }
 0x1b9   : > { %v2257_v54 = vunpack.c.l.b16 %v2612_v37  ;;  %v982_v46 = vcombine.high %v678_v21, %v678_v21  ;;  %v2614_v50 = vpack.c.bf16 %v1651_v26, %v1651_v26  ;;  %v2256_v22 = vunpack.c.l.b16 %v2611_v9 }
 0x1ba   : > { %v2644_v48 = vpack.c.bf16 %v1921_v38, %v1921_v38  ;;  %v2645_v40 = vpack.c.bf16 %v1930_v20, %v1930_v20  ;;  %v989_v34 = vrot.slane %v678_v21, %v2882_v33  ;;  %v2258_v56 = vunpack.c.l.b16 %v2613_v27 }
 0x1bb   : > { %v2324_v52 = vsel %vm2296_vm4, %v2257_v54, %v2256_v22  ;;  %v2646_v53 = vpack.c.bf16 %v1939_v36, %v1939_v36  ;;  %v2288_v51 = vunpack.c.l.b16 %v2643_v47  ;;  %v996_v55 = vrot.slane %v982_v46, %v2882_v33 }
 0x1bc   : > { %v2289_v57 = vunpack.c.l.b16 %v2644_v48  ;;  %v2290_v58 = vunpack.c.l.b16 %v2645_v40  ;;  %v623_v59 = vmul.f32 %v3176_v62, %v2704_v39  ;;  %v605_v43 = vmul.f32 %v3176_v62, %v509_v29 }
 0x1bd   : > { %v2259_v0 = vunpack.c.l.b16 %v2614_v50  ;;  %v997_v2 = vcombine.high %v989_v34, %v989_v34  ;;  %v621_v6 = vmul.f32 %v3176_v62, %v573_v25  ;;  %v2325_v7 = vsel %vm2298_vm5, %v2258_v56, %v2324_v52 }
 0x1be   : > { %v2352_v1 = vsel %vm2296_vm4, %v2289_v57, %v2288_v51  ;;  %v662_v12 = vadd.f32 %v3147_v44, %v623_v59  ;;  %v644_v63 = vadd.f32 %v3147_v44, %v605_v43  ;;  %v2291_v61 = vunpack.c.l.b16 %v2646_v53 }
 0x1bf   : > { %v998_v60 = vcombine.high %v996_v55, %v996_v55  ;;  %v660_v8 = vadd.f32 %v3147_v44, %v621_v6  ;;  %v2353_v10 = vsel %vm2298_vm5, %v2290_v58, %v2352_v1  ;;  %v1653_v45 = vsel %vm1399_vm3, %v989_v34, -inf }
 0x1c0   : > { %v694_v15 = vmax.f32 %v662_v12, 0.0  ;;  %v676_v16 = vmax.f32 %v644_v63, 0.0  ;;  %v1662_v17 = vsel %vm1399_vm3, %v997_v2, -inf  ;;  %v1671_v62 = vsel %vm1399_vm3, %v996_v55, -inf }
 0x1c1   : > { %v3291_v14 = vsel %vm2300_vm6, %v2259_v0, %v2325_v7  ;;  %v692_v5 = vmax.f32 %v660_v8, 0.0  ;;  %v1680_v13 = vsel %vm1399_vm3, %v998_v60, -inf  ;;  %v3298_v3 = vsel %vm2300_vm6, %v2291_v61, %v2353_v10 }
 0x1c2   : > { %v1254_v41 = vcombine.high %v694_v15, %v694_v15  ;;  %v1261_v18 = vrot.slane %v694_v15, %v2882_v33  ;;  %v948_v19 = vcombine.high %v676_v16, %v676_v16  ;;  %v955_v44 = vrot.slane %v676_v16, %v2882_v33 }
 0x1c3   : > { %v1220_v11 = vcombine.high %v692_v5, %v692_v5  ;;  %v1227_v23 = vrot.slane %v692_v5, %v2882_v33 }
 0x1c4   : > { %v1268_v42 = vrot.slane %v1254_v41, %v2882_v33  ;;  %v1269_v49 = vcombine.high %v1261_v18, %v1261_v18  ;;  %v1941_v4 = vsel %vm1399_vm3, %v1261_v18, -inf  ;;  %v962_v28 = vrot.slane %v948_v19, %v2882_v33 }
 0x1c5   : > { %v963_v30 = vcombine.high %v955_v44, %v955_v44  ;;  %v1652_v21 = vsel %vm1399_vm3, %v955_v44, -inf  ;;  %v1234_v31 = vrot.slane %v1220_v11, %v2882_v33  ;;  %v1235_v35 = vcombine.high %v1227_v23, %v1227_v23 }
 0x1c6   : > { %v1270_v32 = vcombine.high %v1268_v42, %v1268_v42  ;;  %v1950_v24 = vsel %vm1399_vm3, %v1269_v49, -inf  ;;  %v1959_v26 = vsel %vm1399_vm3, %v1268_v42, -inf  ;;  %v964_v9 = vcombine.high %v962_v28, %v962_v28 }
 0x1c7   : > { %v1654_v37 = vmax.f32 %v1652_v21, %v1653_v45  ;;  %v1661_v27 = vsel %vm1399_vm3, %v963_v30, -inf  ;;  %v1670_v38 = vsel %vm1399_vm3, %v962_v28, -inf  ;;  %v1236_v20 = vcombine.high %v1234_v31, %v1234_v31 }
 0x1c8   : > { %v1968_v39 = vsel %vm1399_vm3, %v1270_v32, -inf  ;;  %v1663_v54 = vmax.f32 %v1661_v27, %v1662_v17  ;;  %v1672_v36 = vmax.f32 %v1670_v38, %v1671_v62  ;;  %v1679_v47 = vsel %vm1399_vm3, %v964_v9, -inf }
 0x1c9   : > { %v1655_v33 = vrot.slane %v1654_v37, 4  ;;  %v1681_v46 = vmax.f32 %v1679_v47, %v1680_v13  ;;  %v1940_v48 = vsel %vm1399_vm3, %v1227_v23, -inf  ;;  %v1949_v40 = vsel %vm1399_vm3, %v1235_v35, -inf }
 0x1ca   : > { %v1664_v50 = vrot.slane %v1663_v54, 4  ;;  %v1673_v22 = vrot.slane %v1672_v36, 4  ;;  %v1942_v34 = vmax.f32 %v1940_v48, %v1941_v4  ;;  %v1951_v29 = vmax.f32 %v1949_v40, %v1950_v24 }
 0x1cb   : > { %v1656_v56 = vmax.f32 %v1654_v37, %v1655_v33  ;;  %v1682_v57 = vrot.slane %v1681_v46, 4  ;;  %v1958_v25 = vsel %vm1399_vm3, %v1234_v31, -inf  ;;  %v1967_v52 = vsel %vm1399_vm3, %v1236_v20, -inf }
 0x1cc   : > { %v1665_v53 = vmax.f32 %v1663_v54, %v1664_v50  ;;  %v1674_v51 = vmax.f32 %v1672_v36, %v1673_v22  ;;  %v1943_v55 = vrot.slane %v1942_v34, 4  ;;  %v1952_v58 = vrot.slane %v1951_v29, 4 }
 0x1cd   : > { %v1657_v59 = vrot.slane %v1656_v56, 2  ;;  %v1683_v43 = vmax.f32 %v1681_v46, %v1682_v57  ;;  %v1960_v0 = vmax.f32 %v1958_v25, %v1959_v26  ;;  %v1969_v1 = vmax.f32 %v1967_v52, %v1968_v39 }
 0x1ce   : > { %v1666_v2 = vrot.slane %v1665_v53, 2  ;;  %v1675_v6 = vrot.slane %v1674_v51, 2  ;;  %v1944_v7 = vmax.f32 %v1942_v34, %v1943_v55  ;;  %v1953_v12 = vmax.f32 %v1951_v29, %v1952_v58 }
 0x1cf   : > { %v1658_v63 = vmax.f32 %v1656_v56, %v1657_v59  ;;  %v1684_v61 = vrot.slane %v1683_v43, 2  ;;  %v1961_v60 = vrot.slane %v1960_v0, 4  ;;  %v1970_v8 = vrot.slane %v1969_v1, 4 }
 0x1d0   : > { %v1667_v10 = vmax.f32 %v1665_v53, %v1666_v2  ;;  %v1676_v45 = vmax.f32 %v1674_v51, %v1675_v6  ;;  %v1945_v15 = vrot.slane %v1944_v7, 2  ;;  %v1954_v16 = vrot.slane %v1953_v12, 2 }
 0x1d1   : > { %v1659_v17 = vrot.slane %v1658_v63, 1  ;;  %v1685_v62 = vmax.f32 %v1683_v43, %v1684_v61  ;;  %v1962_v5 = vmax.f32 %v1960_v0, %v1961_v60  ;;  %v1971_v41 = vmax.f32 %v1969_v1, %v1970_v8 }
 0x1d2   : > { %v1668_v18 = vrot.slane %v1667_v10, 1  ;;  %v1677_v19 = vrot.slane %v1676_v45, 1  ;;  %v1946_v44 = vmax.f32 %v1944_v7, %v1945_v15  ;;  %v1955_v13 = vmax.f32 %v1953_v12, %v1954_v16 }
 0x1d3   : > { %v1660_v11 = vmax.f32 %v1658_v63, %v1659_v17  ;;  %v1686_v23 = vrot.slane %v1685_v62, 1  ;;  %v1963_v42 = vrot.slane %v1962_v5, 2  ;;  %v1972_v49 = vrot.slane %v1971_v41, 2 }
 0x1d4   : > { %v1669_v4 = vmax.f32 %v1667_v10, %v1668_v18  ;;  %v1678_v28 = vmax.f32 %v1676_v45, %v1677_v19  ;;  %v1947_v30 = vrot.slane %v1946_v44, 1  ;;  %v1956_v21 = vrot.slane %v1955_v13, 1 }
 0x1d5   : > { %v1687_v31 = vmax.f32 %v1685_v62, %v1686_v23  ;;  %v2615_v35 = vpack.c.bf16 %v1660_v11, %v1660_v11  ;;  %v1964_v32 = vmax.f32 %v1962_v5, %v1963_v42  ;;  %v1973_v24 = vmax.f32 %v1971_v41, %v1972_v49 }
 0x1d6   : > { %v2616_v26 = vpack.c.bf16 %v1669_v4, %v1669_v4  ;;  %v2617_v9 = vpack.c.bf16 %v1678_v28, %v1678_v28  ;;  %v1948_v37 = vmax.f32 %v1946_v44, %v1947_v30  ;;  %v1957_v27 = vmax.f32 %v1955_v13, %v1956_v21 }
 0x1d7   : > { %v2618_v38 = vpack.c.bf16 %v1687_v31, %v1687_v31  ;;  %v2260_v20 = vunpack.c.l.b16 %v2615_v35  ;;  %v1965_v39 = vrot.slane %v1964_v32, 1  ;;  %v1974_v54 = vrot.slane %v1973_v24, 1 }
 0x1d8   : > { %v2261_v36 = vunpack.c.l.b16 %v2616_v26  ;;  %v2262_v47 = vunpack.c.l.b16 %v2617_v9  ;;  %v2647_v33 = vpack.c.bf16 %v1948_v37, %v1948_v37  ;;  %v2648_v46 = vpack.c.bf16 %v1957_v27, %v1957_v27 }
 0x1d9   : > { %v2263_v48 = vunpack.c.l.b16 %v2618_v38  ;;  %v2327_v40 = vsel %vm2302_vm7, %v2260_v20, %v3291_v14  ;;  %v1966_v50 = vmax.f32 %v1964_v32, %v1965_v39  ;;  %v1975_v22 = vmax.f32 %v1973_v24, %v1974_v54 }
 0x1da   : > { %v2328_v34 = vsel %vm2304_vm8, %v2261_v36, %v2327_v40  ;;  %v2292_v29 = vunpack.c.l.b16 %v2647_v33  ;;  %v2293_v56 = vunpack.c.l.b16 %v2648_v46 }
 0x1db   : > { %v2329_v57 = vsel %vm2306_vm9, %v2262_v47, %v2328_v34  ;;  %v2649_v25 = vpack.c.bf16 %v1966_v50, %v1966_v50  ;;  %v2650_v52 = vpack.c.bf16 %v1975_v22, %v1975_v22 }
 0x1dc   : > { %v2330_v53 = vsel %vm2308_vm10, %v2263_v48, %v2329_v57  ;;  %v2355_v51 = vsel %vm2302_vm7, %v2292_v29, %v3298_v3 }
 0x1dd   : > { %v2362_v55 = vpack.c.b16 %v2330_v53, %v2330_v53  ;;  %v2294_v58 = vunpack.c.l.b16 %v2649_v25  ;;  %v2295_v59 = vunpack.c.l.b16 %v2650_v52  ;;  %v2356_v14 = vsel %vm2304_vm8, %v2293_v56, %v2355_v51 }
 0x1df   : > { %2379 = vst.msk [vmem:[%s3001_s8 + $0xc] sm:$0xf] %vm2375_vm11, %v2362_v55  ;;  %v2357_v43 = vsel %vm2306_vm9, %v2294_v58, %v2356_v14 }
 0x1e0   : > { %v2358_v0 = vsel %vm2308_vm10, %v2295_v59, %v2357_v43 }
 0x1e1   : > { %v2366_v1 = vpack.c.b16 %v2358_v0, %v2358_v0 }
 0x1e3   : > { %2383 = vst.msk [vmem:[%s3001_s8 + $0x1c] sm:$0xf] %vm2375_vm11, %v2366_v1 }
 0x1e4 PF: > { %s14_s17 = sadd.s32 1, %s2777_s17   ;;  %s3343_s15 = smov %s2773_s16 }
 0x1e5   : > { %p11_p5 = scmp.ge.s32.totalorder %s14_s17, 4   ;;  %s3344_s16 = smov %s3346_s18 }
 0x1e7   :  { %13 = sbr.rel (!%p11_p5) target bundleno = 2 (0x2), region = 66 }

// kernel: plate_model_forward.5
= control target key start
LH: loop header
LB: loop body
LE: loop exit
PB: predicated region body
PF: predicated region fallthrough
CT: control target
= control target key end

     0   :  { %s2929_s18 = smov 0   ;;  %s2931_s19 = smov 0   ;;  %s3571_s0 = inlined_call_operand.vmem [shape: bf16[2,10,10,64], index: 0, kind: input, shape index: {}, may-alias: {0,1}]   ;;  %s3572_s1 = inlined_call_operand.vmem [shape: bf16[2,10,10,64], index: 1, kind: input, shape index: {}, may-alias: {0,1}]   ;;  %s3573_s2 = inlined_call_operand.vmem [shape: bf16[576,128], index: 2, kind: input, shape index: {}]   ;;  %s3574_s3 = inlined_call_operand.vmem [shape: f32[1,128], index: 3, kind: input, shape index: {}]   ;;  %s3575_s4 = inlined_call_operand.vmem [shape: f32[1,128], index: 4, kind: input, shape index: {}]   ;;  %s3576_s5 = inlined_call_operand.vmem [shape: bf16[2,4,4,128], index: 5, kind: output, shape index: {}]  }
   0x1   :  { %s2933_s20 = smov 0  }
   0x2 LB: > { %s27_s21 = sadd.s32 1, %s2892_s19  ;;  %p2453_p0 = scmp.ge.s32.totalorder %s2896_s20, 1  ;;  %s2896_s20 = sphi %s2933_s20, %s15_s20   ;;  %s2892_s19 = sphi %s2931_s19, %s3582_s19   ;;  %s2888_s18 = sphi %s2929_s18, %s3581_s18  }
   0x3   : > { %p29_p1 = scmp.ge.s32.totalorder %s27_s21, 2  ;;  %p245_p2 = scmp.lt.s32.totalorder %s2896_s20, 3 }
   0x5   : > { %s3584_s21 = smov (%p29_p1, %s27_s21), 0  ;;  %p246_p3 = pnand %p2453_p0, %p245_p2 }
   0x6   : > { %p305_p4 = scmp.lt.s32.totalorder (!%p246_p3), %s2888_s18, 1 }
   0x7   : > { %249 = sbr.rel (%p246_p3) target bundleno = 384 (0x180), region = 40 }
   0xc   : > { %v2830_v0 = vld [vmem:[%s3573_s2 + $0x38] sm:$0xff]   ;;  %v2832_v2 = vld [vmem:[%s3573_s2 + $0x30] sm:$0xff]   ;;  %s3586_s18 = smov (!%p305_p4, %s2888_s18), 1  ;;  %v2834_v4 = vld [vmem:[%s3573_s2 + $0x28] sm:$0xff]   ;;  %vm533_vm0 = vcmask 523264   ;;  %vm740_vm4 = vcmask 1042432  }
   0xd   : > { %v2831_v1 = vld [vmem:[%s3573_s2 + $0x18] sm:$0xff]   ;;  %2650 = vmatprep.subr.bf16.mxu0 %v2830_v0  ;;  %v2833_v3 = vld [vmem:[%s3573_s2 + $0x10] sm:$0xff]   ;;  %s2802_s7 = smul.u32 80, %s3586_s18  ;;  %v2835_v5 = vld [vmem:[%s3573_s2 + $0x8] sm:$0xff]   ;;  %vm374_vm1 = vsmask.f32 3328 }
   0xe   : > { %2666 = vmatprep.subr.bf16.mxu1 %v2831_v1  ;;  %2651 = vmatpush3.bf16.msra.mxu0 %v2830_v0  ;;  %v2836_v6 = vld [vmem:[%s3573_s2 + $0x20] sm:$0xff]   ;;  %v3015_v20 = vld [vmem:[%s3573_s2 + $0x58] sm:$0xff]   ;;  %vm375_vm2 = vsmask.f32 7440  ;;  %vm741_vm5 = vcmask 1046532   ;;  %v2843_v59 = vld [vmem:[%s3573_s2 + $0x70] sm:$0xff]  }
   0xf   : > { %2667 = vmatpush3.bf16.msra.mxu1 %v2831_v1  ;;  %2652 = vmatprep.subr.bf16.mxu0 %v2832_v2  ;;  %s2973_s12 = scalar_lea.vmem %s3571_s0, %s2802_s7  ;;  %v2837_v9 = vld [vmem:[%s3573_s2] sm:$0xff]   ;;  %v2841_v33 = vld [vmem:[%s3573_s2 + $0x78] sm:$0xff]   ;;  %vm3038_vm3 = vmor %vm374_vm1, %vm375_vm2  ;;  %s2576_s13 = sadd.s32 64, %s2802_s7  ;;  %vm1854_vm7 = vcmask 1041408   ;;  %vm2272_vm8 = vcmask 1041409   ;;  %vm2275_vm9 = vcmask 1042434  }
  0x10   : > { %2668 = vmatprep.subr.bf16.mxu1 %v2833_v3  ;;  %v2979_v7 = vld [vmem:[%s2973_s12] sm:$0xf]  ;;  %v2982_v8 = vld [vmem:[%s2973_s12 + $0x8] sm:$0xf]  ;;  %v2992_v13 = vld [vmem:[%s2973_s12 + $0x4] sm:$0x1]  ;;  %s3193_s25 = scalar_lea.vmem %s3572_s1, %s2576_s13 }
  0x11   : > { %v378_v10 = vshrl.u32 %v2979_v7, 16  ;;  %v381_v11 = vshll.u32 %v2979_v7, 16  ;;  %v2470_v12 = vcombine.low %v2979_v7, %v2982_v8  ;;  %v2995_v14 = vld [vmem:[%s2973_s12 + $0xc] sm:$0x1]  ;;  %v2998_v15 = vld [vmem:[%s2973_s12 + $0x10] sm:$0xf]  ;;  %vm3133_vm6 = vmor %vm740_vm4, %vm741_vm5 }
  0x12   : > { %2653 = vmatpush3.bf16.msra.mxu0 %v2832_v2  ;;  %v3001_v16 = vld [vmem:[%s2973_s12 + $0x18] sm:$0xf]  ;;  %v2482_v17 = vrot.slane %v2979_v7, 9  ;;  %v3006_v18 = vld [vmem:[%s2973_s12 + $0x14] sm:$0x1]  ;;  %v387_v25 = vshll.u32 %v2992_v13, 16 }
  0x13   : > { %2669 = vmatpush3.bf16.msra.mxu1 %v2833_v3  ;;  %2654 = vmatprep.subr.bf16.mxu0 %v2834_v4  ;;  %v3010_v19 = vcombine.low %v2998_v15, %v3001_v16  ;;  %v3018_v21 = vld [vmem:[%s2973_s12 + $0x1c] sm:$0x1]  ;;  %v380_v22 = vrot.slane %v378_v10, 4  ;;  %v383_v23 = vrot.slane %v381_v11, 5  ;;  %v3021_v24 = vld [vmem:[%s2973_s12 + $0x20] sm:$0xf] }
  0x14   : > { %2670 = vmatprep.subr.bf16.mxu1 %v2835_v5  ;;  %2674 = vmatprep.mubr.msk.bf16.mxu1 %vm533_vm0, %v2470_v12  ;;  %v392_v26 = vshrl.u32 %v2982_v8, 16  ;;  %v395_v27 = vshll.u32 %v2982_v8, 16  ;;  %v401_v28 = vshll.u32 %v2995_v14, 16  ;;  %v406_v30 = vshrl.u32 %v2998_v15, 16  ;;  %v3034_v34 = vld [vmem:[%s2973_s12 + $0x24] sm:$0x1] }
  0x15   : > { %v384_v29 = vor.u32 %v383_v23, %v380_v22  ;;  %v409_v31 = vshll.u32 %v2998_v15, 16  ;;  %v415_v32 = vshll.u32 %v3006_v18, 16  ;;  %v389_v35 = vrot.slane %v387_v25, 5  ;;  %v3064_v3 = vld [vmem:[%s2973_s12 + $0x28] sm:$0xf]  ;;  %v2842_v23 = vld [vmem:[%s3573_s2 + $0x50] sm:$0xff]  }
  0x16   : > { %2655 = vmatpush3.bf16.msra.mxu0 %v2834_v4  ;;  %v394_v36 = vrot.slane %v392_v26, 4  ;;  %v397_v37 = vrot.slane %v395_v27, 5  ;;  %v403_v38 = vrot.slane %v401_v28, 5  ;;  %v408_v41 = vrot.slane %v406_v30, 4  ;;  %v3067_v4 = vld [vmem:[%s2973_s12 + $0x2c] sm:$0x1] }
  0x17   : > { %2671 = vmatpush3.bf16.msra.mxu1 %v2835_v5  ;;  %2656 = vmatprep.subr.bf16.mxu0 %v2836_v6  ;;  %v385_v40 = vrot.slane %v384_v29, 4  ;;  %v411_v42 = vrot.slane %v409_v31, 5  ;;  %v417_v43 = vrot.slane %v415_v32, 5  ;;  %v420_v45 = vshrl.u32 %v3001_v16, 16  ;;  %v2847_v5 = vld [vmem:[%s3573_s2 + $0x68] sm:$0xff]   ;;  %v2873_v39 = vld [vmem:[%s3573_s2 + $0x100] sm:$0xff]  }
  0x18   : > { %2672 = vmatprep.subr.bf16.mxu1 %v2837_v9  ;;  %v398_v44 = vor.u32 %v397_v37, %v394_v36  ;;  %v423_v46 = vshll.u32 %v3001_v16, 16  ;;  %v429_v47 = vshll.u32 %v3018_v21, 16  ;;  %v434_v49 = vshrl.u32 %v3021_v24, 16  ;;  %v3077_v11 = vld [vmem:[%s2973_s12 + $0x30] sm:$0xf]  ;;  %s2577_s22 = sshll.u32 %s3586_s18, 3 }
  0x19   : > { %v412_v48 = vor.u32 %v411_v42, %v408_v41  ;;  %v437_v50 = vshll.u32 %v3021_v24, 16  ;;  %v390_v51 = vsel %vm3038_vm3, %v385_v40, %v389_v35  ;;  %v422_v53 = vrot.slane %v420_v45, 4  ;;  %v3090_v26 = vld [vmem:[%s2973_s12 + $0x38] sm:$0xf]  ;;  %v3099_v30 = vld [vmem:[%s2973_s12 + $0x34] sm:$0x1]  ;;  %s3502_s18 = scalar_lea.vmem %s3576_s5, %s2577_s22 }
  0x1a   : > { %2657 = vmatpush3.bf16.msra.mxu0 %v2836_v6  ;;  %v399_v52 = vrot.slane %v398_v44, 4  ;;  %v425_v54 = vrot.slane %v423_v46, 5  ;;  %v436_v56 = vrot.slane %v434_v49, 4  ;;  %v443_v58 = vshll.u32 %v3034_v34, 16  ;;  %v3109_v35 = vld [vmem:[%s2973_s12 + $0x3c] sm:$0x1] }
  0x1b   : > { %2673 = vmatpush3.bf16.msra.mxu1 %v2837_v9  ;;  %2682 = vmatprep.subr.bf16.mxu0 %v3015_v20  ;;  %v413_v55 = vrot.slane %v412_v48, 4  ;;  %v439_v57 = vrot.slane %v437_v50, 5  ;;  %v431_v62 = vrot.slane %v429_v47, 5  ;;  %v745_v63 = vrot.slane %v2992_v13, 5  ;;  %v2849_v44 = vld [vmem:[%s3573_s2 + $0x60] sm:$0xff]   ;;  %v2846_v46 = vld [vmem:[%s3573_s2 + $0x48] sm:$0xff]  }
  0x1c   : > { %2698 = vmatprep.subr.bf16.mxu1 %v2841_v33  ;;  %v3058_v60 = vsel %vm3038_vm3, %v399_v52, %v403_v38  ;;  %v426_v61 = vor.u32 %v425_v54, %v422_v53  ;;  %v749_v2 = vrot.slane %v2995_v14, 5  ;;  %v445_v10 = vrot.slane %v443_v58, 5  ;;  %v2853_v53 = vld [vmem:[%s3573_s2 + $0xb8] sm:$0xff]  }
  0x1d   : > { %v440_v0 = vor.u32 %v439_v57, %v436_v56  ;;  %v2458_v1 = vcombine.low %v390_v51, %v3058_v60  ;;  %v3074_v6 = vsel %vm3038_vm3, %v413_v55, %v417_v43  ;;  %v2484_v12 = vrot.slane %v2998_v15, 9 }
  0x1e   : > { %2675 = vmatmul.mubr.msk.bf16.vlgmr.msra.gmra.mxu1 %vm533_vm0, %v3010_v19  ;;  %v427_v9 = vrot.slane %v426_v61, 4  ;;  %v753_v22 = vrot.slane %v3006_v18, 5  ;;  %v3087_v25 = vcombine.low %v3021_v24, %v3064_v3  ;;  %v448_v28 = vshrl.u32 %v3064_v3, 16 }
  0x1f   : > { %2699 = vmatpush3.bf16.msra.mxu1 %v2841_v33  ;;  %2658 = vmatprep.mubr.msk.bf16.mxu0 %vm533_vm0, %v2458_v1  ;;  %v451_v29 = vshll.u32 %v3064_v3, 16  ;;  %v441_v31 = vrot.slane %v440_v0, 4  ;;  %v457_v33 = vshll.u32 %v3067_v4, 16  ;;  %v2502_v38 = vcombine.low %v2982_v8, %v2998_v15 }
  0x20   : > { %2700 = vmatprep.subr.bf16.mxu1 %v2843_v59  ;;  %v3094_v27 = vsel %vm3038_vm3, %v427_v9, %v431_v62  ;;  %2678 = vmatprep.mubr.msk.bf16.mxu1 %vm533_vm0, %v3087_v25  ;;  %v450_v36 = vrot.slane %v448_v28, 4  ;;  %v3117_v41 = vcombine.low %v3077_v11, %v3090_v26  ;;  %v462_v42 = vshrl.u32 %v3077_v11, 16  ;;  %v2855_v28 = vld [vmem:[%s3573_s2 + $0xb0] sm:$0xff]  }
  0x21   : > { %v3103_v32 = vcombine.low %v3074_v6, %v3094_v27  ;;  %v453_v37 = vrot.slane %v451_v29, 5  ;;  %v459_v40 = vrot.slane %v457_v33, 5  ;;  %v465_v43 = vshll.u32 %v3077_v11, 16 }
  0x22   : > { %v471_v47 = vshll.u32 %v3099_v30, 16  ;;  %v476_v48 = vshrl.u32 %v3090_v26, 16  ;;  %v479_v49 = vshll.u32 %v3090_v26, 16  ;;  %v485_v52 = vshll.u32 %v3109_v35, 16 }
  0x23   : > { %2701 = vmatpush3.bf16.msra.mxu1 %v2843_v59  ;;  %2659 = vmatmul.mubr.msk.bf16.vlgmr.msra.gmra.mxu0 %vm533_vm0, %v3103_v32  ;;  %v454_v45 = vor.u32 %v453_v37, %v450_v36  ;;  %v467_v51 = vrot.slane %v465_v43, 5  ;;  %v3145_v54 = vsel %vm3038_vm3, %v441_v31, %v445_v10  ;;  %v2483_v61 = vrot.slane %v2982_v8, 9  ;;  %v2848_v10 = vld [vmem:[%s3573_s2 + $0x40] sm:$0xff]  }
  0x24   : > { %2702 = vmatprep.subr.bf16.mxu1 %v2847_v5  ;;  %2683 = vmatpush3.bf16.msra.mxu0 %v3015_v20  ;;  %v464_v20 = vrot.slane %v462_v42, 4  ;;  %v478_v56 = vrot.slane %v476_v48, 4  ;;  %v481_v57 = vrot.slane %v479_v49, 5  ;;  %v473_v59 = vrot.slane %v471_v47, 5  ;;  %v2854_v48 = vld [vmem:[%s3573_s2 + $0x90] sm:$0xff]  }
  0x25   : > { %2684 = vmatprep.subr.bf16.mxu0 %v2842_v23  ;;  %v455_v55 = vrot.slane %v454_v45, 4  ;;  %v487_v1 = vrot.slane %v485_v52, 5  ;;  %v750_v7 = vsel %vm3133_vm6, %v2483_v61, %v749_v2  ;;  %v2503_v13 = vcombine.low %v3001_v16, %v3021_v24  ;;  %v2857_v52 = vld [vmem:[%s3573_s2 + $0x88] sm:$0xff]  }
  0x26   : > { %2679 = vmatmul.mubr.msk.bf16.gmra.mxu1 %vm533_vm0, %v3117_v41  ;;  %v468_v58 = vor.u32 %v467_v51, %v464_v20  ;;  %v482_v0 = vor.u32 %v481_v57, %v478_v56  ;;  %v2504_v29 = vcombine.low %v3064_v3, %v3077_v11  ;;  %v2486_v31 = vrot.slane %v3021_v24, 9  ;;  %v2858_v24 = vld [vmem:[%s3573_s2 + $0xa8] sm:$0xff]  }
  0x27   : > { %2703 = vmatpush3.bf16.msra.mxu1 %v2847_v5  ;;  %2706 = vmatprep.mubr.msk.bf16.mxu1 %vm533_vm0, %v2502_v38  ;;  %v3151_v62 = vsel %vm3038_vm3, %v455_v55, %v459_v40  ;;  %v746_v5 = vsel %vm3133_vm6, %v2482_v17, %v745_v63  ;;  %v2485_v17 = vrot.slane %v3001_v16, 9  ;;  %v757_v63 = vrot.slane %v3018_v21, 5  ;;  %v2852_v16 = vld [vmem:[%s3573_s2 + $0x98] sm:$0xff]   ;;  %v3210_v40 = vld [vmem:[%s3193_s25] sm:$0xf]  ;;  %v2864_v55 = vld [vmem:[%s3573_s2 + $0xf0] sm:$0xff]  }
  0x28   : > { %2704 = vmatprep.subr.bf16.mxu1 %v2849_v44  ;;  %2685 = vmatpush3.bf16.msra.mxu0 %v2842_v23  ;;  %v3163_v8 = vcombine.low %v3145_v54, %v3151_v62  ;;  %v469_v9 = vrot.slane %v468_v58, 4  ;;  %v483_v23 = vrot.slane %v482_v0, 4  ;;  %v2490_v2 = vcombine.low %v746_v5, %v750_v7  ;;  %v3270_v57 = vld [vmem:[%s3193_s25 + $0x8] sm:$0xf]  ;;  %v2859_v5 = vld [vmem:[%s3573_s2 + $0x80] sm:$0xff]  }
  0x29   : > { %2686 = vmatprep.subr.bf16.mxu0 %v2846_v46  ;;  %v761_v33 = vrot.slane %v3034_v34, 5  ;;  %v2487_v37 = vrot.slane %v3064_v3, 9  ;;  %v765_v38 = vrot.slane %v3067_v4, 5  ;;  %v754_v34 = vsel %vm3133_vm6, %v2484_v12, %v753_v22 }
  0x2a   : > { %2662 = vmatprep.mubr.msk.bf16.mxu0 %vm533_vm0, %v3163_v8  ;;  %v3185_v14 = vsel %vm3038_vm3, %v469_v9, %v473_v59  ;;  %v3197_v21 = vsel %vm3038_vm3, %v483_v23, %v487_v1  ;;  %v758_v3 = vsel %vm3133_vm6, %v2485_v17, %v757_v63  ;;  %v2505_v18 = vcombine.low %v3090_v26, %v3210_v40  ;;  %v2861_v17 = vld [vmem:[%s3573_s2 + $0xd8] sm:$0xff]  }
  0x2b   : > { %2705 = vmatpush3.bf16.msra.mxu1 %v2849_v44  ;;  %v3203_v36 = vcombine.low %v3185_v14, %v3197_v21  ;;  %v762_v4 = vsel %vm3133_vm6, %v2486_v31, %v761_v33  ;;  %v766_v42 = vsel %vm3133_vm6, %v2487_v37, %v765_v38  ;;  %v2527_v15 = vcombine.low %v750_v7, %v754_v34  ;;  %v2860_v44 = vld [vmem:[%s3573_s2 + $0xa0] sm:$0xff]   ;;  %v2863_v38 = vld [vmem:[%s3573_s2 + $0xd0] sm:$0xff]  }
  0x2c   : > { %2730 = vmatprep.subr.bf16.mxu1 %v2853_v53  ;;  %2687 = vmatpush3.bf16.msra.mxu0 %v2846_v46  ;;  %v3232_v12 = vcombine.low %v754_v34, %v758_v3  ;;  %v2488_v22 = vrot.slane %v3077_v11, 9  ;;  %v769_v43 = vrot.slane %v3099_v30, 5  ;;  %v3239_v45 = vcombine.low %v762_v4, %v766_v42  ;;  %v2862_v11 = vld [vmem:[%s3573_s2 + $0xf8] sm:$0xff]  }
  0x2d   : > { %2688 = vmatprep.subr.bf16.mxu0 %v2848_v10  ;;  %2663 = vmatmul.mubr.msk.bf16.gmra.mxu0 %vm533_vm0, %v3203_v36  ;;  %v2489_v46 = vrot.slane %v3090_v26, 9  ;;  %v773_v47 = vrot.slane %v3109_v35, 5  ;;  %v363_v26 = vld [vmem:[%s3193_s25 + $0x4] sm:$0x1]  ;;  %v1028_v49 = vshrl.u32 %v3210_v40, 16  ;;  %v1031_v20 = vshll.u32 %v3210_v40, 16 }
  0x2e   : > { %2707 = vmatmul.mubr.msk.bf16.vlgmr.msra.gmra.mxu1 %vm533_vm0, %v2503_v13  ;;  %2690 = vmatprep.mubr.msk.bf16.mxu0 %vm533_vm0, %v2490_v2  ;;  %v770_v30 = vsel %vm3133_vm6, %v2488_v22, %v769_v43  ;;  %v2528_v51 = vcombine.low %v758_v3, %v762_v4  ;;  %v1166_v58 = vrot.slane %v363_v26, 5  ;;  %v2514_v61 = vcombine.low %v3058_v60, %v3074_v6  ;;  %v2866_v6 = vld [vmem:[%s3573_s2 + $0xe8] sm:$0xff]   ;;  %v2868_v2 = vld [vmem:[%s3573_s2 + $0xe0] sm:$0xff]   ;;  %v2870_v4 = vld [vmem:[%s3573_s2 + $0x110] sm:$0xff]  }
  0x2f   : > { %2731 = vmatpush3.bf16.msra.mxu1 %v2853_v53  ;;  %2710 = vmatprep.mubr.msk.bf16.mxu1 %vm533_vm0, %v2504_v29  ;;  %v774_v35 = vsel %vm3133_vm6, %v2489_v46, %v773_v47  ;;  %v2526_v53 = vrot.slane %v3210_v40, 9  ;;  %v2529_v56 = vcombine.low %v766_v42, %v770_v30  ;;  %v1030_v0 = vrot.slane %v1028_v49, 4  ;;  %v2867_v42 = vld [vmem:[%s3573_s2 + $0xc0] sm:$0xff]  }
  0x30   : > { %2732 = vmatprep.subr.bf16.mxu1 %v2855_v28  ;;  %2689 = vmatpush3.bf16.msra.mxu0 %v2848_v10  ;;  %v3272_v59 = vcombine.low %v770_v30, %v774_v35  ;;  %v1033_v1 = vrot.slane %v1031_v20, 5  ;;  %v1402_v10 = vshrl.u32 %v3270_v57, 16  ;;  %v1405_v60 = vshll.u32 %v3270_v57, 16 }
  0x31   : > { %2714 = vmatprep.subr.bf16.mxu0 %v2852_v16  ;;  %v3283_v9 = vsel %vm3133_vm6, %v2526_v53, %v1166_v58  ;;  %v1037_v13 = vshll.u32 %v363_v26, 16  ;;  %v2515_v29 = vcombine.low %v3094_v27, %v3145_v54  ;;  %v2516_v31 = vcombine.low %v3151_v62, %v3185_v14  ;;  %v2869_v62 = vld [vmem:[%s3573_s2 + $0x118] sm:$0xff]  }
  0x32   : > { %v1034_v7 = vor.u32 %v1033_v1, %v1030_v0  ;;  %v2530_v63 = vcombine.low %v774_v35, %v3283_v9  ;;  %v1404_v23 = vrot.slane %v1402_v10, 4  ;;  %v2539_v50 = vcombine.low %v3210_v40, %v3270_v57 }
  0x33   : > { %2733 = vmatpush3.bf16.msra.mxu1 %v2855_v28  ;;  %v1407_v28 = vrot.slane %v1405_v60, 5  ;;  %v1039_v37 = vrot.slane %v1037_v13, 5  ;;  %vm2278_vm10 = vcmask 1043459  }
  0x34   : > { %2734 = vmatprep.subr.bf16.mxu1 %v2858_v24  ;;  %v1035_v33 = vrot.slane %v1034_v7, 4 }
  0x35   : > { %2691 = vmatmul.mubr.msk.bf16.vlgmr.msra.gmra.mxu0 %vm533_vm0, %v3232_v12  ;;  %v1408_v27 = vor.u32 %v1407_v28, %v1404_v23 }
  0x36   : > { %2711 = vmatmul.mubr.msk.bf16.gmra.mxu1 %vm533_vm0, %v2505_v18  ;;  %2715 = vmatpush3.bf16.msra.mxu0 %v2852_v16  ;;  %v365_v16 = vld [vmem:[%s3193_s25 + $0xc] sm:$0x1]  ;;  %v1040_v14 = vsel %vm3038_vm3, %v1035_v33, %v1039_v37 }
  0x37   : > { %2735 = vmatpush3.bf16.msra.mxu1 %v2858_v24  ;;  %2738 = vmatprep.mubr.msk.bf16.mxu1 %vm533_vm0, %v2527_v15  ;;  %v1411_v54 = vshll.u32 %v365_v16, 16  ;;  %v1409_v24 = vrot.slane %v1408_v27, 4  ;;  %v2517_v3 = vcombine.low %v3197_v21, %v1040_v14  ;;  %v2871_v18 = vld [vmem:[%s3573_s2 + $0x108] sm:$0xff]   ;;  %v2557_v15 = vrot.slane %v3270_v57, 9 }
  0x38   : > { %2736 = vmatprep.subr.bf16.mxu1 %v2860_v44  ;;  %2694 = vmatprep.mubr.msk.bf16.mxu0 %vm533_vm0, %v3239_v45  ;;  %v1528_v22 = vrot.slane %v365_v16, 5 }
  0x39   : > { %2716 = vmatprep.subr.bf16.mxu0 %v2854_v48  ;;  %v1413_v34 = vrot.slane %v1411_v54, 5 }
  0x3a   : > { %2717 = vmatpush3.bf16.msra.mxu0 %v2854_v48 }
  0x3b   : > { %2737 = vmatpush3.bf16.msra.mxu1 %v2860_v44  ;;  %2718 = vmatprep.subr.bf16.mxu0 %v2857_v52  ;;  %v1414_v21 = vsel %vm3038_vm3, %v1409_v24, %v1413_v34 }
  0x3c   : > { %2762 = vmatprep.subr.bf16.mxu1 %v2862_v11 }
  0x3d   : > { %2695 = vmatmul.mubr.msk.bf16.gmra.mxu0 %vm533_vm0, %v3272_v59 }
  0x3e   : > { %2739 = vmatmul.mubr.msk.bf16.vlgmr.msra.gmra.mxu1 %vm533_vm0, %v2528_v51  ;;  %2719 = vmatpush3.bf16.msra.mxu0 %v2857_v52 }
  0x3f   : > { %2763 = vmatpush3.bf16.msra.mxu1 %v2862_v11  ;;  %2742 = vmatprep.mubr.msk.bf16.mxu1 %vm533_vm0, %v2529_v56 }
  0x40   : > { %2764 = vmatprep.subr.bf16.mxu1 %v2864_v55  ;;  %2722 = vmatprep.mubr.msk.bf16.mxu0 %vm533_vm0, %v2514_v61 }
  0x41   : > { %2720 = vmatprep.subr.bf16.mxu0 %v2859_v5 }
  0x42   : > { %2721 = vmatpush3.bf16.msra.mxu0 %v2859_v5 }
  0x43   : > { %2765 = vmatpush3.bf16.msra.mxu1 %v2864_v55  ;;  %2746 = vmatprep.subr.bf16.mxu0 %v2861_v17 }
  0x44   : > { %2766 = vmatprep.subr.bf16.mxu1 %v2866_v6 }
  0x45   : > { %2723 = vmatmul.mubr.msk.bf16.vlgmr.msra.gmra.mxu0 %vm533_vm0, %v2515_v29 }
  0x46   : > { %2743 = vmatmul.mubr.msk.bf16.gmra.mxu1 %vm533_vm0, %v2530_v63  ;;  %2747 = vmatpush3.bf16.msra.mxu0 %v2861_v17 }
  0x47   : > { %2767 = vmatpush3.bf16.msra.mxu1 %v2866_v6  ;;  %2770 = vmatprep.mubr.msk.bf16.mxu1 %vm533_vm0, %v3103_v32  ;;  %v2865_v32 = vld [vmem:[%s3573_s2 + $0xc8] sm:$0xff]  }
  0x48   : > { %2768 = vmatprep.subr.bf16.mxu1 %v2868_v2  ;;  %2726 = vmatprep.mubr.msk.bf16.mxu0 %vm533_vm0, %v2516_v31 }
  0x49   : > { %2748 = vmatprep.subr.bf16.mxu0 %v2863_v38 }
  0x4a   : > { %2749 = vmatpush3.bf16.msra.mxu0 %v2863_v38 }
  0x4b   : > { %2769 = vmatpush3.bf16.msra.mxu1 %v2868_v2  ;;  %2750 = vmatprep.subr.bf16.mxu0 %v2865_v32 }
  0x4c   : > { %2794 = vmatprep.subr.bf16.mxu1 %v2869_v62 }
  0x4d   : > { %2727 = vmatmul.mubr.msk.bf16.gmra.mxu0 %vm533_vm0, %v2517_v3 }
  0x4e   : > { %2771 = vmatmul.mubr.msk.bf16.vlgmr.msra.gmra.mxu1 %vm533_vm0, %v3163_v8  ;;  %2751 = vmatpush3.bf16.msra.mxu0 %v2865_v32  ;;  %v2548_v8 = vcombine.low %v1040_v14, %v1414_v21 }
  0x4f   : > { %2798 = vmatpush3.bf16.msra.mxu1 %v2869_v62  ;;  %2774 = vmatprep.mubr.msk.bf16.mxu1 %vm533_vm0, %v3203_v36  ;;  %v1529_v36 = vsel %vm3133_vm6, %v2557_v15, %v1528_v22 }
  0x50   : > { %2795 = vmatprep.subr.bf16.mxu1 %v2870_v4  ;;  %2754 = vmatprep.mubr.msk.bf16.mxu0 %vm533_vm0, %v3010_v19  ;;  %v2558_v19 = vcombine.low %v3283_v9, %v1529_v36 }
  0x51   : > { %2752 = vmatprep.subr.bf16.mxu0 %v2867_v42 }
  0x52   : > { %2753 = vmatpush3.bf16.msra.mxu0 %v2867_v42 }
  0x53   : > { %2799 = vmatpush3.bf16.msra.mxu1 %v2870_v4  ;;  %2778 = vmatprep.subr.bf16.mxu0 %v2869_v62 }
  0x54   : > { %2796 = vmatprep.subr.bf16.mxu1 %v2871_v18 }
  0x55   : > { %2755 = vmatmul.mubr.msk.bf16.vlgmr.msra.gmra.mxu0 %vm533_vm0, %v3087_v25 }
  0x56   : > { %2775 = vmatmul.mubr.msk.bf16.gmra.mxu1 %vm533_vm0, %v2548_v8  ;;  %2779 = vmatpush3.bf16.msra.mxu0 %v2869_v62 }
  0x57   : > { %2800 = vmatpush3.bf16.msra.mxu1 %v2871_v18  ;;  %2790 = vmatprep.mubr.msk.bf16.mxu1 %vm533_vm0, %v3272_v59 }
  0x58   : > { %2797 = vmatprep.subr.bf16.mxu1 %v2873_v39  ;;  %2758 = vmatprep.mubr.msk.bf16.mxu0 %vm533_vm0, %v3117_v41 }
  0x59   : > { %2780 = vmatprep.subr.bf16.mxu0 %v2870_v4 }
  0x5a   : > { %2781 = vmatpush3.bf16.msra.mxu0 %v2870_v4 }
  0x5b   : > { %2801 = vmatpush3.bf16.msra.mxu1 %v2873_v39  ;;  %2782 = vmatprep.subr.bf16.mxu0 %v2871_v18 }
  0x5d   : > { %2759 = vmatmul.mubr.msk.bf16.gmra.mxu0 %vm533_vm0, %v2539_v50 }
  0x5e   : > { %2791 = vmatmul.mubr.msk.bf16.vlgmr.msra.gmra.mxu1 %vm533_vm0, %v2558_v19  ;;  %2783 = vmatpush3.bf16.msra.mxu0 %v2871_v18 }
  0x5f   : > { %2786 = vmatprep.mubr.msk.bf16.mxu0 %vm533_vm0, %v3232_v12  ;;  %2784 = vmatprep.subr.bf16.mxu0 %v2873_v39 }
  0x62   : > { %2785 = vmatpush3.bf16.msra.mxu0 %v2873_v39 }
  0x65   : > { %2787 = vmatmul.mubr.msk.bf16.vlgmr.msra.gmra.mxu0 %vm533_vm0, %v3239_v45 }
  0xde   : > { %v2676_v25 = vpop.f32.mrf.mxu1 }
  0xe0   : > { %v701_v41 = vpop.f32.mrf.mxu1 }
  0xe2   : > { %v3362_v43 = vpop.f32.mrf.mxu1 }
  0xe3   : > { %v2660_v44 = vpop.f32.mrf.mxu0 }
  0xe4   : > { %v704_v40 = vpop.f32.mrf.mxu1  ;;  %v710_v19 = vadd.f32 %v2676_v25, %v2660_v44 }
  0xe5   : > { %v580_v46 = vpop.f32.mrf.mxu0 }
  0xe6   : > { %v2680_v47 = vpop.f32.mrf.mxu1  ;;  %v702_v48 = vadd.f32 %v701_v41, %v580_v46 }
  0xe7   : > { %v3364_v11 = vpop.f32.mrf.mxu0 }
  0xe8   : > { %v717_v26 = vpop.f32.mrf.mxu1 }
  0xe9   : > { %v583_v30 = vpop.f32.mrf.mxu0 }
  0xea   : > { %v2681_v35 = vpop.f32.mrf.mxu1  ;;  %v705_v12 = vadd.f32 %v704_v40, %v583_v30 }
  0xec   : > { %v720_v49 = vpop.f32.mrf.mxu1 }
  0xed   : > { %v2664_v51 = vpop.f32.mrf.mxu0 }
  0xee   : > { %v2708_v20 = vpop.f32.mrf.mxu1  ;;  %v726_v36 = vadd.f32 %v2680_v47, %v2664_v51 }
  0xef   : > { %v596_v45 = vpop.f32.mrf.mxu0 }
  0xf0   : > { %v988_v52 = vpop.f32.mrf.mxu1  ;;  %v718_v55 = vadd.f32 %v717_v26, %v596_v45 }
  0xf1   : > { %v2665_v56 = vpop.f32.mrf.mxu0 }
  0xf2   : > { %v3366_v53 = vpop.f32.mrf.mxu1  ;;  %v729_v30 = vadd.f32 %v2681_v35, %v2665_v56 }
  0xf3   : > { %v599_v58 = vpop.f32.mrf.mxu0 }
  0xf4   : > { %v991_v57 = vpop.f32.mrf.mxu1  ;;  %v721_v61 = vadd.f32 %v720_v49, %v599_v58  ;;  %v713_v58 = vadd.f32 %v3362_v43, %v3364_v11 }
  0xf5   : > { %v2692_v0 = vpop.f32.mrf.mxu0 }
  0xf6   : > { %v2712_v59 = vpop.f32.mrf.mxu1  ;;  %v898_v46 = vadd.f32 %v2692_v0, %v710_v19 }
  0xf7   : > { %v865_v5 = vpop.f32.mrf.mxu0 }
  0xf8   : > { %v1004_v1 = vpop.f32.mrf.mxu1  ;;  %v896_v10 = vadd.f32 %v865_v5, %v702_v48  ;;  %v1021_v5 = vadd.f32 %v2708_v20, %v898_v46  ;;  %v2898_v20 = vmov 1983009808  }
  0xf9   : > { %v2693_v60 = vpop.f32.mrf.mxu0 }
  0xfa   : > { %v2713_v9 = vpop.f32.mrf.mxu1  ;;  %v1019_v7 = vadd.f32 %v988_v52, %v896_v10 }
  0xfb   : > { %v868_v13 = vpop.f32.mrf.mxu0 }
  0xfc   : > { %v1007_v6 = vpop.f32.mrf.mxu1  ;;  %v897_v63 = vadd.f32 %v868_v13, %v705_v12 }
  0xfd   : > { %v2696_v23 = vpop.f32.mrf.mxu0 }
  0xfe   : > { %v2740_v17 = vpop.f32.mrf.mxu1  ;;  %v1020_v29 = vadd.f32 %v991_v57, %v897_v63  ;;  %v902_v40 = vadd.f32 %v2696_v23, %v726_v36 }
  0xff   : > { %v881_v16 = vpop.f32.mrf.mxu0 }
 0x100   : > { %v1251_v28 = vpop.f32.mrf.mxu1  ;;  %v900_v12 = vadd.f32 %v881_v16, %v718_v55  ;;  %v1025_v57 = vadd.f32 %v2712_v59, %v902_v40 }
 0x101   : > { %v2697_v31 = vpop.f32.mrf.mxu0 }
 0x102   : > { %v3368_v2 = vpop.f32.mrf.mxu1  ;;  %v903_v45 = vadd.f32 %v2697_v31, %v729_v30  ;;  %v1023_v51 = vadd.f32 %v1004_v1, %v900_v12  ;;  %v1688_v31 = vunpack.c.l.s4 %v2898_v20 }
 0x103   : > { %v884_v37 = vpop.f32.mrf.mxu0 }
 0x104   : > { %v1254_v33 = vpop.f32.mrf.mxu1  ;;  %v901_v25 = vadd.f32 %v884_v37, %v721_v61  ;;  %v1026_v35 = vadd.f32 %v2713_v9, %v903_v45  ;;  %v1690_v61 = vlaneseq }
 0x105   : > { %v2724_v27 = vpop.f32.mrf.mxu0 }
 0x106   : > { %v2744_v38 = vpop.f32.mrf.mxu1  ;;  %v1157_v13 = vadd.f32 %v2724_v27, %v1021_v5 }
 0x107   : > { %v1124_v62 = vpop.f32.mrf.mxu0 }
 0x108   : > { %v1267_v54 = vpop.f32.mrf.mxu1  ;;  %v1155_v32 = vadd.f32 %v1124_v62, %v1019_v7  ;;  %v899_v7 = vadd.f32 %v2693_v60, %v713_v58  ;;  %v1284_v43 = vadd.f32 %v2740_v17, %v1157_v13  ;;  %v1689_v17 = vunpack.c.0.s8 %v1688_v31 }
 0x109   : > { %v2725_v24 = vpop.f32.mrf.mxu0 }
 0x10a   : > { %v2745_v14 = vpop.f32.mrf.mxu1  ;;  %v1282_v3 = vadd.f32 %v1251_v28, %v1155_v32  ;;  %v1022_v16 = vadd.f32 %v3366_v53, %v899_v7  ;;  %v3388_v53 = vld [vmem:[%s3574_s3] ss:$0 sm:$0xff] }
 0x10b   : > { %v1127_v4 = vpop.f32.mrf.mxu0 }
 0x10c   : > { %v3370_v34 = vpop.f32.mrf.mxu1  ;;  %v1156_v21 = vadd.f32 %v1127_v4, %v1020_v29  ;;  %v1024_v29 = vadd.f32 %v1007_v6, %v901_v25  ;;  %v1158_v27 = vadd.f32 %v2725_v24, %v1022_v16 }
 0x10d   : > { %v2728_v18 = vpop.f32.mrf.mxu0 }
 0x10e   : > { %v3372_v42 = vpop.f32.mrf.mxu1  ;;  %v3376_v15 = vadd.f32 %v1254_v33, %v1156_v21  ;;  %v1161_v44 = vadd.f32 %v2728_v18, %v1025_v57 }
 0x10f   : > { %v1140_v22 = vpop.f32.mrf.mxu0 }
 0x110   : > { %v3374_v8 = vpop.f32.mrf.mxu1  ;;  %v1159_v23 = vadd.f32 %v1140_v22, %v1023_v51  ;;  %v1288_v59 = vadd.f32 %v2744_v38, %v1161_v44  ;;  %v1691_v38 = vshrl.u32 %v1690_v61, 7 }
 0x111   : > { %v2729_v50 = vpop.f32.mrf.mxu0 }
 0x112   : > { %v3378_v39 = vpop.f32.mrf.mxu1  ;;  %v1162_v28 = vadd.f32 %v2729_v50, %v1026_v35  ;;  %v1286_v60 = vadd.f32 %v1267_v54, %v1159_v23  ;;  %v1285_v50 = vadd.f32 %v3368_v2, %v1158_v27 }
 0x113   : > { %v1143_v48 = vpop.f32.mrf.mxu0 }
 0x114   : > { %v3380_v41 = vpop.f32.mrf.mxu1  ;;  %v1160_v33 = vadd.f32 %v1143_v48, %v1024_v29  ;;  %v1289_v4 = vadd.f32 %v2745_v14, %v1162_v28  ;;  %v3395_v14 = vld [vmem:[%s3575_s4] ss:$0 sm:$0xff] }
 0x115   : > { %v2756_v49 = vpop.f32.mrf.mxu0 }
 0x116   : > { %v2776_v26 = vpop.f32.mrf.mxu1  ;;  %v1395_v62 = vadd.f32 %v2756_v49, %v1284_v43  ;;  %v1287_v36 = vadd.f32 %v3370_v34, %v1160_v33  ;;  %v3399_v34 = vsub.s32 %v1689_v17, %v1691_v38 }
 0x117   : > { %v1362_v10 = vpop.f32.mrf.mxu0 }
 0x118   : > { %v1502_v52 = vpop.f32.mrf.mxu1  ;;  %v1393_v18 = vadd.f32 %v1362_v10, %v1282_v3  ;;  %v1519_v3 = vadd.f32 %v3372_v42, %v1395_v62 }
 0x119   : > { %v2757_v0 = vpop.f32.mrf.mxu0 }
 0x11a   : > { %v2777_v47 = vpop.f32.mrf.mxu1  ;;  %v1396_v12 = vadd.f32 %v2757_v0, %v1285_v50 }
 0x11b   : > { %v1365_v55 = vpop.f32.mrf.mxu0 }
 0x11c   : > { %v1505_v63 = vpop.f32.mrf.mxu1  ;;  %v1394_v42 = vadd.f32 %v1365_v55, %v3376_v15  ;;  %v1520_v13 = vadd.f32 %v3378_v39, %v1396_v12 }
 0x11d   : > { %v2760_v11 = vpop.f32.mrf.mxu0 }
 0x11e   : > { %v2792_v56 = vpop.f32.mrf.mxu1  ;;  %v1399_v1 = vadd.f32 %v2760_v11, %v1288_v59  ;;  %v1518_v59 = vadd.f32 %v3380_v41, %v1394_v42 }
 0x11f   : > { %v1378_v32 = vpop.f32.mrf.mxu0 }
 0x120   : > { %v1617_v37 = vpop.f32.mrf.mxu1  ;;  %v1397_v9 = vadd.f32 %v1378_v32, %v1286_v60  ;;  %v1523_v21 = vadd.f32 %v2776_v26, %v1399_v1 }
 0x121   : > { %v2761_v6 = vpop.f32.mrf.mxu0 }
 0x122   : > { %v1400_v22 = vadd.f32 %v2761_v6, %v1289_v4  ;;  %v1638_v54 = vadd.f32 %v2792_v56, %v1523_v21  ;;  %v1521_v19 = vadd.f32 %v1502_v52, %v1397_v9  ;;  %v2793_v24 = vpop.f32.mrf.mxu1  ;;  %v1517_v52 = vadd.f32 %v3374_v8, %v1393_v18 }
 0x123   : > { %v1381_v40 = vpop.f32.mrf.mxu0 }
 0x124   : > { %v1398_v46 = vadd.f32 %v1381_v40, %v1287_v36  ;;  %v1653_v48 = vmul.f32 %v3388_v53, %v1638_v54  ;;  %v1636_v26 = vadd.f32 %v1617_v37, %v1521_v19  ;;  %v1524_v30 = vadd.f32 %v2777_v47, %v1400_v22  ;;  %v1620_v5 = vpop.f32.mrf.mxu1 }
 0x125   : > { %v2788_v49 = vpop.f32.mrf.mxu0 }
 0x126   : > { %v1668_v2 = vadd.f32 %v3395_v14, %v1653_v48  ;;  %v1634_v45 = vadd.f32 %v2788_v49, %v1519_v3  ;;  %v1651_v57 = vmul.f32 %v3388_v53, %v1636_v26  ;;  %v1639_v58 = vadd.f32 %v2793_v24, %v1524_v30 }
 0x127   : > { %v1601_v10 = vpop.f32.mrf.mxu0  ;;  %v1522_v25 = vadd.f32 %v1505_v63, %v1398_v46 }
 0x128   : > { %v1676_v44 = vmax.f32 %v1668_v2, 0.0  ;;  %v1649_v47 = vmul.f32 %v3388_v53, %v1634_v45  ;;  %v1666_v51 = vadd.f32 %v3395_v14, %v1651_v57  ;;  %v1632_v7 = vadd.f32 %v1601_v10, %v1517_v52 }
 0x129   : > { %v1654_v8 = vmul.f32 %v3388_v53, %v1639_v58  ;;  %v2789_v0 = vpop.f32.mrf.mxu0  ;;  %v1637_v23 = vadd.f32 %v1620_v5, %v1522_v25 }
 0x12a   : > { %v1788_v35 = vcombine.high %v1676_v44, %v1676_v44  ;;  %v1795_v56 = vrot.slane %v1676_v44, %v3399_v34  ;;  %v1664_v15 = vadd.f32 %v3395_v14, %v1649_v47  ;;  %v1674_v55 = vmax.f32 %v1666_v51, 0.0 }
 0x12b   : > { %v1647_v63 = vmul.f32 %v3388_v53, %v1632_v7  ;;  %v1669_v28 = vadd.f32 %v3395_v14, %v1654_v8  ;;  %v1635_v29 = vadd.f32 %v2789_v0, %v1520_v13  ;;  %v1652_v39 = vmul.f32 %v3388_v53, %v1637_v23  ;;  %v1604_v25 = vpop.f32.mrf.mxu0 }
 0x12c   : > { %v1802_v16 = vrot.slane %v1788_v35, %v3399_v34  ;;  %v1803_v43 = vcombine.high %v1795_v56, %v1795_v56  ;;  %v1672_v11 = vmax.f32 %v1664_v15, 0.0  ;;  %v1754_v20 = vcombine.high %v1674_v55, %v1674_v55 }
 0x12d   : > { %v1761_v31 = vrot.slane %v1674_v55, %v3399_v34  ;;  %v1662_v61 = vadd.f32 %v3395_v14, %v1647_v63  ;;  %v1677_v33 = vmax.f32 %v1669_v28, 0.0  ;;  %v1963_v60 = vsel %vm1854_vm7, %v1795_v56, -inf }
 0x12e   : > { %v1804_v1 = vcombine.high %v1802_v16, %v1802_v16  ;;  %v1972_v37 = vsel %vm1854_vm7, %v1803_v43, -inf  ;;  %v1720_v27 = vcombine.high %v1672_v11, %v1672_v11  ;;  %v1981_v41 = vsel %vm1854_vm7, %v1802_v16, -inf }
 0x12f   : > { %v1727_v62 = vrot.slane %v1672_v11, %v3399_v34  ;;  %v1768_v32 = vrot.slane %v1754_v20, %v3399_v34  ;;  %v1769_v9 = vcombine.high %v1761_v31, %v1761_v31  ;;  %v3425_v21 = vsel %vm1854_vm7, %v1761_v31, -inf }
 0x130   : > { %v1734_v4 = vrot.slane %v1720_v27, %v3399_v34  ;;  %v1670_v18 = vmax.f32 %v1662_v61, 0.0  ;;  %v1805_v6 = vcombine.high %v1677_v33, %v1677_v33  ;;  %v1990_v17 = vsel %vm1854_vm7, %v1804_v1, -inf }
 0x131   : > { %v1735_v38 = vcombine.high %v1727_v62, %v1727_v62  ;;  %v1891_v22 = vsel %vm1854_vm7, %v1727_v62, -inf  ;;  %v1770_v36 = vcombine.high %v1768_v32, %v1768_v32  ;;  %v3431_v24 = vsel %vm1854_vm7, %v1769_v9, -inf }
 0x132   : > { %v1736_v54 = vcombine.high %v1734_v4, %v1734_v4  ;;  %v1909_v19 = vsel %vm1854_vm7, %v1734_v4, -inf  ;;  %v1686_v50 = vcombine.high %v1670_v18, %v1670_v18  ;;  %v3435_v3 = vsel %vm1854_vm7, %v1768_v32, -inf }
 0x133   : > { %v1900_v40 = vsel %vm1854_vm7, %v1735_v38, -inf  ;;  %v1693_v46 = vrot.slane %v1670_v18, %v3399_v34  ;;  %v1812_v48 = vrot.slane %v1677_v33, %v3399_v34  ;;  %v3440_v26 = vsel %vm1854_vm7, %v1770_v36, -inf }
 0x134   : > { %v3443_v30 = vrot.slane %v1686_v50, %v3399_v34  ;;  %v1819_v12 = vrot.slane %v1805_v6, %v3399_v34  ;;  %v1650_v49 = vmul.f32 %v3388_v53, %v1635_v29  ;;  %v1918_v52 = vsel %vm1854_vm7, %v1736_v54, -inf }
 0x135   : > { %v1701_v2 = vcombine.high %v1693_v46, %v1693_v46  ;;  %v1820_v45 = vcombine.high %v1812_v48, %v1812_v48  ;;  %v1964_v57 = vsel %vm1854_vm7, %v1812_v48, -inf  ;;  %v3452_v5 = vsel %vm1854_vm7, %v1693_v46, -inf }
 0x136   : > { %v1702_v58 = vcombine.high %v3443_v30, %v3443_v30  ;;  %v1821_v42 = vcombine.high %v1819_v12, %v1819_v12  ;;  %v1965_v10 = vmax.f32 %v1963_v60, %v1964_v57  ;;  %v3456_v44 = vsel %vm1854_vm7, %v3443_v30, -inf }
 0x137   : > { %v1973_v47 = vsel %vm1854_vm7, %v1820_v45, -inf  ;;  %v1982_v51 = vsel %vm1854_vm7, %v1819_v12, -inf  ;;  %v1665_v7 = vadd.f32 %v3395_v14, %v1650_v49  ;;  %v3462_v8 = vsel %vm1854_vm7, %v1701_v2, -inf }
 0x138   : > { %v1966_v13 = vrot.slane %v1965_v10, 4  ;;  %v1974_v0 = vmax.f32 %v1972_v37, %v1973_v47  ;;  %v1983_v23 = vmax.f32 %v1981_v41, %v1982_v51  ;;  %v1991_v35 = vsel %vm1854_vm7, %v1821_v42, -inf }
 0x139   : > { %v1673_v56 = vmax.f32 %v1665_v7, 0.0  ;;  %v1667_v15 = vadd.f32 %v3395_v14, %v1652_v39  ;;  %v1633_v55 = vadd.f32 %v1604_v25, %v1518_v59  ;;  %v1992_v16 = vmax.f32 %v1990_v17, %v1991_v35 }
 0x13a   : > { %v1967_v63 = vmax.f32 %v1965_v10, %v1966_v13  ;;  %v1975_v28 = vrot.slane %v1974_v0, 4  ;;  %v1984_v29 = vrot.slane %v1983_v23, 4 }
 0x13b   : > { %v1737_v43 = vcombine.high %v1673_v56, %v1673_v56  ;;  %v1744_v11 = vrot.slane %v1673_v56, %v3399_v34  ;;  %v3467_v20 = vmax.f32 %v1667_v15, 0.0  ;;  %v3470_v31 = vmul.f32 %v3388_v53, %v1633_v55 }
 0x13c   : > { %v1968_v61 = vrot.slane %v1967_v63, 2  ;;  %v1976_v33 = vmax.f32 %v1974_v0, %v1975_v28  ;;  %v1985_v1 = vmax.f32 %v1983_v23, %v1984_v29  ;;  %v1993_v60 = vrot.slane %v1992_v16, 4 }
 0x13d   : > { %v1751_v37 = vrot.slane %v1737_v43, %v3399_v34  ;;  %v1752_v39 = vcombine.high %v1744_v11, %v1744_v11  ;;  %v1892_v59 = vsel %vm1854_vm7, %v1744_v11, -inf  ;;  %v1771_v27 = vcombine.high %v3467_v20, %v3467_v20 }
 0x13e   : > { %v1969_v41 = vmax.f32 %v1967_v63, %v1968_v61  ;;  %v1977_v62 = vrot.slane %v1976_v33, 2  ;;  %v1986_v32 = vrot.slane %v1985_v1, 2  ;;  %v1994_v9 = vmax.f32 %v1992_v16, %v1993_v60 }
 0x13f   : > { %v1753_v4 = vcombine.high %v1751_v37, %v1751_v37  ;;  %v1893_v18 = vmax.f32 %v1891_v22, %v1892_v59  ;;  %v1901_v53 = vsel %vm1854_vm7, %v1752_v39, -inf  ;;  %v1910_v6 = vsel %vm1854_vm7, %v1751_v37, -inf }
 0x140   : > { %v1970_v17 = vrot.slane %v1969_v41, 1  ;;  %v1978_v38 = vmax.f32 %v1976_v33, %v1977_v62  ;;  %v1987_v36 = vmax.f32 %v1985_v1, %v1986_v32  ;;  %v1995_v54 = vrot.slane %v1994_v9, 2 }
 0x141   : > { %v1894_v50 = vrot.slane %v1893_v18, 4  ;;  %v1902_v46 = vmax.f32 %v1900_v40, %v1901_v53  ;;  %v1911_v48 = vmax.f32 %v1909_v19, %v1910_v6  ;;  %v1919_v12 = vsel %vm1854_vm7, %v1753_v4, -inf }
 0x142   : > { %v1971_v49 = vmax.f32 %v1969_v41, %v1970_v17  ;;  %v1979_v2 = vrot.slane %v1978_v38, 1  ;;  %v1988_v45 = vrot.slane %v1987_v36, 1  ;;  %v1996_v57 = vmax.f32 %v1994_v9, %v1995_v54 }
 0x143   : > { %v1895_v42 = vmax.f32 %v1893_v18, %v1894_v50  ;;  %v1903_v10 = vrot.slane %v1902_v46, 4  ;;  %v1912_v22 = vrot.slane %v1911_v48, 4  ;;  %v1920_v25 = vmax.f32 %v1918_v52, %v1919_v12 }
 0x144   : > { %v1980_v47 = vmax.f32 %v1978_v38, %v1979_v2  ;;  %v1989_v51 = vmax.f32 %v1987_v36, %v1988_v45  ;;  %v1997_v7 = vrot.slane %v1996_v57, 1  ;;  %v2011_v13 = vpack.c.bf16 %v1971_v49, %v1971_v49 }
 0x145   : > { %v1896_v0 = vrot.slane %v1895_v42, 2  ;;  %v1904_v23 = vmax.f32 %v1902_v46, %v1903_v10  ;;  %v1913_v35 = vmax.f32 %v1911_v48, %v1912_v22  ;;  %v1921_v40 = vrot.slane %v1920_v25, 4 }
 0x146   : > { %v1998_v19 = vmax.f32 %v1996_v57, %v1997_v7  ;;  %v2012_v56 = vpack.c.bf16 %v1980_v47, %v1980_v47  ;;  %v2013_v15 = vpack.c.bf16 %v1989_v51, %v1989_v51  ;;  %v2121_v55 = vrot.slane %v2011_v13, %v3399_v34 }
 0x147   : > { %v1897_v63 = vmax.f32 %v1895_v42, %v1896_v0  ;;  %v1905_v28 = vrot.slane %v1904_v23, 2  ;;  %v1914_v29 = vrot.slane %v1913_v35, 2  ;;  %v1922_v52 = vmax.f32 %v1920_v25, %v1921_v40 }
 0x148   : > { %v2014_v16 = vpack.c.bf16 %v1998_v19, %v1998_v19  ;;  %v2128_v43 = vrot.slane %v2012_v56, %v3399_v34  ;;  %v2135_v11 = vrot.slane %v2013_v15, %v3399_v34  ;;  %v2233_v61 = vrot.slane %v2121_v55, %v3399_v34 }
 0x149   : > { %v1898_v33 = vrot.slane %v1897_v63, 1  ;;  %v1906_v1 = vmax.f32 %v1904_v23, %v1905_v28  ;;  %v1915_v60 = vmax.f32 %v1913_v35, %v1914_v29  ;;  %v1923_v37 = vrot.slane %v1922_v52, 2 }
 0x14a   : > { %v2142_v39 = vrot.slane %v2014_v16, %v3399_v34  ;;  %v2240_v59 = vrot.slane %v2128_v43, %v3399_v34  ;;  %v2247_v41 = vrot.slane %v2135_v11, %v3399_v34  ;;  %v2267_v62 = vunpack.c.l.b16 %v2233_v61 }
 0x14b   : > { %v1899_v32 = vmax.f32 %v1897_v63, %v1898_v33  ;;  %v1907_v9 = vrot.slane %v1906_v1, 1  ;;  %v1916_v4 = vrot.slane %v1915_v60, 1  ;;  %v1924_v18 = vmax.f32 %v1922_v52, %v1923_v37 }
 0x14c   : > { %v2254_v53 = vrot.slane %v2142_v39, %v3399_v34  ;;  %v2268_v6 = vunpack.c.l.b16 %v2240_v59  ;;  %v2269_v17 = vunpack.c.l.b16 %v2247_v41  ;;  %v1778_v38 = vrot.slane %v3467_v20, %v3399_v34 }
 0x14d   : > { %v1908_v36 = vmax.f32 %v1906_v1, %v1907_v9  ;;  %v1917_v54 = vmax.f32 %v1915_v60, %v1916_v4  ;;  %v1925_v50 = vrot.slane %v1924_v18, 1  ;;  %v2003_v46 = vpack.c.bf16 %v1899_v32, %v1899_v32 }
 0x14e   : > { %v2270_v48 = vunpack.c.l.b16 %v2254_v53  ;;  %v2292_v12 = vrot.slane %v2268_v6, 7  ;;  %v2294_v49 = vrot.slane %v2269_v17, 6  ;;  %v1785_v2 = vrot.slane %v1771_v27, %v3399_v34 }
 0x14f   : > { %v1926_v45 = vmax.f32 %v1924_v18, %v1925_v50  ;;  %v2004_v57 = vpack.c.bf16 %v1908_v36, %v1908_v36  ;;  %v2005_v42 = vpack.c.bf16 %v1917_v54, %v1917_v54  ;;  %v2065_v10 = vrot.slane %v2003_v46, %v3399_v34 }
 0x150   : > { %v2293_v22 = vsel %vm2272_vm8, %v2292_v12, %v2267_v62  ;;  %v2296_v25 = vrot.slane %v2270_v48, 5  ;;  %v1786_v47 = vcombine.high %v1778_v38, %v1778_v38  ;;  %v1787_v51 = vcombine.high %v1785_v2, %v1785_v2 }
 0x151   : > { %v2295_v7 = vsel %vm2275_vm9, %v2294_v49, %v2293_v22  ;;  %v2006_v13 = vpack.c.bf16 %v1926_v45, %v1926_v45  ;;  %v2072_v0 = vrot.slane %v2004_v57, %v3399_v34  ;;  %v2079_v23 = vrot.slane %v2005_v42, %v3399_v34 }
 0x152   : > { %v2297_v20 = vsel %vm2278_vm10, %v2296_v25, %v2295_v7  ;;  %v2177_v27 = vrot.slane %v2065_v10, %v3399_v34  ;;  %v1928_v35 = vsel %vm1854_vm7, %v1778_v38, -inf  ;;  %v1937_v40 = vsel %vm1854_vm7, %v1786_v47, -inf }
 0x153   : > { %v2301_v19 = vpack.c.b16 %v2297_v20, %v2297_v20  ;;  %v2086_v56 = vrot.slane %v2006_v13, %v3399_v34  ;;  %v2184_v15 = vrot.slane %v2072_v0, %v3399_v34  ;;  %v2191_v55 = vrot.slane %v2079_v23, %v3399_v34 }
 0x154   : > { %v2259_v63 = vunpack.c.l.b16 %v2177_v27  ;;  %v1929_v28 = vmax.f32 %v3425_v21, %v1928_v35  ;;  %v1938_v29 = vmax.f32 %v3431_v24, %v1937_v40  ;;  %v1946_v52 = vsel %vm1854_vm7, %v1785_v2, -inf }
 0x155   : > { %2572 = vst.sshfl [vmem:[%s3502_s18 + $0x6] sm:$0x3 pattern:$0x76325410] %v2301_v19  ;;  %v2198_v16 = vrot.slane %v2086_v56, %v3399_v34  ;;  %v2260_v43 = vunpack.c.l.b16 %v2184_v15  ;;  %v2261_v11 = vunpack.c.l.b16 %v2191_v55  ;;  %v1947_v61 = vmax.f32 %v3435_v3, %v1946_v52 }
 0x156   : > { %v1930_v33 = vrot.slane %v1929_v28, 4  ;;  %v1939_v1 = vrot.slane %v1938_v29, 4  ;;  %v1955_v60 = vsel %vm1854_vm7, %v1787_v51, -inf  ;;  %v1663_v37 = vadd.f32 %v3395_v14, %v3470_v31 }
 0x157   : > { %v2262_v39 = vunpack.c.l.b16 %v2198_v16  ;;  %v2280_v21 = vrot.slane %v2260_v43, 7  ;;  %v2282_v59 = vrot.slane %v2261_v11, 6  ;;  %v1948_v24 = vrot.slane %v1947_v61, 4 }
 0x158   : > { %v1931_v41 = vmax.f32 %v1929_v28, %v1930_v33  ;;  %v1940_v62 = vmax.f32 %v1938_v29, %v1939_v1  ;;  %v1956_v32 = vmax.f32 %v3440_v26, %v1955_v60  ;;  %v1671_v9 = vmax.f32 %v1663_v37, 0.0 }
 0x159   : > { %v1882_v3 = vsel %vm1854_vm7, %v1702_v58, -inf  ;;  %v2281_v4 = vsel %vm2272_vm8, %v2280_v21, %v2259_v63  ;;  %v2284_v18 = vrot.slane %v2262_v39, 5  ;;  %v1949_v53 = vmax.f32 %v1947_v61, %v1948_v24 }
 0x15a   : > { %v2283_v14 = vsel %vm2275_vm9, %v2282_v59, %v2281_v4  ;;  %v1932_v31 = vrot.slane %v1931_v41, 2  ;;  %v1941_v6 = vrot.slane %v1940_v62, 2  ;;  %v1957_v17 = vrot.slane %v1956_v32, 4 }
 0x15b   : > { %v2285_v38 = vsel %vm2278_vm10, %v2284_v18, %v2283_v14  ;;  %v1950_v36 = vrot.slane %v1949_v53, 2  ;;  %v1703_v26 = vcombine.high %v1671_v9, %v1671_v9  ;;  %v1710_v54 = vrot.slane %v1671_v9, %v3399_v34 }
 0x15c   : > { %v2299_v50 = vpack.c.b16 %v2285_v38, %v2285_v38  ;;  %v1933_v30 = vmax.f32 %v1931_v41, %v1932_v31  ;;  %v1942_v46 = vmax.f32 %v1940_v62, %v1941_v6  ;;  %v1958_v58 = vmax.f32 %v1956_v32, %v1957_v17 }
 0x15d   : > { %v1951_v48 = vmax.f32 %v1949_v53, %v1950_v36  ;;  %v1717_v12 = vrot.slane %v1703_v26, %v3399_v34  ;;  %v1718_v49 = vcombine.high %v1710_v54, %v1710_v54  ;;  %v1856_v2 = vsel %vm1854_vm7, %v1710_v54, -inf }
 0x15e   : > { %2570 = vst.sshfl [vmem:[%s3502_s18 + $0x2] sm:$0x3 pattern:$0x76325410] %v2299_v50  ;;  %v1934_v45 = vrot.slane %v1933_v30, 1  ;;  %v1943_v57 = vrot.slane %v1942_v46, 1  ;;  %v1857_v10 = vmax.f32 %v3452_v5, %v1856_v2 }
 0x15f   : > { %v1959_v42 = vrot.slane %v1958_v58, 2  ;;  %v1952_v22 = vrot.slane %v1951_v48, 1  ;;  %v1719_v25 = vcombine.high %v1717_v12, %v1717_v12  ;;  %v1865_v47 = vsel %vm1854_vm7, %v1718_v49, -inf }
 0x160   : > { %v1874_v51 = vsel %vm1854_vm7, %v1717_v12, -inf  ;;  %v1935_v7 = vmax.f32 %v1933_v30, %v1934_v45  ;;  %v1944_v13 = vmax.f32 %v1942_v46, %v1943_v57  ;;  %v1858_v23 = vrot.slane %v1857_v10, 4 }
 0x161   : > { %v1960_v0 = vmax.f32 %v1958_v58, %v1959_v42  ;;  %v1953_v20 = vmax.f32 %v1951_v48, %v1952_v22  ;;  %v1866_v27 = vmax.f32 %v3462_v8, %v1865_v47  ;;  %v1875_v35 = vmax.f32 %v3456_v44, %v1874_v51 }
 0x162   : > { %v1883_v40 = vsel %vm1854_vm7, %v1719_v25, -inf  ;;  %v2007_v56 = vpack.c.bf16 %v1935_v7, %v1935_v7  ;;  %v2008_v5 = vpack.c.bf16 %v1944_v13, %v1944_v13  ;;  %v1859_v15 = vmax.f32 %v1857_v10, %v1858_v23 }
 0x163   : > { %v1961_v19 = vrot.slane %v1960_v0, 1  ;;  %v2009_v55 = vpack.c.bf16 %v1953_v20, %v1953_v20  ;;  %v1867_v63 = vrot.slane %v1866_v27, 4  ;;  %v1876_v28 = vrot.slane %v1875_v35, 4 }
 0x164   : > { %v1884_v29 = vmax.f32 %v1882_v3, %v1883_v40  ;;  %v2093_v16 = vrot.slane %v2007_v56, %v3399_v34  ;;  %v2100_v43 = vrot.slane %v2008_v5, %v3399_v34  ;;  %v1860_v11 = vrot.slane %v1859_v15, 2 }
 0x165   : > { %v1962_v52 = vmax.f32 %v1960_v0, %v1961_v19  ;;  %v2107_v8 = vrot.slane %v2009_v55, %v3399_v34  ;;  %v1868_v61 = vmax.f32 %v1866_v27, %v1867_v63  ;;  %v1877_v44 = vmax.f32 %v1875_v35, %v1876_v28 }
 0x166   : > { %v1885_v33 = vrot.slane %v1884_v29, 4  ;;  %v2205_v60 = vrot.slane %v2093_v16, %v3399_v34  ;;  %v2212_v37 = vrot.slane %v2100_v43, %v3399_v34  ;;  %v1861_v39 = vmax.f32 %v1859_v15, %v1860_v11 }
 0x167   : > { %v2010_v1 = vpack.c.bf16 %v1962_v52, %v1962_v52  ;;  %v2219_v21 = vrot.slane %v2107_v8, %v3399_v34  ;;  %v1869_v59 = vrot.slane %v1868_v61, 2  ;;  %v1878_v24 = vrot.slane %v1877_v44, 2 }
 0x168   : > { %v1886_v41 = vmax.f32 %v1884_v29, %v1885_v33  ;;  %v2264_v32 = vunpack.c.l.b16 %v2212_v37  ;;  %v1862_v9 = vrot.slane %v1861_v39, 1  ;;  %v2263_v31 = vunpack.c.l.b16 %v2205_v60 }
 0x169   : > { %v2114_v62 = vrot.slane %v2010_v1, %v3399_v34  ;;  %v2265_v3 = vunpack.c.l.b16 %v2219_v21  ;;  %v1870_v4 = vmax.f32 %v1868_v61, %v1869_v59  ;;  %v1879_v18 = vmax.f32 %v1877_v44, %v1878_v24 }
 0x16a   : > { %v1887_v53 = vrot.slane %v1886_v41, 2  ;;  %v2286_v6 = vrot.slane %v2264_v32, 7  ;;  %v1863_v17 = vmax.f32 %v1861_v39, %v1862_v9 }
 0x16b   : > { %v2226_v14 = vrot.slane %v2114_v62, %v3399_v34  ;;  %v2288_v38 = vrot.slane %v2265_v3, 6  ;;  %v1871_v36 = vrot.slane %v1870_v4, 1  ;;  %v1880_v26 = vrot.slane %v1879_v18, 1 }
 0x16c   : > { %v1888_v54 = vmax.f32 %v1886_v41, %v1887_v53  ;;  %v2287_v30 = vsel %vm2272_vm8, %v2286_v6, %v2263_v31  ;;  %v1999_v46 = vpack.c.bf16 %v1863_v17, %v1863_v17 }
 0x16d   : > { %v2266_v50 = vunpack.c.l.b16 %v2226_v14  ;;  %v2289_v58 = vsel %vm2275_vm9, %v2288_v38, %v2287_v30  ;;  %v1872_v48 = vmax.f32 %v1870_v4, %v1871_v36  ;;  %v1881_v12 = vmax.f32 %v1879_v18, %v1880_v26 }
 0x16e   : > { %v1889_v49 = vrot.slane %v1888_v54, 1  ;;  %v2037_v10 = vrot.slane %v1999_v46, %v3399_v34 }
 0x16f   : > { %v2290_v2 = vrot.slane %v2266_v50, 5  ;;  %v2000_v57 = vpack.c.bf16 %v1872_v48, %v1872_v48  ;;  %v2001_v42 = vpack.c.bf16 %v1881_v12, %v1881_v12 }
 0x170   : > { %v1890_v45 = vmax.f32 %v1888_v54, %v1889_v49  ;;  %v2149_v0 = vrot.slane %v2037_v10, %v3399_v34 }
 0x171   : > { %v2291_v22 = vsel %vm2278_vm10, %v2290_v2, %v2289_v58  ;;  %v2044_v51 = vrot.slane %v2000_v57, %v3399_v34  ;;  %v2051_v7 = vrot.slane %v2001_v42, %v3399_v34 }
 0x172   : > { %v2300_v25 = vpack.c.b16 %v2291_v22, %v2291_v22  ;;  %v2002_v47 = vpack.c.bf16 %v1890_v45, %v1890_v45  ;;  %v2255_v19 = vunpack.c.l.b16 %v2149_v0 }
 0x173   : > { %v2156_v23 = vrot.slane %v2044_v51, %v3399_v34  ;;  %v2163_v20 = vrot.slane %v2051_v7, %v3399_v34 }
 0x174   : > { %2571 = vst.sshfl [vmem:[%s3502_s18 + $0x4] sm:$0x3 pattern:$0x76325410] %v2300_v25  ;;  %v2058_v13 = vrot.slane %v2002_v47, %v3399_v34 }
 0x175   : > { %v2256_v35 = vunpack.c.l.b16 %v2156_v23  ;;  %v2257_v40 = vunpack.c.l.b16 %v2163_v20 }
 0x176   : > { %v2170_v27 = vrot.slane %v2058_v13, %v3399_v34 }
 0x177   : > { %v2271_v5 = vrot.slane %v2256_v35, 7  ;;  %v2274_v15 = vrot.slane %v2257_v40, 6 }
 0x178   : > { %v2258_v56 = vunpack.c.l.b16 %v2170_v27 }
 0x179   : > { %v2273_v55 = vsel %vm2272_vm8, %v2271_v5, %v2255_v19 }
 0x17a   : > { %v2277_v63 = vrot.slane %v2258_v56, 5  ;;  %v2276_v28 = vsel %vm2275_vm9, %v2274_v15, %v2273_v55 }
 0x17c   : > { %v2279_v29 = vsel %vm2278_vm10, %v2277_v63, %v2276_v28 }
 0x17d   : > { %v2298_v52 = vpack.c.b16 %v2279_v29, %v2279_v29 }
 0x17f   : > { %2569 = vst.sshfl [vmem:[%s3502_s18] sm:$0x3 pattern:$0x76325410] %v2298_v52 }
 0x180 PF: > { %s15_s20 = sadd.s32 1, %s2896_s20   ;;  %s3581_s18 = smov %s2892_s19 }
 0x181   : > { %p12_p5 = scmp.ge.s32.totalorder %s15_s20, 4   ;;  %s3582_s19 = smov %s3584_s21 }
 0x183   :  { %14 = sbr.rel (!%p12_p5) target bundleno = 2 (0x2), region = 73 }

// kernel: plate_model_forward.6
= control target key start
LH: loop header
LB: loop body
LE: loop exit
PB: predicated region body
PF: predicated region fallthrough
CT: control target
= control target key end

     0   :  { %s2812_s18 = smov 0   ;;  %s2814_s19 = smov 0   ;;  %s3541_s0 = inlined_call_operand.vmem [shape: bf16[2,6,6,128], index: 0, kind: input, shape index: {}, may-alias: {0,1}]   ;;  %s3542_s1 = inlined_call_operand.vmem [shape: bf16[2,6,6,128], index: 1, kind: input, shape index: {}, may-alias: {0,1}]   ;;  %s3543_s2 = inlined_call_operand.vmem [shape: bf16[1152,256], index: 2, kind: input, shape index: {}]   ;;  %s3544_s3 = inlined_call_operand.vmem [shape: f32[1,256], index: 3, kind: input, shape index: {}]   ;;  %s3545_s4 = inlined_call_operand.vmem [shape: f32[1,256], index: 4, kind: input, shape index: {}]   ;;  %s3546_s5 = inlined_call_operand.vmem [shape: bf16[2,2,2,256], index: 5, kind: output, shape index: {}]  }
   0x1   :  { %s2816_s20 = smov 0  }
   0x2 LB: > { %s27_s21 = sadd.s32 1, %s2772_s19  ;;  %p2329_p0 = scmp.ge.s32.totalorder %s2776_s20, 1  ;;  %s2776_s20 = sphi %s2816_s20, %s15_s20   ;;  %s2772_s19 = sphi %s2814_s19, %s3560_s19   ;;  %s2768_s18 = sphi %s2812_s18, %s3559_s18  }
   0x3   : > { %p29_p1 = scmp.ge.s32.totalorder %s27_s21, 2  ;;  %p241_p2 = scmp.lt.s32.totalorder %s2776_s20, 3 }
   0x5   : > { %s3562_s21 = smov (%p29_p1, %s27_s21), 0  ;;  %p242_p3 = pnand %p2329_p0, %p241_p2 }
   0x6   : > { %p297_p4 = scmp.lt.s32.totalorder (!%p242_p3), %s2768_s18, 1 }
   0x7   : > { %245 = sbr.rel (%p242_p3) target bundleno = 432 (0x1b0), region = 40 }
   0xc   : > { %v2532_v0 = vld [vmem:[%s3543_s2 + $0x174] ss:$8 sps:$4 sm:$0xff]   ;;  %v2536_v2 = vld [vmem:[%s3543_s2 + $0x170] ss:$8 sps:$4 sm:$0xff]   ;;  %v2538_v4 = vld [vmem:[%s3543_s2 + $0x164] ss:$8 sps:$4 sm:$0xff]   ;;  %v385_v41 = vlaneseq }
   0xd   : > { %v2534_v1 = vld [vmem:[%s3543_s2 + $0x74] ss:$8 sps:$4 sm:$0xff]   ;;  %723 = vmatprep.subr.bf16.mxu0 %v2532_v0  ;;  %v2537_v3 = vld [vmem:[%s3543_s2 + $0x70] ss:$8 sps:$4 sm:$0xff]   ;;  %s3564_s18 = smov (!%p297_p4, %s2768_s18), 1  ;;  %vm488_vm0 = vcmask 1040384  }
   0xe   : > { %946 = vmatprep.subr.bf16.mxu1 %v2534_v1  ;;  %724 = vmatpush1.bf16.msra.mxu0 %v2536_v2  ;;  %v2540_v5 = vld [vmem:[%s3543_s2 + $0x64] ss:$8 sps:$4 sm:$0xff]   ;;  %v2542_v6 = vld [vmem:[%s3543_s2 + $0x160] ss:$8 sps:$4 sm:$0xff]   ;;  %v2544_v8 = vld [vmem:[%s3543_s2 + $0x154] ss:$8 sps:$4 sm:$0xff]  }
   0xf   : > { %947 = vmatpush1.bf16.msra.mxu1 %v2537_v3  ;;  %725 = vmatprep.subr.bf16.mxu0 %v2538_v4  ;;  %v2543_v7 = vld [vmem:[%s3543_s2 + $0x60] ss:$8 sps:$4 sm:$0xff]   ;;  %v2546_v9 = vld [vmem:[%s3543_s2 + $0x54] ss:$8 sps:$4 sm:$0xff]   ;;  %v2548_v10 = vld [vmem:[%s3543_s2 + $0x150] ss:$8 sps:$4 sm:$0xff]  }
  0x10   : > { %948 = vmatprep.subr.bf16.mxu1 %v2540_v5  ;;  %v2549_v11 = vld [vmem:[%s3543_s2 + $0x50] ss:$8 sps:$4 sm:$0xff]   ;;  %v2550_v12 = vld [vmem:[%s3543_s2 + $0x144] ss:$8 sps:$4 sm:$0xff]   ;;  %v2554_v14 = vld [vmem:[%s3543_s2 + $0x140] ss:$8 sps:$4 sm:$0xff]  }
  0x11   : > { %v2552_v13 = vld [vmem:[%s3543_s2 + $0x44] ss:$8 sps:$4 sm:$0xff]   ;;  %v2555_v15 = vld [vmem:[%s3543_s2 + $0x40] ss:$8 sps:$4 sm:$0xff]   ;;  %v2556_v16 = vld [vmem:[%s3543_s2 + $0x134] ss:$8 sps:$4 sm:$0xff]  }
  0x12   : > { %726 = vmatpush1.bf16.msra.mxu0 %v2542_v6  ;;  %v2558_v17 = vld [vmem:[%s3543_s2 + $0x34] ss:$8 sps:$4 sm:$0xff]   ;;  %v2560_v18 = vld [vmem:[%s3543_s2 + $0x130] ss:$8 sps:$4 sm:$0xff]   ;;  %v2562_v20 = vld [vmem:[%s3543_s2 + $0x124] ss:$8 sps:$4 sm:$0xff]  }
  0x13   : > { %949 = vmatpush1.bf16.msra.mxu1 %v2543_v7  ;;  %727 = vmatprep.subr.bf16.mxu0 %v2544_v8  ;;  %v2561_v19 = vld [vmem:[%s3543_s2 + $0x30] ss:$8 sps:$4 sm:$0xff]   ;;  %v2564_v21 = vld [vmem:[%s3543_s2 + $0x24] ss:$8 sps:$4 sm:$0xff]   ;;  %v2566_v22 = vld [vmem:[%s3543_s2 + $0x120] ss:$8 sps:$4 sm:$0xff]  }
  0x14   : > { %950 = vmatprep.subr.bf16.mxu1 %v2546_v9  ;;  %v2567_v23 = vld [vmem:[%s3543_s2 + $0x20] ss:$8 sps:$4 sm:$0xff]   ;;  %v2568_v24 = vld [vmem:[%s3543_s2 + $0x114] ss:$8 sps:$4 sm:$0xff]   ;;  %v2572_v26 = vld [vmem:[%s3543_s2 + $0x110] ss:$8 sps:$4 sm:$0xff]  }
  0x15   : > { %v2570_v25 = vld [vmem:[%s3543_s2 + $0x14] ss:$8 sps:$4 sm:$0xff]   ;;  %v2573_v27 = vld [vmem:[%s3543_s2 + $0x10] ss:$8 sps:$4 sm:$0xff]   ;;  %v2574_v28 = vld [vmem:[%s3543_s2 + $0x104] ss:$8 sps:$4 sm:$0xff]  }
  0x16   : > { %728 = vmatpush1.bf16.msra.mxu0 %v2548_v10  ;;  %v2576_v29 = vld [vmem:[%s3543_s2 + $0x4] ss:$8 sps:$4 sm:$0xff]   ;;  %v2578_v30 = vld [vmem:[%s3543_s2 + $0x100] ss:$8 sps:$4 sm:$0xff]   ;;  %v2580_v32 = vld [vmem:[%s3543_s2 + $0x1f4] ss:$8 sps:$4 sm:$0xff]  }
  0x17   : > { %951 = vmatpush1.bf16.msra.mxu1 %v2549_v11  ;;  %729 = vmatprep.subr.bf16.mxu0 %v2550_v12  ;;  %v2579_v31 = vld [vmem:[%s3543_s2] ss:$8 sps:$4 sm:$0xff]   ;;  %v2582_v33 = vld [vmem:[%s3543_s2 + $0xf4] ss:$8 sps:$4 sm:$0xff]   ;;  %v2584_v34 = vld [vmem:[%s3543_s2 + $0x1f0] ss:$8 sps:$4 sm:$0xff]  }
  0x18   : > { %952 = vmatprep.subr.bf16.mxu1 %v2552_v13  ;;  %v2585_v35 = vld [vmem:[%s3543_s2 + $0xf0] ss:$8 sps:$4 sm:$0xff]   ;;  %v2586_v36 = vld [vmem:[%s3543_s2 + $0x1e4] ss:$8 sps:$4 sm:$0xff]   ;;  %s2501_s10 = smul.u32 24, %s3564_s18  ;;  %v2968_v48 = vshrl.u32 %v385_v41, 7 }
  0x19   : > { %v2588_v37 = vld [vmem:[%s3543_s2 + $0xe4] ss:$8 sps:$4 sm:$0xff]   ;;  %v2590_v38 = vld [vmem:[%s3543_s2 + $0x1e0] ss:$8 sps:$4 sm:$0xff]   ;;  %v2778_v39 = vmov 1983009808  }
  0x1a   : > { %730 = vmatpush1.bf16.msra.mxu0 %v2554_v14  ;;  %v383_v40 = vunpack.c.l.s4 %v2778_v39  ;;  %v2591_v42 = vld [vmem:[%s3543_s2 + $0xe0] ss:$8 sps:$4 sm:$0xff]   ;;  %v2592_v43 = vld [vmem:[%s3543_s2 + $0x1d4] ss:$8 sps:$4 sm:$0xff]   ;;  %s2500_s23 = sadd.s32 16, %s2501_s10  ;;  %s304_s30 = scalar_lea.vmem %s3541_s0, %s2501_s10  ;;  %vm489_vm1 = vcmask 1042434  }
  0x1b   : > { %953 = vmatpush1.bf16.msra.mxu1 %v2555_v15  ;;  %731 = vmatprep.subr.bf16.mxu0 %v2556_v16  ;;  %v2594_v44 = vld [vmem:[%s3543_s2 + $0xd4] ss:$8 sps:$4 sm:$0xff]   ;;  %v2596_v45 = vld [vmem:[%s3543_s2 + $0x1d0] ss:$8 sps:$4 sm:$0xff]   ;;  %v2598_v49 = vld [vmem:[%s3543_s2 + $0x1c4] ss:$8 sps:$4 sm:$0xff]   ;;  %s2979_s13 = scalar_lea.vmem %s3542_s1, %s2500_s23 }
  0x1c   : > { %954 = vmatprep.subr.bf16.mxu1 %v2558_v17  ;;  %v2597_v46 = vld [vmem:[%s3543_s2 + $0xd0] ss:$8 sps:$4 sm:$0xff]   ;;  %v384_v47 = vunpack.c.0.s8 %v383_v40  ;;  %v2600_v50 = vld [vmem:[%s3543_s2 + $0xc4] ss:$8 sps:$4 sm:$0xff]   ;;  %v2602_v51 = vld [vmem:[%s3543_s2 + $0x1c0] ss:$8 sps:$4 sm:$0xff]  }
  0x1d   : > { %v2603_v52 = vld [vmem:[%s3543_s2 + $0xc0] ss:$8 sps:$4 sm:$0xff]   ;;  %v2989_v54 = vld [vmem:[%s304_s30 + $0x4] sm:$0x7]  ;;  %v2993_v56 = vld [vmem:[%s304_s30 + $0xc] sm:$0x7] }
  0x1e   : > { %732 = vmatpush1.bf16.msra.mxu0 %v2560_v18  ;;  %v2987_v53 = vld [vmem:[%s304_s30] sm:$0x7]  ;;  %v2991_v55 = vld [vmem:[%s304_s30 + $0x8] sm:$0x7]  ;;  %v2996_v57 = vsub.s32 %v384_v47, %v2968_v48  ;;  %v2604_v59 = vld [vmem:[%s3543_s2 + $0x1b4] ss:$8 sps:$4 sm:$0xff]   ;;  %v3008_v61 = vcombine.low %v2989_v54, %v2989_v54  ;;  %v3016_v63 = vcombine.low %v2993_v56, %v2993_v56 }
  0x1f   : > { %955 = vmatpush1.bf16.msra.mxu1 %v2561_v19  ;;  %733 = vmatprep.subr.bf16.mxu0 %v2562_v20  ;;  %v2333_v58 = vcombine.low %v2987_v53, %v2987_v53  ;;  %v3004_v60 = vld [vmem:[%s2979_s13] sm:$0x7]  ;;  %v3012_v62 = vcombine.low %v2991_v55, %v2991_v55  ;;  %v2606_v0 = vld [vmem:[%s3543_s2 + $0xb4] ss:$8 sps:$4 sm:$0xff]   ;;  %vm491_vm2 = vcmask 1044484   ;;  %vm3036_vm3 = vmor %vm488_vm0, %vm489_vm1  ;;  %vm493_vm4 = vcmask 1046534  }
  0x20   : > { %956 = vmatprep.subr.bf16.mxu1 %v2564_v21  ;;  %v3023_v1 = vcombine.low %v3004_v60, %v3004_v60  ;;  %v2608_v4 = vld [vmem:[%s3543_s2 + $0x1b0] ss:$8 sps:$4 sm:$0xff]   ;;  %v448_v6 = vrot.slane %v3008_v61, 7  ;;  %v450_v8 = vrot.slane %v3016_v63, 7  ;;  %v361_v12 = vshrl.u32 %v3008_v61, 16  ;;  %vm3060_vm5 = vmor %vm3036_vm3, %vm491_vm2  ;;  %s2332_s7 = sshll.u32 %s3564_s18, 2 }
  0x21   : > { %v354_v2 = vshrl.u32 %v2333_v58, 16  ;;  %v356_v3 = vshll.u32 %v2333_v58, 16  ;;  %v2609_v5 = vld [vmem:[%s3543_s2 + $0xb0] ss:$8 sps:$4 sm:$0xff]   ;;  %v449_v7 = vrot.slane %v3012_v62, 7  ;;  %v3044_v13 = vrot.slane %v2991_v55, %v2996_v57  ;;  %vm3088_vm6 = vmor %vm3060_vm5, %vm493_vm4 }
  0x22   : > { %734 = vmatpush1.bf16.msra.mxu0 %v2566_v22  ;;  %v451_v10 = vrot.slane %v3023_v1, 7  ;;  %v2610_v14 = vld [vmem:[%s3543_s2 + $0x1a4] ss:$8 sps:$4 sm:$0xff]   ;;  %v452_v16 = vcombine.low %v2987_v53, %v448_v6  ;;  %v470_v18 = vcombine.low %v2991_v55, %v450_v8  ;;  %v363_v19 = vshll.u32 %v3008_v61, 16  ;;  %v2620_v61 = vld [vmem:[%s3543_s2 + $0x190] ss:$8 sps:$4 sm:$0xff]  }
  0x23   : > { %957 = vmatpush1.bf16.msra.mxu1 %v2567_v23  ;;  %735 = vmatprep.subr.bf16.mxu0 %v2568_v24  ;;  %v358_v11 = vrot.slane %v356_v3, 1  ;;  %v2612_v15 = vld [vmem:[%s3543_s2 + $0xa4] ss:$8 sps:$4 sm:$0xff]   ;;  %v461_v17 = vcombine.low %v2989_v54, %v449_v7  ;;  %v992_v22 = vshll.u32 %v3023_v1, 16  ;;  %v368_v24 = vshrl.u32 %v3012_v62, 16 }
  0x24   : > { %958 = vmatprep.subr.bf16.mxu1 %v2570_v25  ;;  %v479_v20 = vcombine.low %v2993_v56, %v451_v10  ;;  %v2614_v25 = vld [vmem:[%s3543_s2 + $0x1a0] ss:$8 sps:$4 sm:$0xff]   ;;  %v2624_v3 = vld [vmem:[%s3543_s2 + $0x84] ss:$8 sps:$4 sm:$0xff]   ;;  %v990_v6 = vshrl.u32 %v3023_v1, 16  ;;  %v2471_v21 = vrot.slane %v3044_v13, 9 }
  0x25   : > { %v359_v23 = vor.u32 %v358_v11, %v354_v2  ;;  %v2627_v1 = vld [vmem:[%s3543_s2 + $0x80] ss:$8 sps:$4 sm:$0xff]   ;;  %vm1008_vm7 = vsmask.f32 1280  ;;  %vm1009_vm8 = vsmask.f32 3336 }
  0x26   : > { %736 = vmatpush1.bf16.msra.mxu0 %v2572_v26  ;;  %v2615_v26 = vld [vmem:[%s3543_s2 + $0xa0] ss:$8 sps:$4 sm:$0xff]   ;;  %vm1011_vm9 = vsmask.f32 5392  ;;  %vm3182_vm10 = vmor %vm1008_vm7, %vm1009_vm8  ;;  %vm1013_vm11 = vsmask.f32 7448 }
  0x27   : > { %959 = vmatpush1.bf16.msra.mxu1 %v2573_v27  ;;  %737 = vmatprep.subr.bf16.mxu0 %v2574_v28  ;;  %v459_v27 = vrot.slane %v452_v16, %v2996_v57  ;;  %v468_v28 = vrot.slane %v461_v17, %v2996_v57  ;;  %v1606_v17 = vcombine.high %v3044_v13, %v3044_v13  ;;  %vm3204_vm12 = vmor %vm3182_vm10, %vm1011_vm9  ;;  %v2692_v40 = vld [vmem:[%s3543_s2 + $0x3e4] ss:$8 sps:$4 sm:$0xff]   ;;  %vm1964_vm14 = vcmask 1041408  }
  0x28   : > { %960 = vmatprep.subr.bf16.mxu1 %v2576_v29  ;;  %v477_v29 = vrot.slane %v470_v18, %v2996_v57  ;;  %vm3230_vm13 = vmor %vm3204_vm12, %vm1013_vm11  ;;  %vm2178_vm15 = vcmask 1041409  }
  0x29   : > { %v2338_v41 = vrot.slane %v459_v27, 9 }
  0x2a   : > { %738 = vmatpush1.bf16.msra.mxu0 %v2578_v30  ;;  %v365_v30 = vrot.slane %v363_v19, 1  ;;  %v478_v39 = vcombine.high %v477_v29, %v477_v29 }
  0x2b   : > { %961 = vmatpush1.bf16.msra.mxu1 %v2579_v31  ;;  %739 = vmatprep.subr.bf16.mxu0 %v2580_v32  ;;  %v2616_v31 = vld [vmem:[%s3543_s2 + $0x194] ss:$8 sps:$4 sm:$0xff]   ;;  %v486_v32 = vrot.slane %v479_v20, %v2996_v57 }
  0x2c   : > { %962 = vmatprep.subr.bf16.mxu1 %v2582_v33  ;;  %v370_v33 = vshll.u32 %v3012_v62, 16  ;;  %v2621_v62 = vld [vmem:[%s3543_s2 + $0x90] ss:$8 sps:$4 sm:$0xff]  }
  0x2e   : > { %740 = vmatpush2.bf16.msra.mxu0 %v2584_v34  ;;  %v375_v34 = vshrl.u32 %v3016_v63, 16 }
  0x2f   : > { %963 = vmatpush2.bf16.msra.mxu1 %v2585_v35  ;;  %741 = vmatprep.subr.bf16.mxu0 %v2586_v36  ;;  %v377_v35 = vshll.u32 %v3016_v63, 16  ;;  %v2618_v36 = vld [vmem:[%s3543_s2 + $0x94] ss:$8 sps:$4 sm:$0xff]  }
  0x30   : > { %964 = vmatprep.subr.bf16.mxu1 %v2588_v37  ;;  %v460_v37 = vcombine.high %v459_v27, %v459_v27 }
  0x31   : > { %v379_v58 = vrot.slane %v377_v35, 1 }
  0x32   : > { %742 = vmatpush2.bf16.msra.mxu0 %v2590_v38  ;;  %v469_v38 = vcombine.high %v468_v28, %v468_v28 }
  0x33   : > { %965 = vmatpush2.bf16.msra.mxu1 %v2591_v42  ;;  %743 = vmatprep.subr.bf16.mxu0 %v2592_v43  ;;  %v487_v42 = vcombine.high %v486_v32, %v486_v32  ;;  %v2339_v43 = vrot.slane %v468_v28, 9  ;;  %v380_v9 = vor.u32 %v379_v58, %v375_v34  ;;  %v2645_v58 = vld [vmem:[%s3543_s2 + $0x250] ss:$8 sps:$4 sm:$0xff]  }
  0x34   : > { %966 = vmatprep.subr.bf16.mxu1 %v2594_v44  ;;  %v2340_v44 = vrot.slane %v477_v29, 9  ;;  %v501_v47 = vrot.slane %v469_v38, 7 }
  0x35   : > { %v405_v19 = vcombine.low %v2993_v56, %v380_v9  ;;  %v2648_v9 = vld [vmem:[%s3543_s2 + $0x350] ss:$8 sps:$4 sm:$0xff]  }
  0x36   : > { %744 = vmatpush2.bf16.msra.mxu0 %v2596_v45  ;;  %v2341_v45 = vrot.slane %v486_v32, 9 }
  0x37   : > { %967 = vmatpush2.bf16.msra.mxu1 %v2597_v46  ;;  %745 = vmatprep.subr.bf16.mxu0 %v2598_v49  ;;  %v497_v46 = vrot.slane %v460_v37, 7  ;;  %v505_v49 = vrot.slane %v478_v39, 7 }
  0x38   : > { %968 = vmatprep.subr.bf16.mxu1 %v2600_v50  ;;  %v366_v50 = vor.u32 %v365_v30, %v361_v12  ;;  %v2626_v12 = vld [vmem:[%s3543_s2 + $0x180] ss:$8 sps:$4 sm:$0xff]  }
  0x39   : > { %v498_v63 = vsel %vm3088_vm6, %v2338_v41, %v497_v46  ;;  %v506_v2 = vsel %vm3088_vm6, %v2340_v44, %v505_v49  ;;  %v2639_v44 = vld [vmem:[%s3543_s2 + $0x260] ss:$8 sps:$4 sm:$0xff]   ;;  %v2647_v49 = vld [vmem:[%s3543_s2 + $0x254] ss:$8 sps:$4 sm:$0xff]  }
  0x3a   : > { %746 = vmatpush2.bf16.msra.mxu0 %v2602_v51  ;;  %v509_v51 = vrot.slane %v487_v42, 7  ;;  %v389_v11 = vcombine.low %v2989_v54, %v366_v50 }
  0x3b   : > { %969 = vmatpush2.bf16.msra.mxu1 %v2603_v52  ;;  %747 = vmatprep.subr.bf16.mxu0 %v2604_v59  ;;  %v372_v52 = vrot.slane %v370_v33, 1  ;;  %v381_v59 = vcombine.low %v2987_v53, %v359_v23  ;;  %v2622_v53 = vld [vmem:[%s3543_s2 + $0x184] ss:$8 sps:$4 sm:$0xff]   ;;  %v3137_v23 = vrot.slane %v405_v19, %v2996_v57  ;;  %v2686_v19 = vld [vmem:[%s3543_s2 + $0x3f4] ss:$8 sps:$4 sm:$0xff]  }
  0x3c   : > { %970 = vmatprep.subr.bf16.mxu1 %v2606_v0  ;;  %v502_v0 = vsel %vm3088_vm6, %v2339_v43, %v501_v47  ;;  %v396_v18 = vrot.slane %v389_v11, %v2996_v57  ;;  %v2641_v33 = vld [vmem:[%s3543_s2 + $0x264] ss:$8 sps:$4 sm:$0xff]  }
  0x3d   : > { %v373_v7 = vor.u32 %v372_v52, %v368_v24  ;;  %v388_v10 = vrot.slane %v381_v59, %v2996_v57  ;;  %v2644_v47 = vld [vmem:[%s3543_s2 + $0x364] ss:$8 sps:$4 sm:$0xff]  }
  0x3e   : > { %748 = vmatpush2.bf16.msra.mxu0 %v2608_v4  ;;  %v510_v4 = vsel %vm3088_vm6, %v2341_v45, %v509_v51  ;;  %v1016_v29 = vshrl.u32 %v396_v18, 16  ;;  %v1019_v32 = vshll.u32 %v396_v18, 16  ;;  %v996_v37 = vcombine.high %v396_v18, %v396_v18  ;;  %v2642_v51 = vld [vmem:[%s3543_s2 + $0x360] ss:$8 sps:$4 sm:$0xff]   ;;  %v2656_v11 = vld [vmem:[%s3543_s2 + $0x344] ss:$8 sps:$4 sm:$0xff]  }
  0x3f   : > { %971 = vmatpush2.bf16.msra.mxu1 %v2609_v5  ;;  %749 = vmatprep.subr.bf16.mxu0 %v2610_v14  ;;  %v543_v5 = vcombine.low %v498_v63, %v502_v0  ;;  %v544_v8 = vcombine.low %v506_v2, %v510_v4  ;;  %v397_v16 = vcombine.low %v2991_v55, %v373_v7  ;;  %v2635_v55 = vld [vmem:[%s3543_s2 + $0x274] ss:$8 sps:$4 sm:$0xff]  }
  0x40   : > { %972 = vmatprep.subr.bf16.mxu1 %v2612_v15  ;;  %v994_v15 = vrot.slane %v992_v22, 1  ;;  %v766_v24 = vcombine.low %v388_v10, %v396_v18  ;;  %v1018_v39 = vrot.slane %v1016_v29, 6  ;;  %v1021_v45 = vrot.slane %v1019_v32, 7  ;;  %v2651_v10 = vld [vmem:[%s3543_s2 + $0x240] ss:$8 sps:$4 sm:$0xff]  }
  0x41   : > { %v551_v14 = vrot.slane %v543_v5, %v2996_v57  ;;  %v558_v54 = vrot.slane %v544_v8, %v2996_v57  ;;  %v3130_v20 = vrot.slane %v397_v16, %v2996_v57  ;;  %v1025_v2 = vshll.u32 %v996_v37, 16  ;;  %v2660_v37 = vld [vmem:[%s3543_s2 + $0x330] ss:$8 sps:$4 sm:$0xff]   ;;  %v340_v5 = vld [vmem:[%s2979_s13 + $0x4] sm:$0x7]  ;;  %s332_s13 = scalar_lea.vmem %s3546_s5, %s2332_s7 }
  0x42   : > { %750 = vmatpush2.bf16.msra.mxu0 %v2614_v25  ;;  %v2638_v25 = vld [vmem:[%s3543_s2 + $0x374] ss:$8 sps:$4 sm:$0xff]   ;;  %v995_v28 = vor.u32 %v994_v15, %v990_v6  ;;  %v774_v13 = vrot.slane %v766_v24, %v2996_v57  ;;  %v1022_v0 = vor.u32 %v1021_v45, %v1018_v39  ;;  %v998_v4 = vcombine.high %v3137_v23, %v3137_v23 }
  0x43   : > { %973 = vmatpush2.bf16.msra.mxu1 %v2615_v26  ;;  %751 = vmatprep.subr.bf16.mxu0 %v2616_v31  ;;  %v560_v22 = vcombine.high %v551_v14, %v558_v54  ;;  %v1633_v26 = vrot.slane %v1606_v17, 7  ;;  %v559_v27 = vcombine.low %v551_v14, %v558_v54  ;;  %v767_v30 = vcombine.low %v3130_v20, %v3137_v23  ;;  %v2633_v31 = vld [vmem:[%s3543_s2 + $0x270] ss:$8 sps:$4 sm:$0xff]  }
  0x44   : > { %974 = vmatprep.subr.bf16.mxu1 %v2618_v36  ;;  %v2636_v36 = vld [vmem:[%s3543_s2 + $0x370] ss:$8 sps:$4 sm:$0xff]   ;;  %v999_v38 = vcombine.low %v3004_v60, %v995_v28  ;;  %v1030_v41 = vshrl.u32 %v3130_v20, 16  ;;  %v1033_v46 = vshll.u32 %v3130_v20, 16  ;;  %v997_v50 = vcombine.high %v3130_v20, %v3130_v20 }
  0x45   : > { %755 = vmatprep.mubr.bf16.mxu0 %v560_v22  ;;  %v3152_v34 = vrot.slane %v767_v30, %v2996_v57  ;;  %v3156_v35 = vsel %vm3088_vm6, %v2471_v21, %v1633_v26  ;;  %v1047_v8 = vshll.u32 %v3137_v23, 16  ;;  %v1613_v16 = vrot.slane %v2993_v56, %v2996_v57  ;;  %v2654_v22 = vld [vmem:[%s3543_s2 + $0x340] ss:$8 sps:$4 sm:$0xff]  }
  0x46   : > { %752 = vmatpush2.bf16.msra.mxu0 %v2620_v61  ;;  %v1032_v59 = vrot.slane %v1030_v41, 6  ;;  %v1035_v61 = vrot.slane %v1033_v46, 7  ;;  %v3193_v63 = vrot.slane %v999_v38, %v2996_v57  ;;  %v1039_v7 = vshll.u32 %v997_v50, 16 }
  0x47   : > { %975 = vmatpush2.bf16.msra.mxu1 %v2621_v62  ;;  %753 = vmatprep.subr.bf16.mxu0 %v2622_v53  ;;  %v783_v42 = vcombine.high %v774_v13, %v3152_v34  ;;  %v782_v43 = vcombine.low %v774_v13, %v3152_v34  ;;  %v2650_v62 = vld [vmem:[%s3543_s2 + $0x354] ss:$8 sps:$4 sm:$0xff]   ;;  %v1044_v53 = vshrl.u32 %v3137_v23, 16  ;;  %v1023_v17 = vrot.slane %v1022_v0, 2  ;;  %v2665_v13 = vld [vmem:[%s3543_s2 + $0x224] ss:$8 sps:$4 sm:$0xff]  }
  0x48   : > { %976 = vmatprep.subr.bf16.mxu1 %v2624_v3  ;;  %v2653_v3 = vld [vmem:[%s3543_s2 + $0x244] ss:$8 sps:$4 sm:$0xff]   ;;  %v1036_v6 = vor.u32 %v1035_v61, %v1032_v59  ;;  %v1007_v14 = vcombine.high %v3193_v63, %v3193_v63  ;;  %v1049_v54 = vrot.slane %v1047_v8, 7  ;;  %v1621_v18 = vrot.slane %v3004_v60, %v2996_v57  ;;  %v2657_v60 = vld [vmem:[%s3543_s2 + $0x230] ss:$8 sps:$4 sm:$0xff]  }
  0x49   : > { %978 = vmatprep.mubr.bf16.mxu1 %v783_v42  ;;  %v1046_v15 = vrot.slane %v1044_v53, 6  ;;  %v1053_v56 = vshll.u32 %v998_v4, 16  ;;  %v1058_v21 = vshrl.u32 %v3193_v63, 16  ;;  %v1614_v26 = vcombine.high %v1613_v16, %v1613_v16  ;;  %v2666_v61 = vld [vmem:[%s3543_s2 + $0x320] ss:$8 sps:$4 sm:$0xff]  }
  0x4a   : > { %754 = vmatpush2.bf16.msra.mxu0 %v2626_v12  ;;  %v2659_v12 = vld [vmem:[%s3543_s2 + $0x234] ss:$8 sps:$4 sm:$0xff]   ;;  %v1037_v20 = vrot.slane %v1036_v6, 2  ;;  %v1067_v29 = vshll.u32 %v1007_v14, 16  ;;  %v1622_v30 = vcombine.high %v1621_v18, %v1621_v18  ;;  %v2472_v41 = vrot.slane %v1613_v16, 9 }
  0x4b   : > { %977 = vmatpush2.bf16.msra.mxu1 %v2627_v1  ;;  %1283 = vmatprep.subr.bf16.mxu0 %v2635_v55  ;;  %v1027_v1 = vrot.slane %v1025_v2, 7  ;;  %v1041_v55 = vrot.slane %v1039_v7, 7  ;;  %v1050_v23 = vor.u32 %v1049_v54, %v1046_v15  ;;  %v1060_v24 = vrot.slane %v1058_v21, 6  ;;  %v2669_v0 = vld [vmem:[%s3543_s2 + $0x210] ss:$8 sps:$4 sm:$0xff]  }
  0x4c   : > { %1552 = vmatprep.subr.bf16.mxu1 %v2638_v25  ;;  %v1061_v25 = vshll.u32 %v3193_v63, 16  ;;  %v1069_v39 = vrot.slane %v1067_v29, 7  ;;  %v1637_v42 = vrot.slane %v1614_v26, 7  ;;  %v2473_v45 = vrot.slane %v1621_v18, 9  ;;  %v2672_v6 = vld [vmem:[%s3543_s2 + $0x310] ss:$8 sps:$4 sm:$0xff]  }
  0x4d   : > { %756 = vmatmul.mubr.bf16.vlgmr.msra.gmra.mxu0 %v559_v27  ;;  %v2662_v27 = vld [vmem:[%s3543_s2 + $0x334] ss:$8 sps:$4 sm:$0xff]   ;;  %v1028_v28 = vsel %vm3230_vm13, %v1023_v17, %v1027_v1  ;;  %v1051_v32 = vrot.slane %v1050_v23, 2  ;;  %v1641_v46 = vrot.slane %v1622_v30, 7  ;;  %v2675_v7 = vld [vmem:[%s3543_s2 + $0x200] ss:$8 sps:$4 sm:$0xff]  }
  0x4e   : > { %1284 = vmatpush1.bf16.msra.mxu0 %v2633_v31  ;;  %979 = vmatmul.mubr.bf16.vlgmr.msra.gmra.mxu1 %v782_v43  ;;  %v1042_v31 = vsel %vm3230_vm13, %v1037_v20, %v1041_v55  ;;  %v2663_v43 = vld [vmem:[%s3543_s2 + $0x220] ss:$8 sps:$4 sm:$0xff]   ;;  %v1638_v52 = vsel %vm3088_vm6, %v2472_v41, %v1637_v42  ;;  %v2681_v54 = vld [vmem:[%s3543_s2 + $0x2f0] ss:$8 sps:$4 sm:$0xff]   ;;  %v2689_v20 = vld [vmem:[%s3543_s2 + $0x2e4] ss:$8 sps:$4 sm:$0xff]  }
  0x4f   : > { %1285 = vmatprep.subr.bf16.mxu0 %v2641_v33  ;;  %1553 = vmatpush1.bf16.msra.mxu1 %v2636_v36  ;;  %v1055_v33 = vrot.slane %v1053_v56, 7  ;;  %v1063_v36 = vrot.slane %v1061_v25, 7  ;;  %v1663_v59 = vcombine.low %v3156_v35, %v1638_v52  ;;  %v2674_v35 = vld [vmem:[%s3543_s2 + $0x314] ss:$8 sps:$4 sm:$0xff]   ;;  %v2678_v1 = vld [vmem:[%s3543_s2 + $0x300] ss:$8 sps:$4 sm:$0xff]  }
  0x50   : > { %1554 = vmatprep.subr.bf16.mxu1 %v2644_v47  ;;  %v2668_v47 = vld [vmem:[%s3543_s2 + $0x324] ss:$8 sps:$4 sm:$0xff]   ;;  %v2687_v23 = vld [vmem:[%s3543_s2 + $0x2e0] ss:$8 sps:$4 sm:$0xff]   ;;  %v2695_v26 = vld [vmem:[%s3543_s2 + $0x2d4] ss:$8 sps:$4 sm:$0xff]  }
  0x51   : > { %v1064_v38 = vor.u32 %v1063_v36, %v1060_v24  ;;  %v1056_v50 = vsel %vm3230_vm13, %v1051_v32, %v1055_v33  ;;  %v3328_v25 = vrot.slane %v1663_v59, %v2996_v57  ;;  %v2690_v29 = vld [vmem:[%s3543_s2 + $0x3e0] ss:$8 sps:$4 sm:$0xff]   ;;  %v2693_v30 = vld [vmem:[%s3543_s2 + $0x2d0] ss:$8 sps:$4 sm:$0xff]   ;;  %v2698_v32 = vld [vmem:[%s3543_s2 + $0x3d4] ss:$8 sps:$4 sm:$0xff]  }
  0x52   : > { %1286 = vmatpush1.bf16.msra.mxu0 %v2639_v44  ;;  %v1103_v44 = vcombine.low %v1028_v28, %v1042_v31  ;;  %v2701_v33 = vld [vmem:[%s3543_s2 + $0x2c4] ss:$8 sps:$4 sm:$0xff]   ;;  %v2707_v41 = vld [vmem:[%s3543_s2 + $0x2b4] ss:$8 sps:$4 sm:$0xff]   ;;  %v2702_v42 = vld [vmem:[%s3543_s2 + $0x3c0] ss:$8 sps:$4 sm:$0xff]  }
  0x53   : > { %1287 = vmatprep.subr.bf16.mxu0 %v2647_v49  ;;  %1555 = vmatpush1.bf16.msra.mxu1 %v2642_v51  ;;  %v2671_v49 = vld [vmem:[%s3543_s2 + $0x214] ss:$8 sps:$4 sm:$0xff]   ;;  %v1065_v51 = vrot.slane %v1064_v38, 2  ;;  %v2717_v52 = vld [vmem:[%s3543_s2 + $0x290] ss:$8 sps:$4 sm:$0xff]  }
  0x54   : > { %1556 = vmatprep.subr.bf16.mxu1 %v2650_v62  ;;  %v3280_v53 = vrot.slane %v1103_v44, %v2996_v57  ;;  %v2710_v44 = vld [vmem:[%s3543_s2 + $0x3b4] ss:$8 sps:$4 sm:$0xff]   ;;  %v2725_v59 = vld [vmem:[%s3543_s2 + $0x284] ss:$8 sps:$4 sm:$0xff]  }
  0x55   : > { %v1070_v62 = vsel %vm3230_vm13, %v1065_v51, %v1069_v39  ;;  %v2704_v39 = vld [vmem:[%s3543_s2 + $0x3c4] ss:$8 sps:$4 sm:$0xff]   ;;  %v2714_v51 = vld [vmem:[%s3543_s2 + $0x3a0] ss:$8 sps:$4 sm:$0xff]  }
  0x56   : > { %1288 = vmatpush1.bf16.msra.mxu0 %v2645_v58  ;;  %v1642_v58 = vsel %vm3088_vm6, %v2473_v45, %v1641_v46  ;;  %v1104_v2 = vcombine.low %v1056_v50, %v1070_v62  ;;  %v2713_v45 = vld [vmem:[%s3543_s2 + $0x2a4] ss:$8 sps:$4 sm:$0xff]   ;;  %v2708_v46 = vld [vmem:[%s3543_s2 + $0x3b0] ss:$8 sps:$4 sm:$0xff]   ;;  %v2719_v50 = vld [vmem:[%s3543_s2 + $0x294] ss:$8 sps:$4 sm:$0xff]  }
  0x57   : > { %1289 = vmatprep.subr.bf16.mxu0 %v2653_v3  ;;  %1557 = vmatpush1.bf16.msra.mxu1 %v2648_v9  ;;  %v2677_v3 = vld [vmem:[%s3543_s2 + $0x204] ss:$8 sps:$4 sm:$0xff]   ;;  %v2438_v9 = vcombine.low %v340_v5, %v340_v5  ;;  %v2723_v62 = vld [vmem:[%s3543_s2 + $0x280] ss:$8 sps:$4 sm:$0xff]  }
  0x58   : > { %1558 = vmatprep.subr.bf16.mxu1 %v2656_v11  ;;  %v3289_v4 = vrot.slane %v1104_v2, %v2996_v57  ;;  %v2683_v11 = vld [vmem:[%s3543_s2 + $0x2f4] ss:$8 sps:$4 sm:$0xff]  }
  0x59   : > { %v1334_v14 = vshrl.u32 %v2438_v9, 16  ;;  %v1336_v15 = vshll.u32 %v2438_v9, 16  ;;  %v2731_v2 = vld [vmem:[%s3543_s2 + $0x474] ss:$8 sps:$4 sm:$0xff]   ;;  %v2736_v9 = vld [vmem:[%s3543_s2 + $0x450] ss:$8 sps:$4 sm:$0xff]  }
  0x5a   : > { %1290 = vmatpush1.bf16.msra.mxu0 %v2651_v10  ;;  %v1120_v8 = vcombine.high %v3280_v53, %v3289_v4  ;;  %v2680_v10 = vld [vmem:[%s3543_s2 + $0x304] ss:$8 sps:$4 sm:$0xff]  }
  0x5b   : > { %1291 = vmatprep.subr.bf16.mxu0 %v2659_v12  ;;  %1559 = vmatpush1.bf16.msra.mxu1 %v2654_v22  ;;  %v1629_v12 = vrot.slane %v340_v5, %v2996_v57  ;;  %v1338_v18 = vrot.slane %v1336_v15, 1  ;;  %v2684_v22 = vld [vmem:[%s3543_s2 + $0x3f0] ss:$8 sps:$4 sm:$0xff]   ;;  %v2745_v15 = vld [vmem:[%s3543_s2 + $0x420] ss:$8 sps:$4 sm:$0xff]  }
  0x5c   : > { %1560 = vmatprep.subr.bf16.mxu1 %v2662_v27  ;;  %1315 = vmatprep.mubr.bf16.mxu0 %v1120_v8  ;;  %v2779_v8 = vmov 0  }
  0x5d   : > { %v1630_v16 = vcombine.high %v1629_v12, %v1629_v12  ;;  %v2474_v17 = vrot.slane %v1629_v12, 9  ;;  %v1339_v56 = vor.u32 %v1338_v18, %v1334_v14  ;;  %v2742_v12 = vld [vmem:[%s3543_s2 + $0x430] ss:$8 sps:$4 sm:$0xff]   ;;  %v2747_v14 = vld [vmem:[%s3543_s2 + $0x424] ss:$8 sps:$4 sm:$0xff]  }
  0x5e   : > { %1292 = vmatpush1.bf16.msra.mxu0 %v2657_v60 }
  0x5f   : > { %1293 = vmatprep.subr.bf16.mxu0 %v2665_v13  ;;  %1561 = vmatpush1.bf16.msra.mxu1 %v2660_v37  ;;  %v1645_v55 = vrot.slane %v1630_v16, 7  ;;  %v1340_v60 = vcombine.low %v340_v5, %v1339_v56  ;;  %v2699_v37 = vld [vmem:[%s3543_s2 + $0x2c0] ss:$8 sps:$4 sm:$0xff]   ;;  %v2729_v5 = vld [vmem:[%s3543_s2 + $0x470] ss:$8 sps:$4 sm:$0xff]  }
  0x60   : > { %1562 = vmatprep.subr.bf16.mxu1 %v2668_v47  ;;  %v2711_v47 = vld [vmem:[%s3543_s2 + $0x2a0] ss:$8 sps:$4 sm:$0xff]   ;;  %v2750_v16 = vld [vmem:[%s3543_s2 + $0x414] ss:$8 sps:$4 sm:$0xff]  }
  0x61   : > { %v1646_v21 = vsel %vm3088_vm6, %v2474_v17, %v1645_v55  ;;  %v1347_v27 = vrot.slane %v1340_v60, %v2996_v57  ;;  %v2748_v17 = vld [vmem:[%s3543_s2 + $0x410] ss:$8 sps:$4 sm:$0xff]  }
  0x62   : > { %1294 = vmatpush1.bf16.msra.mxu0 %v2663_v43  ;;  %v1664_v24 = vcombine.low %v1642_v58, %v1646_v21  ;;  %v2705_v43 = vld [vmem:[%s3543_s2 + $0x2b0] ss:$8 sps:$4 sm:$0xff]   ;;  %v2722_v58 = vld [vmem:[%s3543_s2 + $0x394] ss:$8 sps:$4 sm:$0xff]  }
  0x63   : > { %1295 = vmatprep.subr.bf16.mxu0 %v2671_v49  ;;  %1563 = vmatpush1.bf16.msra.mxu1 %v2666_v61  ;;  %v1380_v13 = vcombine.low %v3193_v63, %v1347_v27  ;;  %v2696_v63 = vld [vmem:[%s3543_s2 + $0x3d0] ss:$8 sps:$4 sm:$0xff]   ;;  %v2716_v49 = vld [vmem:[%s3543_s2 + $0x3a4] ss:$8 sps:$4 sm:$0xff]  }
  0x64   : > { %1564 = vmatprep.subr.bf16.mxu1 %v2674_v35  ;;  %v3338_v28 = vrot.slane %v1664_v24, %v2996_v57  ;;  %v2720_v61 = vld [vmem:[%s3543_s2 + $0x390] ss:$8 sps:$4 sm:$0xff]   ;;  %v1119_v35 = vcombine.low %v3280_v53, %v3289_v4  ;;  %v2733_v53 = vld [vmem:[%s3543_s2 + $0x460] ss:$8 sps:$4 sm:$0xff]   ;;  %v2738_v4 = vld [vmem:[%s3543_s2 + $0x454] ss:$8 sps:$4 sm:$0xff]  }
  0x65   : > { %v1387_v36 = vrot.slane %v1380_v13, %v2996_v57 }
  0x66   : > { %1296 = vmatpush1.bf16.msra.mxu0 %v2669_v0  ;;  %v1679_v31 = vcombine.low %v3328_v25, %v3338_v28  ;;  %v2728_v0 = vld [vmem:[%s3543_s2 + $0x384] ss:$8 sps:$4 sm:$0xff]   ;;  %v1808_v25 = vld [vmem:[%s3544_s3] sm:$0x3] }
  0x67   : > { %1297 = vmatprep.subr.bf16.mxu0 %v2677_v3  ;;  %1565 = vmatpush1.bf16.msra.mxu1 %v2672_v6  ;;  %v1389_v38 = vcombine.high %v3152_v34, %v1387_v36  ;;  %v2726_v3 = vld [vmem:[%s3543_s2 + $0x380] ss:$8 sps:$4 sm:$0xff]   ;;  %v2735_v6 = vld [vmem:[%s3543_s2 + $0x464] ss:$8 sps:$4 sm:$0xff]  }
  0x68   : > { %1566 = vmatprep.subr.bf16.mxu1 %v2680_v10  ;;  %v2739_v10 = vld [vmem:[%s3543_s2 + $0x440] ss:$8 sps:$4 sm:$0xff]  }
  0x69   : > { %1584 = vmatprep.mubr.bf16.mxu1 %v1389_v38 }
  0x6a   : > { %1298 = vmatpush1.bf16.msra.mxu0 %v2675_v7  ;;  %v1388_v7 = vcombine.low %v3152_v34, %v1387_v36  ;;  %v2741_v34 = vld [vmem:[%s3543_s2 + $0x444] ss:$8 sps:$4 sm:$0xff]   ;;  %v1816_v36 = vsub.s32 1, %v2968_v48 }
  0x6b   : > { %1299 = vmatprep.subr.bf16.mxu0 %v2683_v11  ;;  %1567 = vmatpush1.bf16.msra.mxu1 %v2678_v1  ;;  %v2744_v11 = vld [vmem:[%s3543_s2 + $0x434] ss:$8 sps:$4 sm:$0xff]   ;;  %v2753_v1 = vld [vmem:[%s3543_s2 + $0x404] ss:$8 sps:$4 sm:$0xff]  }
  0x6c   : > { %1568 = vmatprep.subr.bf16.mxu1 %v2686_v19 }
  0x6e   : > { %1300 = vmatpush2.bf16.msra.mxu0 %v2681_v54  ;;  %v2751_v54 = vld [vmem:[%s3543_s2 + $0x400] ss:$8 sps:$4 sm:$0xff]  }
  0x6f   : > { %1301 = vmatprep.subr.bf16.mxu0 %v2689_v20  ;;  %1569 = vmatpush2.bf16.msra.mxu1 %v2684_v22 }
  0x70   : > { %1570 = vmatprep.subr.bf16.mxu1 %v2692_v40 }
  0x72   : > { %1302 = vmatpush2.bf16.msra.mxu0 %v2687_v23 }
  0x73   : > { %1303 = vmatprep.subr.bf16.mxu0 %v2695_v26  ;;  %1571 = vmatpush2.bf16.msra.mxu1 %v2690_v29 }
  0x74   : > { %1572 = vmatprep.subr.bf16.mxu1 %v2698_v32  ;;  %v1812_v32 = vsub.s32 0, %v2968_v48 }
  0x76   : > { %1304 = vmatpush2.bf16.msra.mxu0 %v2693_v30 }
  0x77   : > { %1305 = vmatprep.subr.bf16.mxu0 %v2701_v33  ;;  %1573 = vmatpush2.bf16.msra.mxu1 %v2696_v63  ;;  %v1824_v33 = vld [vmem:[%s3545_s4] sm:$0x3] }
  0x78   : > { %1574 = vmatprep.subr.bf16.mxu1 %v2704_v39 }
  0x7a   : > { %1306 = vmatpush2.bf16.msra.mxu0 %v2699_v37 }
  0x7b   : > { %1307 = vmatprep.subr.bf16.mxu0 %v2707_v41  ;;  %1575 = vmatpush2.bf16.msra.mxu1 %v2702_v42  ;;  %v1813_v42 = vrot.slane %v1808_v25, %v1812_v32 }
  0x7c   : > { %1576 = vmatprep.subr.bf16.mxu1 %v2710_v44  ;;  %v1829_v44 = vrot.slane %v1824_v33, %v1812_v32 }
  0x7e   : > { %1308 = vmatpush2.bf16.msra.mxu0 %v2705_v43 }
  0x7f   : > { %1309 = vmatprep.subr.bf16.mxu0 %v2713_v45  ;;  %1577 = vmatpush2.bf16.msra.mxu1 %v2708_v46 }
  0x80   : > { %1578 = vmatprep.subr.bf16.mxu1 %v2716_v49  ;;  %v1817_v49 = vrot.slane %v1808_v25, %v1816_v36 }
  0x82   : > { %1310 = vmatpush2.bf16.msra.mxu0 %v2711_v47 }
  0x83   : > { %1311 = vmatprep.subr.bf16.mxu0 %v2719_v50  ;;  %1579 = vmatpush2.bf16.msra.mxu1 %v2714_v51 }
  0x84   : > { %1580 = vmatprep.subr.bf16.mxu1 %v2722_v58 }
  0x86   : > { %1312 = vmatpush2.bf16.msra.mxu0 %v2717_v52 }
  0x87   : > { %1313 = vmatprep.subr.bf16.mxu0 %v2725_v59  ;;  %1581 = vmatpush2.bf16.msra.mxu1 %v2720_v61  ;;  %v1833_v61 = vrot.slane %v1824_v33, %v1816_v36 }
  0x88   : > { %1582 = vmatprep.subr.bf16.mxu1 %v2728_v0 }
  0x8a   : > { %1314 = vmatpush2.bf16.msra.mxu0 %v2723_v62 }
  0x8b   : > { %1761 = vmatprep.subr.bf16.mxu0 %v2731_v2  ;;  %1583 = vmatpush2.bf16.msra.mxu1 %v2726_v3 }
  0x8d   : > { %1316 = vmatmul.mubr.bf16.vlgmr.msra.gmra.mxu0 %v1119_v35 }
  0x8e   : > { %1762 = vmatpush1.bf16.msra.mxu0 %v2729_v5  ;;  %1793 = vmatprep.mubr.bf16.mxu0 %v2779_v8 }
  0x8f   : > { %1763 = vmatprep.subr.bf16.mxu0 %v2735_v6  ;;  %1585 = vmatmul.mubr.bf16.vlgmr.msra.gmra.mxu1 %v1388_v7 }
  0x92   : > { %1764 = vmatpush1.bf16.msra.mxu0 %v2733_v53 }
  0x93   : > { %1765 = vmatprep.subr.bf16.mxu0 %v2738_v4  ;;  %v2780_v4 = vmov 1966171168  }
  0x94   : > { %v2055_v8 = vunpack.c.l.s4 %v2780_v4 }
  0x96   : > { %1766 = vmatpush1.bf16.msra.mxu0 %v2736_v9 }
  0x97   : > { %1767 = vmatprep.subr.bf16.mxu0 %v2741_v34 }
  0x9a   : > { %1768 = vmatpush1.bf16.msra.mxu0 %v2739_v10 }
  0x9b   : > { %1769 = vmatprep.subr.bf16.mxu0 %v2744_v11 }
  0x9e   : > { %1770 = vmatpush1.bf16.msra.mxu0 %v2742_v12 }
  0x9f   : > { %1771 = vmatprep.subr.bf16.mxu0 %v2747_v14 }
  0xa2   : > { %1772 = vmatpush1.bf16.msra.mxu0 %v2745_v15 }
  0xa3   : > { %1773 = vmatprep.subr.bf16.mxu0 %v2750_v16  ;;  %v2056_v16 = vunpack.c.0.s8 %v2055_v8 }
  0xa6   : > { %1774 = vmatpush1.bf16.msra.mxu0 %v2748_v17 }
  0xa7   : > { %1775 = vmatprep.subr.bf16.mxu0 %v2753_v1 }
  0xaa   : > { %1776 = vmatpush1.bf16.msra.mxu0 %v2751_v54 }
  0xad   : > { %1794 = vmatmul.mubr.bf16.vlgmr.msra.gmra.mxu0 %v1679_v31 }
 0x10d   : > { %v757_v18 = vpop.f32.mrf.mxu0 }
 0x10e   : > { %v980_v19 = vpop.f32.mrf.mxu1 }
 0x10f   : > { %v759_v20 = vpop.f32.mrf.mxu0  ;;  %v981_v26 = vadd.f32 %v980_v19, %v757_v18 }
 0x110   : > { %v982_v55 = vpop.f32.mrf.mxu1 }
 0x111   : > { %v761_v56 = vpop.f32.mrf.mxu0  ;;  %v983_v30 = vadd.f32 %v982_v55, %v759_v20 }
 0x112   : > { %v984_v21 = vpop.f32.mrf.mxu1 }
 0x113   : > { %v763_v22 = vpop.f32.mrf.mxu0  ;;  %v985_v28 = vadd.f32 %v984_v21, %v761_v56  ;;  %v3484_v21 = vsub.s32 %v2056_v16, %v2968_v48 }
 0x114   : > { %v986_v60 = vpop.f32.mrf.mxu1 }
 0x115   : > { %v987_v38 = vadd.f32 %v986_v60, %v763_v22  ;;  %v2781_v22 = vmov 1935823168  }
 0x14d   : > { %v1317_v23 = vpop.f32.mrf.mxu0 }
 0x14e   : > { %v1326_v13 = vadd.f32 %v1317_v23, %v981_v26  ;;  %v3486_v23 = vunpack.c.l.s4 %v2781_v22 }
 0x14f   : > { %v1319_v24 = vpop.f32.mrf.mxu0  ;;  %v1586_v40 = vpop.f32.mrf.mxu1 }
 0x150   : > { %v1327_v31 = vadd.f32 %v1319_v24, %v983_v30  ;;  %v1595_v39 = vadd.f32 %v1586_v40, %v1326_v13 }
 0x151   : > { %v1321_v27 = vpop.f32.mrf.mxu0  ;;  %v1588_v29 = vpop.f32.mrf.mxu1 }
 0x152   : > { %v1328_v41 = vadd.f32 %v1321_v27, %v985_v28  ;;  %v1596_v45 = vadd.f32 %v1588_v29, %v1327_v31 }
 0x153   : > { %v1323_v63 = vpop.f32.mrf.mxu0  ;;  %v1590_v37 = vpop.f32.mrf.mxu1 }
 0x154   : > { %v1329_v46 = vadd.f32 %v1323_v63, %v987_v38  ;;  %v1597_v52 = vadd.f32 %v1590_v37, %v1328_v41 }
 0x155   : > { %v1592_v50 = vpop.f32.mrf.mxu1 }
 0x156   : > { %v1598_v0 = vadd.f32 %v1592_v50, %v1329_v46 }
 0x16d   : > { %v1795_v43 = vpop.f32.mrf.mxu0 }
 0x16e   : > { %v1804_v47 = vadd.f32 %v1795_v43, %v1595_v39 }
 0x16f   : > { %v1797_v51 = vpop.f32.mrf.mxu0 }
 0x170   : > { %v1820_v58 = vmul.f32 %v1813_v42, %v1804_v47  ;;  %v1805_v59 = vadd.f32 %v1797_v51, %v1596_v45 }
 0x171   : > { %v1799_v62 = vpop.f32.mrf.mxu0 }
 0x172   : > { %v1836_v2 = vadd.f32 %v1829_v44, %v1820_v58  ;;  %v1821_v35 = vmul.f32 %v1817_v49, %v1805_v59  ;;  %v1806_v3 = vadd.f32 %v1799_v62, %v1597_v52 }
 0x173   : > { %v1801_v5 = vpop.f32.mrf.mxu0 }
 0x174   : > { %v1837_v6 = vadd.f32 %v1833_v61, %v1821_v35  ;;  %v1822_v7 = vmul.f32 %v1813_v42, %v1806_v3  ;;  %v1807_v53 = vadd.f32 %v1801_v5, %v1598_v0  ;;  %v1840_v9 = vmax.f32 %v1836_v2, 0.0 }
 0x176   : > { %v1841_v34 = vmax.f32 %v1837_v6, 0.0  ;;  %v1823_v10 = vmul.f32 %v1817_v49, %v1807_v53  ;;  %v1838_v11 = vadd.f32 %v1829_v44, %v1822_v7 }
 0x178   : > { %v1848_v12 = vcombine.low %v1840_v9, %v1841_v34  ;;  %v1849_v14 = vcombine.high %v1840_v9, %v1841_v34  ;;  %v1839_v15 = vadd.f32 %v1833_v61, %v1823_v10  ;;  %v1842_v18 = vmax.f32 %v1838_v11, 0.0 }
 0x17a   : > { %v1856_v17 = vrot.slane %v1848_v12, %v2996_v57  ;;  %v1863_v1 = vrot.slane %v1849_v14, %v2996_v57  ;;  %v1843_v54 = vmax.f32 %v1839_v15, 0.0 }
 0x17c   : > { %v1864_v19 = vcombine.high %v1856_v17, %v1856_v17  ;;  %v1865_v20 = vcombine.high %v1863_v1, %v1863_v1  ;;  %v1890_v55 = vrot.slane %v1856_v17, %v2996_v57  ;;  %v1906_v56 = vrot.slane %v1863_v1, %v2996_v57 }
 0x17d   : > { %v1866_v60 = vcombine.low %v1842_v18, %v1843_v54  ;;  %v1867_v24 = vcombine.high %v1842_v18, %v1843_v54 }
 0x17e   : > { %v1891_v40 = vcombine.high %v1890_v55, %v1890_v55  ;;  %v1898_v26 = vrot.slane %v1864_v19, %v2996_v57  ;;  %v1907_v27 = vcombine.high %v1906_v56, %v1906_v56  ;;  %v1914_v29 = vrot.slane %v1865_v20, %v2996_v57 }
 0x17f   : > { %v1965_v30 = vsel %vm1964_vm14, %v1890_v55, -inf  ;;  %v1966_v13 = vsel %vm1964_vm14, %v1906_v56, -inf  ;;  %v1874_v32 = vrot.slane %v1866_v60, %v2996_v57  ;;  %v1881_v25 = vrot.slane %v1867_v24, %v2996_v57 }
 0x180   : > { %v1899_v28 = vcombine.high %v1898_v26, %v1898_v26  ;;  %v1915_v31 = vcombine.high %v1914_v29, %v1914_v29  ;;  %v1967_v33 = vmax.f32 %v1965_v30, %v1966_v13  ;;  %v1974_v36 = vsel %vm1964_vm14, %v1891_v40, -inf }
 0x181   : > { %v1975_v63 = vsel %vm1964_vm14, %v1907_v27, -inf  ;;  %v1983_v37 = vsel %vm1964_vm14, %v1898_v26, -inf  ;;  %v1984_v38 = vsel %vm1964_vm14, %v1914_v29, -inf  ;;  %v1882_v39 = vcombine.high %v1874_v32, %v1874_v32 }
 0x182   : > { %v1968_v41 = vrot.slane %v1967_v33, 4  ;;  %v1976_v42 = vmax.f32 %v1974_v36, %v1975_v63  ;;  %v1985_v43 = vmax.f32 %v1983_v37, %v1984_v38  ;;  %v1992_v44 = vsel %vm1964_vm14, %v1899_v28, -inf }
 0x183   : > { %v1993_v45 = vsel %vm1964_vm14, %v1915_v31, -inf  ;;  %v1883_v46 = vcombine.high %v1881_v25, %v1881_v25  ;;  %v1922_v47 = vrot.slane %v1874_v32, %v2996_v57  ;;  %v1930_v49 = vrot.slane %v1882_v39, %v2996_v57 }
 0x184   : > { %v1969_v50 = vmax.f32 %v1967_v33, %v1968_v41  ;;  %v1977_v51 = vrot.slane %v1976_v42, 4  ;;  %v1986_v52 = vrot.slane %v1985_v43, 4  ;;  %v1994_v58 = vmax.f32 %v1992_v44, %v1993_v45 }
 0x185   : > { %v1923_v59 = vcombine.high %v1922_v47, %v1922_v47  ;;  %v1931_v61 = vcombine.high %v1930_v49, %v1930_v49  ;;  %v1938_v62 = vrot.slane %v1881_v25, %v2996_v57  ;;  %v1946_v0 = vrot.slane %v1883_v46, %v2996_v57 }
 0x186   : > { %v1970_v2 = vrot.slane %v1969_v50, 2  ;;  %v1978_v35 = vmax.f32 %v1976_v42, %v1977_v51  ;;  %v1987_v3 = vmax.f32 %v1985_v43, %v1986_v52  ;;  %v1995_v5 = vrot.slane %v1994_v58, 4 }
 0x187   : > { %v1939_v6 = vcombine.high %v1938_v62, %v1938_v62  ;;  %v1947_v7 = vcombine.high %v1946_v0, %v1946_v0  ;;  %v2001_v53 = vsel %vm1964_vm14, %v1922_v47, -inf  ;;  %v2002_v4 = vsel %vm1964_vm14, %v1938_v62, -inf }
 0x188   : > { %v1971_v8 = vmax.f32 %v1969_v50, %v1970_v2  ;;  %v1979_v9 = vrot.slane %v1978_v35, 2  ;;  %v1988_v34 = vrot.slane %v1987_v3, 2  ;;  %v1996_v10 = vmax.f32 %v1994_v58, %v1995_v5 }
 0x189   : > { %v2003_v11 = vmax.f32 %v2001_v53, %v2002_v4  ;;  %v2010_v12 = vsel %vm1964_vm14, %v1923_v59, -inf  ;;  %v2011_v14 = vsel %vm1964_vm14, %v1939_v6, -inf  ;;  %v2019_v57 = vsel %vm1964_vm14, %v1930_v49, -inf }
 0x18a   : > { %v1972_v15 = vrot.slane %v1971_v8, 1  ;;  %v1980_v16 = vmax.f32 %v1978_v35, %v1979_v9  ;;  %v1989_v17 = vmax.f32 %v1987_v3, %v1988_v34  ;;  %v1997_v1 = vrot.slane %v1996_v10, 2 }
 0x18b   : > { %v2004_v54 = vrot.slane %v2003_v11, 4  ;;  %v2012_v18 = vmax.f32 %v2010_v12, %v2011_v14  ;;  %v2020_v19 = vsel %vm1964_vm14, %v1946_v0, -inf  ;;  %v2028_v20 = vsel %vm1964_vm14, %v1931_v61, -inf }
 0x18c   : > { %v1981_v55 = vrot.slane %v1980_v16, 1  ;;  %v1990_v56 = vrot.slane %v1989_v17, 1  ;;  %v1998_v22 = vmax.f32 %v1996_v10, %v1997_v1  ;;  %v2115_v60 = vunpack.c.0.s8 %v3486_v23 }
 0x18d   : > { %v2005_v24 = vmax.f32 %v2003_v11, %v2004_v54  ;;  %v2013_v40 = vrot.slane %v2012_v18, 4  ;;  %v2021_v26 = vmax.f32 %v2019_v57, %v2020_v19  ;;  %v2029_v27 = vsel %vm1964_vm14, %v1947_v7, -inf }
 0x18e   : > { %v1973_v29 = vmax.f32 %v1971_v8, %v1972_v15  ;;  %v1982_v30 = vmax.f32 %v1980_v16, %v1981_v55  ;;  %v1999_v13 = vrot.slane %v1998_v22, 1  ;;  %v2030_v32 = vmax.f32 %v2028_v20, %v2029_v27 }
 0x18f   : > { %v2006_v25 = vrot.slane %v2005_v24, 2  ;;  %v2014_v28 = vmax.f32 %v2012_v18, %v2013_v40  ;;  %v2022_v31 = vrot.slane %v2021_v26, 4  ;;  %v1991_v33 = vmax.f32 %v1989_v17, %v1990_v56 }
 0x190   : > { %v2000_v36 = vmax.f32 %v1998_v22, %v1999_v13  ;;  %v2491_v63 = vpack.c.bf16 %v1982_v30, %v1973_v29  ;;  %v2031_v37 = vrot.slane %v2030_v32, 4  ;;  %v2118_v43 = vsub.s32 %v2115_v60, %v2968_v48 }
 0x191   : > { %v2007_v38 = vmax.f32 %v2005_v24, %v2006_v25  ;;  %v2015_v39 = vrot.slane %v2014_v28, 2  ;;  %v2023_v41 = vmax.f32 %v2021_v26, %v2022_v31 }
 0x192   : > { %v2060_v23 = vrot.slane %v2491_v63, %v3484_v21  ;;  %v2492_v42 = vpack.c.bf16 %v2000_v36, %v1991_v33  ;;  %v2032_v44 = vmax.f32 %v2030_v32, %v2031_v37 }
 0x193   : > { %v2008_v45 = vrot.slane %v2007_v38, 1  ;;  %v2016_v46 = vmax.f32 %v2014_v28, %v2015_v39  ;;  %v2024_v47 = vrot.slane %v2023_v41, 2 }
 0x194   : > { %v2067_v49 = vrot.slane %v2060_v23, %v3484_v21  ;;  %v2075_v50 = vrot.slane %v2492_v42, %v3484_v21  ;;  %v2033_v51 = vrot.slane %v2032_v44, 2 }
 0x195   : > { %v2017_v52 = vrot.slane %v2016_v46, 1  ;;  %v2025_v58 = vmax.f32 %v2023_v41, %v2024_v47  ;;  %v2009_v0 = vmax.f32 %v2007_v38, %v2008_v45 }
 0x196   : > { %v2082_v59 = vrot.slane %v2075_v50, %v3484_v21  ;;  %v2119_v61 = vrot.slane %v2067_v49, %v2118_v43  ;;  %v2034_v62 = vmax.f32 %v2032_v44, %v2033_v51 }
 0x197   : > { %v2018_v2 = vmax.f32 %v2016_v46, %v2017_v52  ;;  %v2026_v35 = vrot.slane %v2025_v58, 1 }
 0x198   : > { %v2133_v3 = vrot.slane %v2082_v59, %v2118_v43  ;;  %v2035_v48 = vrot.slane %v2034_v62, 1  ;;  %v2126_v5 = vrot.slane %v2119_v61, %v2118_v43 }
 0x199   : > { %v2493_v6 = vpack.c.bf16 %v2018_v2, %v2009_v0  ;;  %v2027_v53 = vmax.f32 %v2025_v58, %v2026_v35 }
 0x19a   : > { %v2140_v7 = vrot.slane %v2133_v3, %v2118_v43  ;;  %v2036_v4 = vmax.f32 %v2034_v62, %v2035_v48  ;;  %v2169_v11 = vunpack.c.l.b16 %v2126_v5  ;;  %v2170_v14 = vunpack.c.h.b16 %v2126_v5 }
 0x19b   : > { %v2090_v8 = vrot.slane %v2493_v6, %v3484_v21 }
 0x19c   : > { %v2171_v9 = vunpack.c.l.b16 %v2140_v7  ;;  %v2172_v34 = vunpack.c.h.b16 %v2140_v7  ;;  %v2494_v10 = vpack.c.bf16 %v2036_v4, %v2027_v53 }
 0x19d   : > { %v2097_v12 = vrot.slane %v2090_v8, %v3484_v21 }
 0x19e   : > { %v2177_v57 = vrot.slane %v2171_v9, 7  ;;  %v2180_v15 = vrot.slane %v2172_v34, 7  ;;  %v2105_v16 = vrot.slane %v2494_v10, %v3484_v21 }
 0x19f   : > { %v2147_v18 = vrot.slane %v2097_v12, %v2118_v43 }
 0x1a0   : > { %v2179_v17 = vsel %vm2178_vm15, %v2177_v57, %v2169_v11  ;;  %v2181_v1 = vsel %vm2178_vm15, %v2180_v15, %v2170_v14  ;;  %v2112_v54 = vrot.slane %v2105_v16, %v3484_v21 }
 0x1a1   : > { %v2186_v19 = vpack.c.b16 %v2181_v1, %v2179_v17  ;;  %v2154_v56 = vrot.slane %v2147_v18, %v2118_v43 }
 0x1a2   : > { %v2161_v20 = vrot.slane %v2112_v54, %v2118_v43 }
 0x1a3   : > { %v2194_v55 = vrot.slane %v2186_v19, %v3484_v21  ;;  %v2173_v40 = vunpack.c.l.b16 %v2154_v56  ;;  %v2174_v26 = vunpack.c.h.b16 %v2154_v56 }
 0x1a4   : > { %v2168_v22 = vrot.slane %v2161_v20, %v2118_v43 }
 0x1a5   : > { %2495 = vst.sshfl [vmem:[%s332_s13] sm:$0x5 pattern:$0x73625140] %v2194_v55 }
 0x1a6   : > { %v2175_v60 = vunpack.c.l.b16 %v2168_v22  ;;  %v2176_v24 = vunpack.c.h.b16 %v2168_v22 }
 0x1a8   : > { %v2182_v27 = vrot.slane %v2175_v60, 7  ;;  %v2184_v29 = vrot.slane %v2176_v24, 7 }
 0x1aa   : > { %v2183_v30 = vsel %vm2178_vm15, %v2182_v27, %v2173_v40  ;;  %v2185_v13 = vsel %vm2178_vm15, %v2184_v29, %v2174_v26 }
 0x1ab   : > { %v2187_v32 = vpack.c.b16 %v2185_v13, %v2183_v30 }
 0x1ad   : > { %v2208_v25 = vrot.slane %v2187_v32, %v3484_v21 }
 0x1af   : > { %2496 = vst.sshfl [vmem:[%s332_s13 + $0x2] sm:$0x5 pattern:$0x73625140] %v2208_v25 }
 0x1b0 PF: > { %s15_s20 = sadd.s32 1, %s2776_s20   ;;  %s3559_s18 = smov %s2772_s19 }
 0x1b1   : > { %p12_p5 = scmp.ge.s32.totalorder %s15_s20, 4   ;;  %s3560_s19 = smov %s3562_s21 }
 0x1b3   :  { %14 = sbr.rel (!%p12_p5) target bundleno = 2 (0x2), region = 73 }

// kernel: plate_model_forward.7
= control target key start
LH: loop header
LB: loop body
LE: loop exit
PB: predicated region body
PF: predicated region fallthrough
CT: control target
= control target key end

     0   :  { %v162_v28 = vlaneseq  ;;  %v1180_v36 = vmov 1966171168   ;;  %s1479_s0 = inlined_call_operand.vmem [shape: bf16[2,1024], index: 0, kind: input, shape index: {}]   ;;  %s1480_s1 = inlined_call_operand.vmem [shape: bf16[1024,128], index: 1, kind: input, shape index: {}]   ;;  %s1481_s2 = inlined_call_operand.vmem [shape: f32[1,128], index: 2, kind: input, shape index: {}]   ;;  %s1482_s3 = inlined_call_operand.vmem [shape: f32[128,2], index: 3, kind: input, shape index: {}]   ;;  %s1483_s4 = inlined_call_operand.vmem [shape: f32[1,2], index: 4, kind: input, shape index: {}]   ;;  %s1484_s5 = inlined_call_operand.hbm [shape: f32[2,2], index: 5, kind: output, shape index: {}]  }
   0x1   :  { %v1093_v0 = vld [vmem:[%s1480_s1 + $0x78] sm:$0xff]   ;;  %v1097_v4 = vld [vmem:[%s1480_s1 + $0x70] sm:$0xff]   ;;  %v1101_v8 = vld [vmem:[%s1480_s1 + $0x68] sm:$0xff]   ;;  %v160_v37 = vunpack.c.l.s4 %v1180_v36 }
   0x2   :  { %v1094_v1 = vld [vmem:[%s1480_s1 + $0xf8] sm:$0xff]   ;;  %949 = vmatprep.subr.bf16.mxu0 %v1093_v0  ;;  %v1098_v5 = vld [vmem:[%s1480_s1 + $0xf0] sm:$0xff]   ;;  %v1102_v9 = vld [vmem:[%s1480_s1 + $0xe8] sm:$0xff]   ;;  %v163_v33 = vshrl.u32 %v162_v28, 7 }
   0x3   :  { %v1095_v2 = vld [vmem:[%s1480_s1 + $0x38] sm:$0xff]   ;;  %971 = vmatprep.subr.bf16.mxu1 %v1094_v1  ;;  %v1099_v6 = vld [vmem:[%s1480_s1 + $0x30] sm:$0xff]   ;;  %v1103_v10 = vld [vmem:[%s1480_s1 + $0x28] sm:$0xff]   ;;  %v161_v40 = vunpack.c.0.s8 %v160_v37 }
   0x4   :  { %v1096_v3 = vld [vmem:[%s1480_s1 + $0xb8] sm:$0xff]   ;;  %950 = vmatpush3.bf16.msra.mxu0 %v1095_v2  ;;  %v1100_v7 = vld [vmem:[%s1480_s1 + $0xb0] sm:$0xff]   ;;  %v1104_v11 = vld [vmem:[%s1480_s1 + $0xa8] sm:$0xff]  }
   0x5   :  { %972 = vmatpush3.bf16.msra.mxu1 %v1096_v3  ;;  %951 = vmatprep.subr.bf16.mxu0 %v1097_v4  ;;  %v1105_v12 = vld [vmem:[%s1480_s1 + $0x60] sm:$0xff]   ;;  %v1109_v16 = vld [vmem:[%s1480_s1 + $0x58] sm:$0xff]   ;;  %v1113_v20 = vld [vmem:[%s1480_s1 + $0x50] sm:$0xff]   ;;  %v1319_v41 = vsub.s32 %v161_v40, %v163_v33 }
   0x6   :  { %973 = vmatprep.subr.bf16.mxu1 %v1098_v5  ;;  %v1106_v13 = vld [vmem:[%s1480_s1 + $0xe0] sm:$0xff]   ;;  %v1110_v17 = vld [vmem:[%s1480_s1 + $0xd8] sm:$0xff]   ;;  %v1114_v21 = vld [vmem:[%s1480_s1 + $0xd0] sm:$0xff]  }
   0x7   :  { %v1107_v14 = vld [vmem:[%s1480_s1 + $0x20] sm:$0xff]   ;;  %v1111_v18 = vld [vmem:[%s1480_s1 + $0x18] sm:$0xff]   ;;  %v1115_v22 = vld [vmem:[%s1480_s1 + $0x10] sm:$0xff]  }
   0x8   :  { %952 = vmatpush3.bf16.msra.mxu0 %v1099_v6  ;;  %v1108_v15 = vld [vmem:[%s1480_s1 + $0xa0] sm:$0xff]   ;;  %v1112_v19 = vld [vmem:[%s1480_s1 + $0x98] sm:$0xff]   ;;  %v1116_v23 = vld [vmem:[%s1480_s1 + $0x90] sm:$0xff]  }
   0x9   :  { %974 = vmatpush3.bf16.msra.mxu1 %v1100_v7  ;;  %953 = vmatprep.subr.bf16.mxu0 %v1101_v8  ;;  %v1117_v24 = vld [vmem:[%s1480_s1 + $0x48] sm:$0xff]   ;;  %v1121_v29 = vld [vmem:[%s1480_s1 + $0x40] sm:$0xff]   ;;  %v1126_v35 = vld [vmem:[%s1480_s1 + $0x178] sm:$0xff]  }
   0xa   :  { %975 = vmatprep.subr.bf16.mxu1 %v1102_v9  ;;  %v1118_v25 = vld [vmem:[%s1480_s1 + $0xc8] sm:$0xff]   ;;  %v1122_v30 = vld [vmem:[%s1480_s1 + $0xc0] sm:$0xff]   ;;  %v1127_v38 = vld [vmem:[%s1480_s1 + $0x1f8] sm:$0xff]  }
   0xb   :  { %v1119_v26 = vld [vmem:[%s1480_s1 + $0x8] sm:$0xff]   ;;  %v1123_v31 = vld [vmem:[%s1480_s1] sm:$0xff]   ;;  %v1128_v48 = vld [vmem:[%s1480_s1 + $0x138] sm:$0xff]  }
   0xc   :  { %954 = vmatpush3.bf16.msra.mxu0 %v1103_v10  ;;  %v1120_v27 = vld [vmem:[%s1480_s1 + $0x88] sm:$0xff]   ;;  %v1124_v32 = vld [vmem:[%s1480_s1 + $0x80] sm:$0xff]   ;;  %v1130_v51 = vld [vmem:[%s1480_s1 + $0x170] sm:$0xff]  }
   0xd   :  { %976 = vmatpush3.bf16.msra.mxu1 %v1104_v11  ;;  %955 = vmatprep.subr.bf16.mxu0 %v1105_v12  ;;  %v28_v34 = vld [vmem:[%s1479_s0] sm:$0xff]  ;;  %v1129_v53 = vld [vmem:[%s1480_s1 + $0x1b8] sm:$0xff]   ;;  %v1131_v54 = vld [vmem:[%s1480_s1 + $0x1f0] sm:$0xff]  }
   0xe   :  { %977 = vmatprep.subr.bf16.mxu1 %v1106_v13  ;;  %v158_v39 = vcombine.high %v28_v34, %v28_v34  ;;  %v165_v42 = vrot.slane %v28_v34, %v1319_v41  ;;  %v1132_v56 = vld [vmem:[%s1480_s1 + $0x130] sm:$0xff]   ;;  %v1134_v57 = vld [vmem:[%s1480_s1 + $0x168] sm:$0xff]   ;;  %v1138_v61 = vld [vmem:[%s1480_s1 + $0x160] sm:$0xff]  }
   0xf   :  { %v1133_v58 = vld [vmem:[%s1480_s1 + $0x1b0] sm:$0xff]   ;;  %v1135_v59 = vld [vmem:[%s1480_s1 + $0x1e8] sm:$0xff]   ;;  %v1139_v63 = vld [vmem:[%s1480_s1 + $0x1e0] sm:$0xff]  }
  0x10   :  { %956 = vmatpush3.bf16.msra.mxu0 %v1107_v14  ;;  %v1323_v43 = vrot.slane %v158_v39, %v1319_v41  ;;  %v173_v44 = vcombine.high %v165_v42, %v165_v42  ;;  %v181_v45 = vrot.slane %v165_v42, %v1319_v41  ;;  %v1136_v60 = vld [vmem:[%s1480_s1 + $0x128] sm:$0xff]   ;;  %v1140_v0 = vld [vmem:[%s1480_s1 + $0x120] sm:$0xff]   ;;  %v1142_v1 = vld [vmem:[%s1480_s1 + $0x158] sm:$0xff]  }
  0x11   :  { %978 = vmatpush3.bf16.msra.mxu1 %v1108_v15  ;;  %957 = vmatprep.subr.bf16.mxu0 %v1109_v16  ;;  %v1137_v62 = vld [vmem:[%s1480_s1 + $0x1a8] sm:$0xff]   ;;  %v1141_v2 = vld [vmem:[%s1480_s1 + $0x1a0] sm:$0xff]   ;;  %v1143_v3 = vld [vmem:[%s1480_s1 + $0x1d8] sm:$0xff]  }
  0x12   :  { %979 = vmatprep.subr.bf16.mxu1 %v1110_v17  ;;  %v174_v46 = vcombine.high %v1323_v43, %v1323_v43  ;;  %v195_v47 = vrot.slane %v173_v44, %v1319_v41  ;;  %v203_v50 = vcombine.high %v181_v45, %v181_v45  ;;  %v1144_v4 = vld [vmem:[%s1480_s1 + $0x118] sm:$0xff]   ;;  %v1146_v5 = vld [vmem:[%s1480_s1 + $0x150] sm:$0xff]   ;;  %v1150_v9 = vld [vmem:[%s1480_s1 + $0x148] sm:$0xff]  }
  0x13   :  { %v1145_v6 = vld [vmem:[%s1480_s1 + $0x198] sm:$0xff]   ;;  %v1147_v7 = vld [vmem:[%s1480_s1 + $0x1d0] sm:$0xff]  }
  0x14   :  { %958 = vmatpush3.bf16.msra.mxu0 %v1111_v18  ;;  %v202_v49 = vrot.slane %v174_v46, %v1319_v41  ;;  %631 = vmatprep.mubr.bf16.mxu0 %v195_v47  ;;  %v205_v52 = vcombine.high %v195_v47, %v195_v47  ;;  %v1148_v8 = vld [vmem:[%s1480_s1 + $0x110] sm:$0xff]  }
  0x15   :  { %980 = vmatpush3.bf16.msra.mxu1 %v1112_v19  ;;  %959 = vmatprep.subr.bf16.mxu0 %v1113_v20 }
  0x16   :  { %981 = vmatprep.subr.bf16.mxu1 %v1114_v21  ;;  %v206_v55 = vcombine.high %v202_v49, %v202_v49  ;;  %671 = vmatprep.mubr.bf16.mxu1 %v205_v52 }
  0x18   :  { %960 = vmatpush3.bf16.msra.mxu0 %v1115_v22 }
  0x19   :  { %982 = vmatpush3.bf16.msra.mxu1 %v1116_v23  ;;  %961 = vmatprep.subr.bf16.mxu0 %v1117_v24 }
  0x1a   :  { %983 = vmatprep.subr.bf16.mxu1 %v1118_v25 }
  0x1c   :  { %962 = vmatpush3.bf16.msra.mxu0 %v1119_v26 }
  0x1d   :  { %984 = vmatpush3.bf16.msra.mxu1 %v1120_v27  ;;  %963 = vmatprep.subr.bf16.mxu0 %v1121_v29 }
  0x1e   :  { %985 = vmatprep.subr.bf16.mxu1 %v1122_v30 }
  0x20   :  { %964 = vmatpush3.bf16.msra.mxu0 %v1123_v31 }
  0x21   :  { %986 = vmatpush3.bf16.msra.mxu1 %v1124_v32  ;;  %993 = vmatprep.subr.bf16.mxu0 %v1126_v35 }
  0x22   :  { %1015 = vmatprep.subr.bf16.mxu1 %v1127_v38 }
  0x23   :  { %632 = vmatmul.mubr.bf16.vlgmr.msra.gmra.mxu0 %v181_v45 }
  0x24   :  { %994 = vmatpush3.bf16.msra.mxu0 %v1128_v48  ;;  %672 = vmatmul.mubr.bf16.vlgmr.msra.gmra.mxu1 %v203_v50 }
  0x25   :  { %995 = vmatprep.subr.bf16.mxu0 %v1130_v51  ;;  %1016 = vmatpush3.bf16.msra.mxu1 %v1129_v53 }
  0x26   :  { %711 = vmatprep.mubr.bf16.mxu0 %v202_v49  ;;  %1017 = vmatprep.subr.bf16.mxu1 %v1131_v54 }
  0x27   :  { %751 = vmatprep.mubr.bf16.mxu1 %v206_v55 }
  0x28   :  { %996 = vmatpush3.bf16.msra.mxu0 %v1132_v56 }
  0x29   :  { %997 = vmatprep.subr.bf16.mxu0 %v1134_v57  ;;  %1018 = vmatpush3.bf16.msra.mxu1 %v1133_v58 }
  0x2a   :  { %1019 = vmatprep.subr.bf16.mxu1 %v1135_v59 }
  0x2c   :  { %998 = vmatpush3.bf16.msra.mxu0 %v1136_v60 }
  0x2d   :  { %999 = vmatprep.subr.bf16.mxu0 %v1138_v61  ;;  %1020 = vmatpush3.bf16.msra.mxu1 %v1137_v62 }
  0x2e   :  { %1021 = vmatprep.subr.bf16.mxu1 %v1139_v63 }
  0x30   :  { %1000 = vmatpush3.bf16.msra.mxu0 %v1140_v0 }
  0x31   :  { %1001 = vmatprep.subr.bf16.mxu0 %v1142_v1  ;;  %1022 = vmatpush3.bf16.msra.mxu1 %v1141_v2 }
  0x32   :  { %1023 = vmatprep.subr.bf16.mxu1 %v1143_v3 }
  0x34   :  { %1002 = vmatpush3.bf16.msra.mxu0 %v1144_v4 }
  0x35   :  { %1003 = vmatprep.subr.bf16.mxu0 %v1146_v5 }
  0x36   :  { %10 = vsyncpa [#allocation4], 0  ;;  %1024 = vmatpush3.bf16.msra.mxu1 %v1145_v6  ;;  %v1149_v10 = vld [vmem:[%s1480_s1 + $0x190] sm:$0xff]   ;;  %v1151_v11 = vld [vmem:[%s1480_s1 + $0x1c8] sm:$0xff]   ;;  %v188_v17 = vrot.slane %v1323_v43, %v1319_v41  ;;  %v1181_v21 = vmov 0.0   ;;  %vm1182_vm0 = vmmov 0  }
  0x37   :  { %1025 = vmatprep.subr.bf16.mxu1 %v1147_v7  ;;  %v1152_v12 = vld [vmem:[%s1480_s1 + $0x108] sm:$0xff]   ;;  %v1154_v13 = vld [vmem:[%s1480_s1 + $0x140] sm:$0xff]   ;;  %v789_v20 = vld [vmem:[%s1482_s3 + $0x78] sm:$0xff]  ;;  %26 = vst [vmem:[#allocation2] sm:$0x3] %v1181_v21  ;;  %s1183_s27 = smov [#allocation3]  }
  0x38   :  { %1004 = vmatpush3.bf16.msra.mxu0 %v1148_v8  ;;  %v1153_v14 = vld [vmem:[%s1480_s1 + $0x188] sm:$0xff]   ;;  %v1155_v15 = vld [vmem:[%s1480_s1 + $0x1c0] sm:$0xff]   ;;  %v204_v19 = vcombine.high %v188_v17, %v188_v17  ;;  %v788_v22 = vld [vmem:[%s1482_s3 + $0x70] sm:$0xff]  ;;  %s875_s28 = sshll.u32 %s1183_s27, 4  ;;  %vm867_vm1 = vcmask 9216   ;;  %s876_s28 = int_to_ptr.vmem [resolvable:$true] %s875_s28 }
  0x39   :  { %1005 = vmatprep.subr.bf16.mxu0 %v1150_v9  ;;  %v1156_v16 = vld [vmem:[%s1480_s1 + $0x100] sm:$0xff]   ;;  %v787_v23 = vld [vmem:[%s1482_s3 + $0x68] sm:$0xff]  ;;  %v785_v25 = vld [vmem:[%s1482_s3 + $0x58] sm:$0xff]  ;;  %s1158_s29 = scalar_lea.vmem %s876_s28, 32  ;;  %p1163_p1 = scmp.lt.s32.totalorder %s876_s28, %s876_s28 }
  0x3a   :  { %1026 = vmatpush3.bf16.msra.mxu1 %v1149_v10  ;;  %v1157_v18 = vld [vmem:[%s1480_s1 + $0x180] sm:$0xff]   ;;  %v784_v26 = vld [vmem:[%s1482_s3 + $0x50] sm:$0xff]  ;;  %v783_v27 = vld [vmem:[%s1482_s3 + $0x48] sm:$0xff]  ;;  %p1159_p0 = scmp.ne.s32.totalorder %s876_s28, %s1158_s29  ;;  %p1164_p2 = scmp.lt.s32.totalorder %s1158_s29, %s1158_s29 }
  0x3b   :  { %1027 = vmatprep.subr.bf16.mxu1 %v1151_v11  ;;  %v786_v24 = vld [vmem:[%s1482_s3 + $0x60] sm:$0xff]  ;;  %v781_v29 = vld [vmem:[%s1482_s3 + $0x38] sm:$0xff]  ;;  %v780_v30 = vld [vmem:[%s1482_s3 + $0x30] sm:$0xff] }
  0x3c   :  { %1006 = vmatpush3.bf16.msra.mxu0 %v1152_v12  ;;  %v782_v28 = vld [vmem:[%s1482_s3 + $0x40] sm:$0xff]  ;;  %v779_v31 = vld [vmem:[%s1482_s3 + $0x28] sm:$0xff]  ;;  %v777_v33 = vld [vmem:[%s1482_s3 + $0x18] sm:$0xff]  ;;  %p1165_p3 = por %p1164_p2, %p1163_p1 }
  0x3d   :  { %1007 = vmatprep.subr.bf16.mxu0 %v1154_v13  ;;  %v778_v32 = vld [vmem:[%s1482_s3 + $0x20] sm:$0xff]  ;;  %v776_v34 = vld [vmem:[%s1482_s3 + $0x10] sm:$0xff]  ;;  %v775_v35 = vld [vmem:[%s1482_s3 + $0x8] sm:$0xff] }
  0x3e   :  { %1028 = vmatpush3.bf16.msra.mxu1 %v1153_v14  ;;  %v774_v36 = vld [vmem:[%s1482_s3] sm:$0xff]  ;;  %p1166_p4 = pnand %p1165_p3, %p1159_p0 }
  0x3f   :  { %1029 = vmatprep.subr.bf16.mxu1 %v1155_v15  ;;  %v27_v56 = vld [vmem:[#allocation2] sm:$0x3] }
  0x40   :  { %1008 = vmatpush3.bf16.msra.mxu0 %v1156_v16  ;;  %v947_v62 = vld [vmem:[%s1481_s2] ss:$0 sm:$0xff] }
  0x41   :  { %1054 = vmatprep.subr.mxu0 %v1181_v21  ;;  %v948_v2 = vld [vmem:[%s1483_s4] ss:$0 sm:$0xff] }
  0x42   :  { %1030 = vmatpush3.bf16.msra.mxu1 %v1157_v18 }
  0x43   :  { %712 = vmatmul.mubr.bf16.vlgmr.msra.gmra.mxu0 %v188_v17 }
  0x44   :  { %1055 = vmatpush3.msra.mxu0 %v789_v20  ;;  %1086 = vmatprep.mubr.msk.f32.mxu0 %vm1182_vm0, %v1181_v21 }
  0x45   :  { %752 = vmatmul.mubr.bf16.vlgmr.msra.gmra.mxu1 %v204_v19  ;;  %1056 = vmatprep.subr.mxu0 %v1181_v21 }
  0x46   :  { %1057 = vmatpush3.msra.mxu0 %v788_v22 }
  0x47   :  { %1058 = vmatprep.subr.mxu0 %v1181_v21 }
  0x48   :  { %1059 = vmatpush3.msra.mxu0 %v787_v23 }
  0x49   :  { %1060 = vmatprep.subr.mxu0 %v1181_v21 }
  0x4a   :  { %1061 = vmatpush3.msra.mxu0 %v786_v24 }
  0x4b   :  { %1062 = vmatprep.subr.mxu0 %v1181_v21 }
  0x4c   :  { %1063 = vmatpush3.msra.mxu0 %v785_v25 }
  0x4d   :  { %1064 = vmatprep.subr.mxu0 %v1181_v21 }
  0x4e   :  { %1065 = vmatpush3.msra.mxu0 %v784_v26 }
  0x4f   :  { %1066 = vmatprep.subr.mxu0 %v1181_v21 }
  0x50   :  { %1067 = vmatpush3.msra.mxu0 %v783_v27 }
  0x51   :  { %1068 = vmatprep.subr.mxu0 %v1181_v21 }
  0x52   :  { %1069 = vmatpush3.msra.mxu0 %v782_v28 }
  0x53   :  { %1070 = vmatprep.subr.mxu0 %v1181_v21 }
  0x54   :  { %1071 = vmatpush3.msra.mxu0 %v781_v29 }
  0x55   :  { %1072 = vmatprep.subr.mxu0 %v1181_v21 }
  0x56   :  { %1073 = vmatpush3.msra.mxu0 %v780_v30 }
  0x57   :  { %1074 = vmatprep.subr.mxu0 %v1181_v21 }
  0x58   :  { %1075 = vmatpush3.msra.mxu0 %v779_v31 }
  0x59   :  { %1076 = vmatprep.subr.mxu0 %v1181_v21 }
  0x5a   :  { %1077 = vmatpush3.msra.mxu0 %v778_v32 }
  0x5b   :  { %1078 = vmatprep.subr.mxu0 %v1181_v21 }
  0x5c   :  { %1079 = vmatpush3.msra.mxu0 %v777_v33 }
  0x5d   :  { %1080 = vmatprep.subr.mxu0 %v1181_v21 }
  0x5e   :  { %1081 = vmatpush3.msra.mxu0 %v776_v34 }
  0x5f   :  { %1082 = vmatprep.subr.mxu0 %v1181_v21 }
  0x60   :  { %1083 = vmatpush3.msra.mxu0 %v775_v35 }
  0x61   :  { %1084 = vmatprep.subr.mxu0 %v1181_v21 }
  0x62   :  { %1085 = vmatpush3.msra.mxu0 %v774_v36 }
  0xe3   :  { %v965_v37 = vpop.f32.mrf.mxu0 }
  0xe4   :  { %v987_v38 = vpop.f32.mrf.mxu1 }
  0xe5   :  { %v966_v39 = vpop.f32.mrf.mxu0 }
  0xe6   :  { %v988_v40 = vpop.f32.mrf.mxu1  ;;  %v967_v45 = vadd.f32 %v966_v39, %v965_v37 }
  0xe7   :  { %v968_v41 = vpop.f32.mrf.mxu0  ;;  %v989_v46 = vadd.f32 %v988_v40, %v987_v38 }
  0xe8   :  { %v990_v42 = vpop.f32.mrf.mxu1 }
  0xe9   :  { %v969_v43 = vpop.f32.mrf.mxu0  ;;  %v674_v50 = vadd.f32 %v989_v46, %v967_v45 }
  0xea   :  { %v991_v44 = vpop.f32.mrf.mxu1 }
 0x103   :  { %v1009_v47 = vpop.f32.mrf.mxu0 }
 0x105   :  { %v1031_v48 = vpop.f32.mrf.mxu1  ;;  %v1010_v49 = vpop.f32.mrf.mxu0 }
 0x106   :  { %v1011_v51 = vadd.f32 %v1010_v49, %v1009_v47 }
 0x107   :  { %v1032_v52 = vpop.f32.mrf.mxu1  ;;  %v1012_v53 = vpop.f32.mrf.mxu0 }
 0x108   :  { %v714_v54 = vadd.f32 %v1011_v51, %v674_v50  ;;  %v1033_v55 = vadd.f32 %v1032_v52, %v1031_v48 }
 0x109   :  { %v1034_v57 = vpop.f32.mrf.mxu1  ;;  %v1013_v58 = vpop.f32.mrf.mxu0 }
 0x10a   :  { %v754_v59 = vadd.f32 %v1033_v55, %v714_v54 }
 0x10b   :  { %v1035_v60 = vpop.f32.mrf.mxu1 }
 0x10c   :  { %v759_v61 = vadd.f32 %v754_v59, %v27_v56 }
 0x10e   :  { %760 = vst [vmem:[#allocation2] sm:$0x3] %v759_v61 }
 0x115   :  { %v764_v63 = vld [vmem:[#allocation2] sm:$0x3] }
 0x116   :  { %v772_v0 = vadd.f32 %v947_v62, %v764_v63 }
 0x118   :  { %v773_v1 = vmax.f32 %v772_v0, 0.0 }
 0x11a   :  { %1087 = vmatmul.mubr.f32.vlgmr.msra.gmra.mxu0 %v773_v1 }
 0x1da   :  { %v863_v3 = vpop.f32.mrf.mxu0 }
 0x1db   :  { %v864_v4 = vadd.f32 %v948_v2, %v863_v3 }
 0x1dc   :  { %v1088_v5 = vpop.f32.mrf.mxu0 }
 0x1dd   :  { %868 = vst.msk [vmem:[#allocation3] sm:$0x3] %vm867_vm1, %v864_v4 }
 0x1de   :  { %1169 = shalt.err (!%p1166_p4)
}
 0x1df   :  { %878 = dma.vmem_to_hbm [thread:$0]  %s876_s28, 32, %s1484_s5, [#allocation4]  }
 0x1e0   :  { %1178 = dma.done.wait [#allocation4], 32  }
 0x1e1   :  { %1179 = vsyncadd [#allocation4], 4294967264 }
 0x1e2   :  { %882 = vsyncpa [#allocation4], 1 }

</bundles_post_ra>
